<compile_context>
chip_gen: v6e
topology: v6e:2x2x1
jax: 0.10.0
libtpu: 0.0.40
codegen_flags: <defaults>
</compile_context>

<pallas_src>
import math

import jax
import jax.numpy as jnp
from jax.experimental import pallas as pl
from jax.experimental.pallas import tpu as pltpu

# ---- scaled-down AST config (real model: D=768, H=12, FF=3072, 12 layers) ----
PATCH, STRIDE = 16, 10          # AST conv patch size / stride
FREQ, TIME = 16, 36             # num_mel_bins, max_length (small)
D, H, FF = 32, 4, 64            # hidden, heads, intermediate
HD = D // H
LAYERS = 2
NUM_CLASSES = 10
NC_PAD = 128                    # lane-dense padded logits width
EPS = 1e-12                     # AST layer_norm_eps
NF = (FREQ - PATCH) // STRIDE + 1
NT = (TIME - PATCH) // STRIDE + 1
NPATCH = NF * NT
SEQ = NPATCH + 2                # cls token + distillation token
PP = PATCH * PATCH              # flattened patch size (256)
BW = 128                        # bias-slab lane width (lane-aligned, >= 3*D, FF)

B_TILE = 8                      # batch elements folded into one grid step
R = B_TILE * SEQ                # activation rows per grid step (40)
HR = H * R                      # stacked attention rows (head, batch, seq)


def _ln(z, w, b):
    mu = jnp.mean(z, axis=-1, keepdims=True)
    var = jnp.mean((z - mu) ** 2, axis=-1, keepdims=True)
    return (z - mu) * jax.lax.rsqrt(var + EPS) * w + b


# ---------------- fused Pallas kernel (grid over batch tiles) ----------------

def fused_ast_kernel(patches_ref, base_ref, pw_ref, wqkv_ref, wo_ref, w1_ref,
                     w2_ref, lnb_ref, hln_ref, wd_ref, bd_ref, amask_ref,
                     pool_ref, o_ref):
    # patches_ref: (R, PP) bf16   im2col patches for B_TILE samples (cls/dist rows zero)
    # base_ref:    (R, D)  f32    cls/dist tokens + pos emb + patch bias, tiled per sample
    # pw_ref:      (PP, D) bf16   patch-embedding projection
    # wqkv_ref:    (LAYERS, D, 3D) bf16   [wq*scale | wk | wv]
    # wo_ref:      (LAYERS, D, D)  bf16
    # w1_ref:      (LAYERS, D, FF) bf16
    # w2_ref:      (LAYERS, FF, D) bf16
    # lnb_ref:     (LAYERS, 8, BW) f32   rows: ln1_w, ln1_b, bqkv, bo, ln2_w, ln2_b, b1, b2
    # hln_ref:     (4, D) f32     final LN w/b, head LN w/b
    # wd_ref:      (D, NC_PAD) bf16   classifier weight, zero-padded to 128 lanes
    # bd_ref:      (1, NC_PAD) f32
    # amask_ref:   (HR, HR) f32   block-diagonal additive attention mask (0 / -1e30)
    # pool_ref:    (B_TILE, R) f32   (cls+dist)/2 row-pooling matrix
    # o_ref:       (B_TILE, NC_PAD) f32   padded logits for this batch tile
    bf = jnp.bfloat16

    # --- patch embedding (+ cls/dist/pos/bias pre-folded into `base`) ---
    x = base_ref[...] + jnp.dot(patches_ref[...], pw_ref[...],
                                preferred_element_type=jnp.float32)   # (R, D)

    amask = amask_ref[...]

    # --- transformer encoder layers (all weights resident in VMEM) ---
    for l in range(LAYERS):
        lnb = lnb_ref[l]                              # (8, BW)
        ln1w, ln1b = lnb[0:1, :D], lnb[1:2, :D]
        bqkv = lnb[2:3, :3 * D]
        bo = lnb[3:4, :D]
        ln2w, ln2b = lnb[4:5, :D], lnb[5:6, :D]
        b1 = lnb[6:7, :FF]
        b2 = lnb[7:8, :D]

        # ---- self-attention (pre-LN); q-scale folded into wq/bq at pack time ----
        h = _ln(x, ln1w, ln1b)
        qkv = jnp.dot(h.astype(bf), wqkv_ref[l],
                      preferred_element_type=jnp.float32) + bqkv      # (R, 3D)

        # stack heads along rows -> (HR, HD); row order (head, batch, seq)
        qs = jnp.concatenate(
            [qkv[:, i * HD:(i + 1) * HD] for i in range(H)], axis=0)
        ks = jnp.concatenate(
            [qkv[:, D + i * HD:D + (i + 1) * HD] for i in range(H)], axis=0)
        vs = jnp.concatenate(
            [qkv[:, 2 * D + i * HD:2 * D + (i + 1) * HD] for i in range(H)], axis=0)

        # one score matmul for all heads & samples + block-diagonal mask
        s = jax.lax.dot_general(qs.astype(bf), ks.astype(bf),
                                (((1,), (1,)), ((), ())),
                                preferred_element_type=jnp.float32) + amask
        s = s - jnp.max(s, axis=-1, keepdims=True)
        p = jnp.exp(s)
        p = p * pl.reciprocal(jnp.sum(p, axis=-1, keepdims=True), approx=True)
        ctx = jnp.dot(p.astype(bf), vs.astype(bf),
                      preferred_element_type=jnp.float32)             # (HR, HD)

        # fold heads back into lanes -> (R, D); single output projection
        ctx_l = jnp.concatenate(
            [ctx[i * R:(i + 1) * R, :] for i in range(H)], axis=1)
        x = x + jnp.dot(ctx_l.astype(bf), wo_ref[l],
                        preferred_element_type=jnp.float32) + bo

        # ---- MLP block (pre-LN, exact erf-GELU as in HF "gelu") ----
        h2 = _ln(x, ln2w, ln2b)
        m = jnp.dot(h2.astype(bf), w1_ref[l],
                    preferred_element_type=jnp.float32) + b1
        m = 0.5 * m * (1.0 + jax.lax.erf(m / math.sqrt(2.0)))
        x = x + jnp.dot(m.astype(bf), w2_ref[l],
                        preferred_element_type=jnp.float32) + b2

    # --- final LayerNorm, (cls + dist)/2 pool (as a matmul), MLP head ---
    hln = hln_ref[...]
    hf = _ln(x, hln[0:1, :], hln[1:2, :])                   # model.layernorm
    pooled = jnp.dot(pool_ref[...], hf,
                     preferred_element_type=jnp.float32)    # (B_TILE, D)
    ph = _ln(pooled, hln[2:3, :], hln[3:4, :])              # ASTMLPHead.layernorm
    o_ref[...] = (jnp.dot(ph.astype(bf), wd_ref[...],
                          preferred_element_type=jnp.float32)
                  + bd_ref[...])                            # classifier.dense


# ---------------- wrappers ----------------

def im2col(S_in):
    # S_in: (B, time, freq) -> NCHW conv input is (B, 1, freq, time)
    x = jnp.transpose(S_in, (0, 2, 1))              # (B, freq, time)
    B = x.shape[0]
    cols = []
    for i in range(NF):                             # freq patches (major)
        for j in range(NT):                         # time patches (minor)
            blk = x[:, i * STRIDE:i * STRIDE + PATCH,
                       j * STRIDE:j * STRIDE + PATCH]   # (B, 16, 16)
            cols.append(blk.reshape(B, -1))         # kh(freq)-major, kw(time)-minor
    return jnp.stack(cols, axis=1)                  # (B, NPATCH, PP)


def pack_params(params):
    """Fold/concatenate the logical AST parameters into the fused-kernel slabs."""
    scale = 1.0 / math.sqrt(HD)
    pos = params["pos"][0]                          # (SEQ, D)
    base = jnp.concatenate([
        params["cls"][0] + pos[0:1],
        params["dist"][0] + pos[1:2],
        pos[2:] + params["patch_b"],
    ], axis=0)                                      # (SEQ, D)
    base_t = jnp.tile(base, (B_TILE, 1))            # (R, D) — batch-folded rows

    def padrow(v, w=BW):
        return jnp.pad(v, ((0, 0), (0, w - v.shape[1])))

    wqkv, wo, w1, w2, lnb = [], [], [], [], []
    for lp in params["layers"]:
        wqkv.append(jnp.concatenate(
            [lp["wq"] * scale, lp["wk"], lp["wv"]], axis=1))   # scale folded into q
        wo.append(lp["wo"])
        w1.append(lp["w1"])
        w2.append(lp["w2"])
        lnb.append(jnp.concatenate([
            padrow(lp["ln1_w"]), padrow(lp["ln1_b"]),
            padrow(jnp.concatenate(
                [lp["bq"] * scale, lp["bk"], lp["bv"]], axis=1)),
            padrow(lp["bo"]),
            padrow(lp["ln2_w"]), padrow(lp["ln2_b"]),
            padrow(lp["b1"]), padrow(lp["b2"]),
        ], axis=0))

    # block-diagonal additive attention mask over (head, batch, seq)-stacked rows
    gid = jnp.arange(HR) // SEQ
    amask = jnp.where(gid[:, None] == gid[None, :], 0.0, -1e30).astype(jnp.float32)

    # (cls + dist) / 2 pooling matrix over the (batch, seq) row layout
    rows = jnp.arange(B_TILE)[:, None]
    cols = jnp.arange(R)[None, :]
    pool = jnp.where((cols // SEQ == rows) & (cols % SEQ < 2),
                     0.5, 0.0).astype(jnp.float32)

    bf = jnp.bfloat16
    packed = dict(
        base=base_t,
        patch_w=params["patch_w"].astype(bf),
        wqkv=jnp.stack(wqkv).astype(bf),            # (LAYERS, D, 3D)
        wo=jnp.stack(wo).astype(bf),                # (LAYERS, D, D)
        w1=jnp.stack(w1).astype(bf),                # (LAYERS, D, FF)
        w2=jnp.stack(w2).astype(bf),                # (LAYERS, FF, D)
        lnb=jnp.stack(lnb),                         # (LAYERS, 8, BW) f32
        hln=jnp.concatenate([params["lnf_w"], params["lnf_b"],
                             params["lnc_w"], params["lnc_b"]], axis=0),  # (4, D)
        wd=jnp.pad(params["wd"],
                   ((0, 0), (0, NC_PAD - NUM_CLASSES))).astype(bf),
        bd=jnp.pad(params["bd"], ((0, 0), (0, NC_PAD - NUM_CLASSES))),
        amask=amask,
        pool=pool,
    )
    return packed


def ast_forward(packed, S):
    B = S.shape[0]
    assert B % B_TILE == 0, "batch must be a multiple of B_TILE"
    nb = B // B_TILE                                                  # grid steps (>=2)
    patches = im2col(S)                                               # (B, NPATCH, PP)
    # zero rows for the cls/dist slots so x = base + patches @ patch_w directly
    patches = jnp.concatenate(
        [jnp.zeros((B, 2, PP), S.dtype), patches], axis=1)            # (B, SEQ, PP)
    # batch-fold in the wrapper: lane-dense 2D slab, bf16 to halve the per-step DMA
    patches = patches.reshape(B * SEQ, PP).astype(jnp.bfloat16)       # (B*SEQ, PP)

    wkeys = ["base", "patch_w", "wqkv", "wo", "w1", "w2", "lnb", "hln",
             "wd", "bd", "amask", "pool"]
    weights = [packed[k] for k in wkeys]
    in_specs = [pl.BlockSpec((R, PP), lambda g: (g, 0))]
    for w in weights:
        nd = w.ndim
        in_specs.append(pl.BlockSpec(w.shape, lambda g, nd=nd: (0,) * nd))

    logits_pad = pl.pallas_call(
        fused_ast_kernel,
        out_shape=jax.ShapeDtypeStruct((B, NC_PAD), jnp.float32),
        grid=(nb,),
        in_specs=in_specs,
        out_specs=pl.BlockSpec((B_TILE, NC_PAD), lambda g: (g, 0)),
        compiler_params=pltpu.CompilerParams(
            dimension_semantics=("parallel",)),
    )(patches, *weights)
    return logits_pad[:, :NUM_CLASSES]


# ---------------- deterministic parameter init ----------------

def init_params(key):
    def nrm(k, shape):
        return 0.02 * jax.random.normal(k, shape, jnp.float32)

    keys = iter(jax.random.split(key, 128))
    params = {
        "patch_w": nrm(next(keys), (PP, D)),
        "patch_b": jnp.zeros((1, D), jnp.float32),
        "cls": nrm(next(keys), (1, 1, D)),
        "dist": nrm(next(keys), (1, 1, D)),
        "pos": nrm(next(keys), (1, SEQ, D)),
        "lnf_w": jnp.ones((1, D), jnp.float32),
        "lnf_b": jnp.zeros((1, D), jnp.float32),
        "lnc_w": jnp.ones((1, D), jnp.float32),
        "lnc_b": jnp.zeros((1, D), jnp.float32),
        "wd": nrm(next(keys), (D, NUM_CLASSES)),
        "bd": jnp.zeros((1, NUM_CLASSES), jnp.float32),
    }
    layers = []
    for _ in range(LAYERS):
        layers.append(dict(
            ln1_w=jnp.ones((1, D), jnp.float32), ln1_b=jnp.zeros((1, D), jnp.float32),
            wq=nrm(next(keys), (D, D)), bq=jnp.zeros((1, D), jnp.float32),
            wk=nrm(next(keys), (D, D)), bk=jnp.zeros((1, D), jnp.float32),
            wv=nrm(next(keys), (D, D)), bv=jnp.zeros((1, D), jnp.float32),
            wo=nrm(next(keys), (D, D)), bo=jnp.zeros((1, D), jnp.float32),
            ln2_w=jnp.ones((1, D), jnp.float32), ln2_b=jnp.zeros((1, D), jnp.float32),
            w1=nrm(next(keys), (D, FF)), b1=jnp.zeros((1, FF), jnp.float32),
            w2=nrm(next(keys), (FF, D)), b2=jnp.zeros((1, D), jnp.float32),
        ))
    params["layers"] = layers
    return params


if __name__ == "__main__":
    key = jax.random.PRNGKey(0)
    pkey, xkey = jax.random.split(key)
    params = init_params(pkey)
    packed = pack_params(params)
    # B=16 = 2 batch tiles of 8 -> grid of 2 (keeps both v7x TensorCores busy)
    S = jax.random.normal(xkey, (16, TIME, FREQ), jnp.float32)  # (batch, time, freq)
    fwd = jax.jit(ast_forward)
    logits = fwd(packed, S)
    jax.block_until_ready(logits)
    assert logits.shape == (16, NUM_CLASSES)
    assert bool(jnp.all(jnp.isfinite(logits)))
    print("KERNEL_OK")
</pallas_src>

<mosaic_0001>
module attributes {stable_mosaic.version = 11 : i64} {
  func.func @fused_ast_kernel(%arg0: i32, %arg1: memref<40x256xbf16, #tpu.memory_space<vmem>>, %arg2: memref<40x32xf32, #tpu.memory_space<vmem>>, %arg3: memref<256x32xbf16, #tpu.memory_space<vmem>>, %arg4: memref<2x32x96xbf16, #tpu.memory_space<vmem>>, %arg5: memref<2x32x32xbf16, #tpu.memory_space<vmem>>, %arg6: memref<2x32x64xbf16, #tpu.memory_space<vmem>>, %arg7: memref<2x64x32xbf16, #tpu.memory_space<vmem>>, %arg8: memref<2x8x128xf32, #tpu.memory_space<vmem>>, %arg9: memref<4x32xf32, #tpu.memory_space<vmem>>, %arg10: memref<32x128xbf16, #tpu.memory_space<vmem>>, %arg11: memref<1x128xf32, #tpu.memory_space<vmem>>, %arg12: memref<160x160xf32, #tpu.memory_space<vmem>>, %arg13: memref<8x40xf32, #tpu.memory_space<vmem>>, %arg14: memref<8x128xf32, #tpu.memory_space<vmem>>) attributes {dimension_semantics = [#tpu.dimension_semantics<parallel>], iteration_bounds = array<i64: 2>, scalar_prefetch = 0 : i64, scratch_operands = 0 : i64, tpu.core_type = #tpu.core_type<tc>, window_params = [{transform_indices = @transform_0, window_bounds = array<i64: 40, 256>}, {pipeline_mode = #tpu.pipeline_mode<synchronous>, transform_indices = @transform_1, window_bounds = array<i64: 40, 32>}, {pipeline_mode = #tpu.pipeline_mode<synchronous>, transform_indices = @transform_2, window_bounds = array<i64: 256, 32>}, {pipeline_mode = #tpu.pipeline_mode<synchronous>, transform_indices = @transform_3, window_bounds = array<i64: 2, 32, 96>}, {pipeline_mode = #tpu.pipeline_mode<synchronous>, transform_indices = @transform_4, window_bounds = array<i64: 2, 32, 32>}, {pipeline_mode = #tpu.pipeline_mode<synchronous>, transform_indices = @transform_5, window_bounds = array<i64: 2, 32, 64>}, {pipeline_mode = #tpu.pipeline_mode<synchronous>, transform_indices = @transform_6, window_bounds = array<i64: 2, 64, 32>}, {pipeline_mode = #tpu.pipeline_mode<synchronous>, transform_indices = @transform_7, window_bounds = array<i64: 2, 8, 128>}, {pipeline_mode = #tpu.pipeline_mode<synchronous>, transform_indices = @transform_8, window_bounds = array<i64: 4, 32>}, {pipeline_mode = #tpu.pipeline_mode<synchronous>, transform_indices = @transform_9, window_bounds = array<i64: 32, 128>}, {pipeline_mode = #tpu.pipeline_mode<synchronous>, transform_indices = @transform_10, window_bounds = array<i64: 1, 128>}, {pipeline_mode = #tpu.pipeline_mode<synchronous>, transform_indices = @transform_11, window_bounds = array<i64: 160, 160>}, {pipeline_mode = #tpu.pipeline_mode<synchronous>, transform_indices = @transform_12, window_bounds = array<i64: 8, 40>}, {transform_indices = @transform_13, window_bounds = array<i64: 8, 128>}]} {
    %c0 = arith.constant 0 : index
    %c0_0 = arith.constant 0 : index
    %0 = vector.load %arg2[%c0, %c0_0] : memref<40x32xf32, #tpu.memory_space<vmem>>, vector<40x32xf32>
    %c0_1 = arith.constant 0 : index
    %c0_2 = arith.constant 0 : index
    %1 = vector.load %arg1[%c0_1, %c0_2] : memref<40x256xbf16, #tpu.memory_space<vmem>>, vector<40x256xbf16>
    %c0_3 = arith.constant 0 : index
    %c0_4 = arith.constant 0 : index
    %2 = vector.load %arg3[%c0_3, %c0_4] : memref<256x32xbf16, #tpu.memory_space<vmem>>, vector<256x32xbf16>
    %cst = arith.constant dense<0.000000e+00> : vector<40x32xf32>
    %3 = tpu.matmul %1, %2, %cst {dimension_numbers = #tpu.dot_dimension_numbers<[1], [0], [0], [1], [0, 0, 1, 1], [], []>} : vector<40x256xbf16>, vector<256x32xbf16>, vector<40x32xf32> -> vector<40x32xf32>
    %4 = arith.addf %0, %3 : vector<40x32xf32>
    %c0_5 = arith.constant 0 : index
    %c0_6 = arith.constant 0 : index
    %5 = vector.load %arg12[%c0_5, %c0_6] : memref<160x160xf32, #tpu.memory_space<vmem>>, vector<160x160xf32>
    %c0_7 = arith.constant 0 : index
    %c0_8 = arith.constant 0 : index
    %c0_9 = arith.constant 0 : index
    %6 = vector.load %arg8[%c0_7, %c0_8, %c0_9] : memref<2x8x128xf32, #tpu.memory_space<vmem>>, vector<1x8x128xf32>
    %7 = vector.shape_cast %6 : vector<1x8x128xf32> to vector<8x128xf32>
    %8 = vector.extract_strided_slice %7 {offsets = [0, 0], sizes = [1, 32], strides = [1, 1]} : vector<8x128xf32> to vector<1x32xf32>
    %9 = vector.extract_strided_slice %7 {offsets = [1, 0], sizes = [1, 32], strides = [1, 1]} : vector<8x128xf32> to vector<1x32xf32>
    %10 = vector.extract_strided_slice %7 {offsets = [2, 0], sizes = [1, 96], strides = [1, 1]} : vector<8x128xf32> to vector<1x96xf32>
    %11 = vector.extract_strided_slice %7 {offsets = [3, 0], sizes = [1, 32], strides = [1, 1]} : vector<8x128xf32> to vector<1x32xf32>
    %12 = vector.extract_strided_slice %7 {offsets = [4, 0], sizes = [1, 32], strides = [1, 1]} : vector<8x128xf32> to vector<1x32xf32>
    %13 = vector.extract_strided_slice %7 {offsets = [5, 0], sizes = [1, 32], strides = [1, 1]} : vector<8x128xf32> to vector<1x32xf32>
    %14 = vector.extract_strided_slice %7 {offsets = [6, 0], sizes = [1, 64], strides = [1, 1]} : vector<8x128xf32> to vector<1x64xf32>
    %15 = vector.extract_strided_slice %7 {offsets = [7, 0], sizes = [1, 32], strides = [1, 1]} : vector<8x128xf32> to vector<1x32xf32>
    %cst_10 = arith.constant dense<0.000000e+00> : vector<40xf32>
    %16 = vector.multi_reduction <add>, %4, %cst_10 [1] : vector<40x32xf32> to vector<40xf32>
    %17 = vector.shape_cast %16 : vector<40xf32> to vector<40x1xf32>
    %cst_11 = arith.constant 3.200000e+01 : f32
    %18 = vector.broadcast %cst_11 : f32 to vector<40x1xf32>
    %19 = arith.divf %17, %18 : vector<40x1xf32>
    %20 = vector.broadcast %19 : vector<40x1xf32> to vector<40x32xf32>
    %21 = arith.subf %4, %20 : vector<40x32xf32>
    %22 = arith.mulf %21, %21 : vector<40x32xf32>
    %cst_12 = arith.constant dense<0.000000e+00> : vector<40xf32>
    %23 = vector.multi_reduction <add>, %22, %cst_12 [1] : vector<40x32xf32> to vector<40xf32>
    %24 = vector.shape_cast %23 : vector<40xf32> to vector<40x1xf32>
    %cst_13 = arith.constant 3.200000e+01 : f32
    %25 = vector.broadcast %cst_13 : f32 to vector<40x1xf32>
    %26 = arith.divf %24, %25 : vector<40x1xf32>
    %27 = vector.broadcast %19 : vector<40x1xf32> to vector<40x32xf32>
    %28 = arith.subf %4, %27 : vector<40x32xf32>
    %cst_14 = arith.constant 9.99999996E-13 : f32
    %29 = vector.broadcast %cst_14 : f32 to vector<40x1xf32>
    %30 = arith.addf %26, %29 : vector<40x1xf32>
    %31 = math.rsqrt %30 : vector<40x1xf32>
    %32 = vector.broadcast %31 : vector<40x1xf32> to vector<40x32xf32>
    %33 = arith.mulf %28, %32 : vector<40x32xf32>
    %34 = vector.broadcast %8 : vector<1x32xf32> to vector<40x32xf32>
    %35 = arith.mulf %33, %34 : vector<40x32xf32>
    %36 = vector.broadcast %9 : vector<1x32xf32> to vector<40x32xf32>
    %37 = arith.addf %35, %36 : vector<40x32xf32>
    %38 = arith.truncf %37 : vector<40x32xf32> to vector<40x32xbf16>
    %c0_15 = arith.constant 0 : index
    %c0_16 = arith.constant 0 : index
    %c0_17 = arith.constant 0 : index
    %39 = vector.load %arg4[%c0_15, %c0_16, %c0_17] : memref<2x32x96xbf16, #tpu.memory_space<vmem>>, vector<1x32x96xbf16>
    %40 = vector.shape_cast %39 : vector<1x32x96xbf16> to vector<32x96xbf16>
    %cst_18 = arith.constant dense<0.000000e+00> : vector<40x96xf32>
    %41 = tpu.matmul %38, %40, %cst_18 {dimension_numbers = #tpu.dot_dimension_numbers<[1], [0], [0], [1], [0, 0, 1, 1], [], []>} : vector<40x32xbf16>, vector<32x96xbf16>, vector<40x96xf32> -> vector<40x96xf32>
    %42 = vector.broadcast %10 : vector<1x96xf32> to vector<40x96xf32>
    %43 = arith.addf %41, %42 : vector<40x96xf32>
    %44 = vector.extract_strided_slice %43 {offsets = [0, 0], sizes = [40, 8], strides = [1, 1]} : vector<40x96xf32> to vector<40x8xf32>
    %45 = vector.extract_strided_slice %43 {offsets = [0, 8], sizes = [40, 8], strides = [1, 1]} : vector<40x96xf32> to vector<40x8xf32>
    %46 = vector.extract_strided_slice %43 {offsets = [0, 16], sizes = [40, 8], strides = [1, 1]} : vector<40x96xf32> to vector<40x8xf32>
    %47 = vector.extract_strided_slice %43 {offsets = [0, 24], sizes = [40, 8], strides = [1, 1]} : vector<40x96xf32> to vector<40x8xf32>
    %48 = tpu.concatenate %44, %45, %46, %47 in 0 : vector<40x8xf32>, vector<40x8xf32>, vector<40x8xf32>, vector<40x8xf32> -> vector<160x8xf32>
    %49 = vector.extract_strided_slice %43 {offsets = [0, 32], sizes = [40, 8], strides = [1, 1]} : vector<40x96xf32> to vector<40x8xf32>
    %50 = vector.extract_strided_slice %43 {offsets = [0, 40], sizes = [40, 8], strides = [1, 1]} : vector<40x96xf32> to vector<40x8xf32>
    %51 = vector.extract_strided_slice %43 {offsets = [0, 48], sizes = [40, 8], strides = [1, 1]} : vector<40x96xf32> to vector<40x8xf32>
    %52 = vector.extract_strided_slice %43 {offsets = [0, 56], sizes = [40, 8], strides = [1, 1]} : vector<40x96xf32> to vector<40x8xf32>
    %53 = tpu.concatenate %49, %50, %51, %52 in 0 : vector<40x8xf32>, vector<40x8xf32>, vector<40x8xf32>, vector<40x8xf32> -> vector<160x8xf32>
    %54 = vector.extract_strided_slice %43 {offsets = [0, 64], sizes = [40, 8], strides = [1, 1]} : vector<40x96xf32> to vector<40x8xf32>
    %55 = vector.extract_strided_slice %43 {offsets = [0, 72], sizes = [40, 8], strides = [1, 1]} : vector<40x96xf32> to vector<40x8xf32>
    %56 = vector.extract_strided_slice %43 {offsets = [0, 80], sizes = [40, 8], strides = [1, 1]} : vector<40x96xf32> to vector<40x8xf32>
    %57 = vector.extract_strided_slice %43 {offsets = [0, 88], sizes = [40, 8], strides = [1, 1]} : vector<40x96xf32> to vector<40x8xf32>
    %58 = tpu.concatenate %54, %55, %56, %57 in 0 : vector<40x8xf32>, vector<40x8xf32>, vector<40x8xf32>, vector<40x8xf32> -> vector<160x8xf32>
    %59 = arith.truncf %48 : vector<160x8xf32> to vector<160x8xbf16>
    %60 = arith.truncf %53 : vector<160x8xf32> to vector<160x8xbf16>
    %cst_19 = arith.constant dense<0.000000e+00> : vector<160x160xf32>
    %61 = tpu.matmul %59, %60, %cst_19 {dimension_numbers = #tpu.dot_dimension_numbers<[1], [1], [0], [0], [0, 0, 1, 0], [], []>} : vector<160x8xbf16>, vector<160x8xbf16>, vector<160x160xf32> -> vector<160x160xf32>
    %62 = arith.addf %61, %5 : vector<160x160xf32>
    %cst_20 = arith.constant dense<0xFF800000> : vector<160xf32>
    %63 = vector.multi_reduction <maximumf>, %62, %cst_20 [1] : vector<160x160xf32> to vector<160xf32>
    %64 = vector.shape_cast %63 : vector<160xf32> to vector<160x1xf32>
    %65 = vector.broadcast %64 : vector<160x1xf32> to vector<160x160xf32>
    %66 = arith.subf %62, %65 : vector<160x160xf32>
    %67 = math.exp %66 : vector<160x160xf32>
    %cst_21 = arith.constant dense<0.000000e+00> : vector<160xf32>
    %68 = vector.multi_reduction <add>, %67, %cst_21 [1] : vector<160x160xf32> to vector<160xf32>
    %69 = vector.shape_cast %68 : vector<160xf32> to vector<160x1xf32>
    %70 = tpu.reciprocal %69 {approx = true} : vector<160x1xf32> -> vector<160x1xf32>
    %71 = vector.broadcast %70 : vector<160x1xf32> to vector<160x160xf32>
    %72 = arith.mulf %67, %71 : vector<160x160xf32>
    %73 = arith.truncf %72 : vector<160x160xf32> to vector<160x160xbf16>
    %74 = arith.truncf %58 : vector<160x8xf32> to vector<160x8xbf16>
    %cst_22 = arith.constant dense<0.000000e+00> : vector<160x8xf32>
    %75 = tpu.matmul %73, %74, %cst_22 {dimension_numbers = #tpu.dot_dimension_numbers<[1], [0], [0], [1], [0, 0, 1, 1], [], []>} : vector<160x160xbf16>, vector<160x8xbf16>, vector<160x8xf32> -> vector<160x8xf32>
    %76 = vector.extract_strided_slice %75 {offsets = [0, 0], sizes = [40, 8], strides = [1, 1]} : vector<160x8xf32> to vector<40x8xf32>
    %77 = vector.extract_strided_slice %75 {offsets = [40, 0], sizes = [40, 8], strides = [1, 1]} : vector<160x8xf32> to vector<40x8xf32>
    %78 = vector.extract_strided_slice %75 {offsets = [80, 0], sizes = [40, 8], strides = [1, 1]} : vector<160x8xf32> to vector<40x8xf32>
    %79 = vector.extract_strided_slice %75 {offsets = [120, 0], sizes = [40, 8], strides = [1, 1]} : vector<160x8xf32> to vector<40x8xf32>
    %80 = tpu.concatenate %76, %77, %78, %79 in 1 : vector<40x8xf32>, vector<40x8xf32>, vector<40x8xf32>, vector<40x8xf32> -> vector<40x32xf32>
    %81 = arith.truncf %80 : vector<40x32xf32> to vector<40x32xbf16>
    %c0_23 = arith.constant 0 : index
    %c0_24 = arith.constant 0 : index
    %c0_25 = arith.constant 0 : index
    %82 = vector.load %arg5[%c0_23, %c0_24, %c0_25] : memref<2x32x32xbf16, #tpu.memory_space<vmem>>, vector<1x32x32xbf16>
    %83 = vector.shape_cast %82 : vector<1x32x32xbf16> to vector<32x32xbf16>
    %cst_26 = arith.constant dense<0.000000e+00> : vector<40x32xf32>
    %84 = tpu.matmul %81, %83, %cst_26 {dimension_numbers = #tpu.dot_dimension_numbers<[1], [0], [0], [1], [0, 0, 1, 1], [], []>} : vector<40x32xbf16>, vector<32x32xbf16>, vector<40x32xf32> -> vector<40x32xf32>
    %85 = arith.addf %4, %84 : vector<40x32xf32>
    %86 = vector.broadcast %11 : vector<1x32xf32> to vector<40x32xf32>
    %87 = arith.addf %85, %86 : vector<40x32xf32>
    %cst_27 = arith.constant dense<0.000000e+00> : vector<40xf32>
    %88 = vector.multi_reduction <add>, %87, %cst_27 [1] : vector<40x32xf32> to vector<40xf32>
    %89 = vector.shape_cast %88 : vector<40xf32> to vector<40x1xf32>
    %cst_28 = arith.constant 3.200000e+01 : f32
    %90 = vector.broadcast %cst_28 : f32 to vector<40x1xf32>
    %91 = arith.divf %89, %90 : vector<40x1xf32>
    %92 = vector.broadcast %91 : vector<40x1xf32> to vector<40x32xf32>
    %93 = arith.subf %87, %92 : vector<40x32xf32>
    %94 = arith.mulf %93, %93 : vector<40x32xf32>
    %cst_29 = arith.constant dense<0.000000e+00> : vector<40xf32>
    %95 = vector.multi_reduction <add>, %94, %cst_29 [1] : vector<40x32xf32> to vector<40xf32>
    %96 = vector.shape_cast %95 : vector<40xf32> to vector<40x1xf32>
    %cst_30 = arith.constant 3.200000e+01 : f32
    %97 = vector.broadcast %cst_30 : f32 to vector<40x1xf32>
    %98 = arith.divf %96, %97 : vector<40x1xf32>
    %99 = vector.broadcast %91 : vector<40x1xf32> to vector<40x32xf32>
    %100 = arith.subf %87, %99 : vector<40x32xf32>
    %cst_31 = arith.constant 9.99999996E-13 : f32
    %101 = vector.broadcast %cst_31 : f32 to vector<40x1xf32>
    %102 = arith.addf %98, %101 : vector<40x1xf32>
    %103 = math.rsqrt %102 : vector<40x1xf32>
    %104 = vector.broadcast %103 : vector<40x1xf32> to vector<40x32xf32>
    %105 = arith.mulf %100, %104 : vector<40x32xf32>
    %106 = vector.broadcast %12 : vector<1x32xf32> to vector<40x32xf32>
    %107 = arith.mulf %105, %106 : vector<40x32xf32>
    %108 = vector.broadcast %13 : vector<1x32xf32> to vector<40x32xf32>
    %109 = arith.addf %107, %108 : vector<40x32xf32>
    %110 = arith.truncf %109 : vector<40x32xf32> to vector<40x32xbf16>
    %c0_32 = arith.constant 0 : index
    %c0_33 = arith.constant 0 : index
    %c0_34 = arith.constant 0 : index
    %111 = vector.load %arg6[%c0_32, %c0_33, %c0_34] : memref<2x32x64xbf16, #tpu.memory_space<vmem>>, vector<1x32x64xbf16>
    %112 = vector.shape_cast %111 : vector<1x32x64xbf16> to vector<32x64xbf16>
    %cst_35 = arith.constant dense<0.000000e+00> : vector<40x64xf32>
    %113 = tpu.matmul %110, %112, %cst_35 {dimension_numbers = #tpu.dot_dimension_numbers<[1], [0], [0], [1], [0, 0, 1, 1], [], []>} : vector<40x32xbf16>, vector<32x64xbf16>, vector<40x64xf32> -> vector<40x64xf32>
    %114 = vector.broadcast %14 : vector<1x64xf32> to vector<40x64xf32>
    %115 = arith.addf %113, %114 : vector<40x64xf32>
    %cst_36 = arith.constant 5.000000e-01 : f32
    %116 = vector.broadcast %cst_36 : f32 to vector<40x64xf32>
    %117 = arith.mulf %116, %115 : vector<40x64xf32>
    %cst_37 = arith.constant 1.41421354 : f32
    %118 = vector.broadcast %cst_37 : f32 to vector<40x64xf32>
    %119 = arith.divf %115, %118 : vector<40x64xf32>
    %120 = math.erf %119 : vector<40x64xf32>
    %cst_38 = arith.constant 1.000000e+00 : f32
    %121 = vector.broadcast %cst_38 : f32 to vector<40x64xf32>
    %122 = arith.addf %121, %120 : vector<40x64xf32>
    %123 = arith.mulf %117, %122 : vector<40x64xf32>
    %124 = arith.truncf %123 : vector<40x64xf32> to vector<40x64xbf16>
    %c0_39 = arith.constant 0 : index
    %c0_40 = arith.constant 0 : index
    %c0_41 = arith.constant 0 : index
    %125 = vector.load %arg7[%c0_39, %c0_40, %c0_41] : memref<2x64x32xbf16, #tpu.memory_space<vmem>>, vector<1x64x32xbf16>
    %126 = vector.shape_cast %125 : vector<1x64x32xbf16> to vector<64x32xbf16>
    %cst_42 = arith.constant dense<0.000000e+00> : vector<40x32xf32>
    %127 = tpu.matmul %124, %126, %cst_42 {dimension_numbers = #tpu.dot_dimension_numbers<[1], [0], [0], [1], [0, 0, 1, 1], [], []>} : vector<40x64xbf16>, vector<64x32xbf16>, vector<40x32xf32> -> vector<40x32xf32>
    %128 = arith.addf %87, %127 : vector<40x32xf32>
    %129 = vector.broadcast %15 : vector<1x32xf32> to vector<40x32xf32>
    %130 = arith.addf %128, %129 : vector<40x32xf32>
    %c1 = arith.constant 1 : index
    %c0_43 = arith.constant 0 : index
    %c0_44 = arith.constant 0 : index
    %131 = vector.load %arg8[%c1, %c0_43, %c0_44] : memref<2x8x128xf32, #tpu.memory_space<vmem>>, vector<1x8x128xf32>
    %132 = vector.shape_cast %131 : vector<1x8x128xf32> to vector<8x128xf32>
    %133 = vector.extract_strided_slice %132 {offsets = [0, 0], sizes = [1, 32], strides = [1, 1]} : vector<8x128xf32> to vector<1x32xf32>
    %134 = vector.extract_strided_slice %132 {offsets = [1, 0], sizes = [1, 32], strides = [1, 1]} : vector<8x128xf32> to vector<1x32xf32>
    %135 = vector.extract_strided_slice %132 {offsets = [2, 0], sizes = [1, 96], strides = [1, 1]} : vector<8x128xf32> to vector<1x96xf32>
    %136 = vector.extract_strided_slice %132 {offsets = [3, 0], sizes = [1, 32], strides = [1, 1]} : vector<8x128xf32> to vector<1x32xf32>
    %137 = vector.extract_strided_slice %132 {offsets = [4, 0], sizes = [1, 32], strides = [1, 1]} : vector<8x128xf32> to vector<1x32xf32>
    %138 = vector.extract_strided_slice %132 {offsets = [5, 0], sizes = [1, 32], strides = [1, 1]} : vector<8x128xf32> to vector<1x32xf32>
    %139 = vector.extract_strided_slice %132 {offsets = [6, 0], sizes = [1, 64], strides = [1, 1]} : vector<8x128xf32> to vector<1x64xf32>
    %140 = vector.extract_strided_slice %132 {offsets = [7, 0], sizes = [1, 32], strides = [1, 1]} : vector<8x128xf32> to vector<1x32xf32>
    %cst_45 = arith.constant dense<0.000000e+00> : vector<40xf32>
    %141 = vector.multi_reduction <add>, %130, %cst_45 [1] : vector<40x32xf32> to vector<40xf32>
    %142 = vector.shape_cast %141 : vector<40xf32> to vector<40x1xf32>
    %cst_46 = arith.constant 3.200000e+01 : f32
    %143 = vector.broadcast %cst_46 : f32 to vector<40x1xf32>
    %144 = arith.divf %142, %143 : vector<40x1xf32>
    %145 = vector.broadcast %144 : vector<40x1xf32> to vector<40x32xf32>
    %146 = arith.subf %130, %145 : vector<40x32xf32>
    %147 = arith.mulf %146, %146 : vector<40x32xf32>
    %cst_47 = arith.constant dense<0.000000e+00> : vector<40xf32>
    %148 = vector.multi_reduction <add>, %147, %cst_47 [1] : vector<40x32xf32> to vector<40xf32>
    %149 = vector.shape_cast %148 : vector<40xf32> to vector<40x1xf32>
    %cst_48 = arith.constant 3.200000e+01 : f32
    %150 = vector.broadcast %cst_48 : f32 to vector<40x1xf32>
    %151 = arith.divf %149, %150 : vector<40x1xf32>
    %152 = vector.broadcast %144 : vector<40x1xf32> to vector<40x32xf32>
    %153 = arith.subf %130, %152 : vector<40x32xf32>
    %cst_49 = arith.constant 9.99999996E-13 : f32
    %154 = vector.broadcast %cst_49 : f32 to vector<40x1xf32>
    %155 = arith.addf %151, %154 : vector<40x1xf32>
    %156 = math.rsqrt %155 : vector<40x1xf32>
    %157 = vector.broadcast %156 : vector<40x1xf32> to vector<40x32xf32>
    %158 = arith.mulf %153, %157 : vector<40x32xf32>
    %159 = vector.broadcast %133 : vector<1x32xf32> to vector<40x32xf32>
    %160 = arith.mulf %158, %159 : vector<40x32xf32>
    %161 = vector.broadcast %134 : vector<1x32xf32> to vector<40x32xf32>
    %162 = arith.addf %160, %161 : vector<40x32xf32>
    %163 = arith.truncf %162 : vector<40x32xf32> to vector<40x32xbf16>
    %c1_50 = arith.constant 1 : index
    %c0_51 = arith.constant 0 : index
    %c0_52 = arith.constant 0 : index
    %164 = vector.load %arg4[%c1_50, %c0_51, %c0_52] : memref<2x32x96xbf16, #tpu.memory_space<vmem>>, vector<1x32x96xbf16>
    %165 = vector.shape_cast %164 : vector<1x32x96xbf16> to vector<32x96xbf16>
    %cst_53 = arith.constant dense<0.000000e+00> : vector<40x96xf32>
    %166 = tpu.matmul %163, %165, %cst_53 {dimension_numbers = #tpu.dot_dimension_numbers<[1], [0], [0], [1], [0, 0, 1, 1], [], []>} : vector<40x32xbf16>, vector<32x96xbf16>, vector<40x96xf32> -> vector<40x96xf32>
    %167 = vector.broadcast %135 : vector<1x96xf32> to vector<40x96xf32>
    %168 = arith.addf %166, %167 : vector<40x96xf32>
    %169 = vector.extract_strided_slice %168 {offsets = [0, 0], sizes = [40, 8], strides = [1, 1]} : vector<40x96xf32> to vector<40x8xf32>
    %170 = vector.extract_strided_slice %168 {offsets = [0, 8], sizes = [40, 8], strides = [1, 1]} : vector<40x96xf32> to vector<40x8xf32>
    %171 = vector.extract_strided_slice %168 {offsets = [0, 16], sizes = [40, 8], strides = [1, 1]} : vector<40x96xf32> to vector<40x8xf32>
    %172 = vector.extract_strided_slice %168 {offsets = [0, 24], sizes = [40, 8], strides = [1, 1]} : vector<40x96xf32> to vector<40x8xf32>
    %173 = tpu.concatenate %169, %170, %171, %172 in 0 : vector<40x8xf32>, vector<40x8xf32>, vector<40x8xf32>, vector<40x8xf32> -> vector<160x8xf32>
    %174 = vector.extract_strided_slice %168 {offsets = [0, 32], sizes = [40, 8], strides = [1, 1]} : vector<40x96xf32> to vector<40x8xf32>
    %175 = vector.extract_strided_slice %168 {offsets = [0, 40], sizes = [40, 8], strides = [1, 1]} : vector<40x96xf32> to vector<40x8xf32>
    %176 = vector.extract_strided_slice %168 {offsets = [0, 48], sizes = [40, 8], strides = [1, 1]} : vector<40x96xf32> to vector<40x8xf32>
    %177 = vector.extract_strided_slice %168 {offsets = [0, 56], sizes = [40, 8], strides = [1, 1]} : vector<40x96xf32> to vector<40x8xf32>
    %178 = tpu.concatenate %174, %175, %176, %177 in 0 : vector<40x8xf32>, vector<40x8xf32>, vector<40x8xf32>, vector<40x8xf32> -> vector<160x8xf32>
    %179 = vector.extract_strided_slice %168 {offsets = [0, 64], sizes = [40, 8], strides = [1, 1]} : vector<40x96xf32> to vector<40x8xf32>
    %180 = vector.extract_strided_slice %168 {offsets = [0, 72], sizes = [40, 8], strides = [1, 1]} : vector<40x96xf32> to vector<40x8xf32>
    %181 = vector.extract_strided_slice %168 {offsets = [0, 80], sizes = [40, 8], strides = [1, 1]} : vector<40x96xf32> to vector<40x8xf32>
    %182 = vector.extract_strided_slice %168 {offsets = [0, 88], sizes = [40, 8], strides = [1, 1]} : vector<40x96xf32> to vector<40x8xf32>
    %183 = tpu.concatenate %179, %180, %181, %182 in 0 : vector<40x8xf32>, vector<40x8xf32>, vector<40x8xf32>, vector<40x8xf32> -> vector<160x8xf32>
    %184 = arith.truncf %173 : vector<160x8xf32> to vector<160x8xbf16>
    %185 = arith.truncf %178 : vector<160x8xf32> to vector<160x8xbf16>
    %cst_54 = arith.constant dense<0.000000e+00> : vector<160x160xf32>
    %186 = tpu.matmul %184, %185, %cst_54 {dimension_numbers = #tpu.dot_dimension_numbers<[1], [1], [0], [0], [0, 0, 1, 0], [], []>} : vector<160x8xbf16>, vector<160x8xbf16>, vector<160x160xf32> -> vector<160x160xf32>
    %187 = arith.addf %186, %5 : vector<160x160xf32>
    %cst_55 = arith.constant dense<0xFF800000> : vector<160xf32>
    %188 = vector.multi_reduction <maximumf>, %187, %cst_55 [1] : vector<160x160xf32> to vector<160xf32>
    %189 = vector.shape_cast %188 : vector<160xf32> to vector<160x1xf32>
    %190 = vector.broadcast %189 : vector<160x1xf32> to vector<160x160xf32>
    %191 = arith.subf %187, %190 : vector<160x160xf32>
    %192 = math.exp %191 : vector<160x160xf32>
    %cst_56 = arith.constant dense<0.000000e+00> : vector<160xf32>
    %193 = vector.multi_reduction <add>, %192, %cst_56 [1] : vector<160x160xf32> to vector<160xf32>
    %194 = vector.shape_cast %193 : vector<160xf32> to vector<160x1xf32>
    %195 = tpu.reciprocal %194 {approx = true} : vector<160x1xf32> -> vector<160x1xf32>
    %196 = vector.broadcast %195 : vector<160x1xf32> to vector<160x160xf32>
    %197 = arith.mulf %192, %196 : vector<160x160xf32>
    %198 = arith.truncf %197 : vector<160x160xf32> to vector<160x160xbf16>
    %199 = arith.truncf %183 : vector<160x8xf32> to vector<160x8xbf16>
    %cst_57 = arith.constant dense<0.000000e+00> : vector<160x8xf32>
    %200 = tpu.matmul %198, %199, %cst_57 {dimension_numbers = #tpu.dot_dimension_numbers<[1], [0], [0], [1], [0, 0, 1, 1], [], []>} : vector<160x160xbf16>, vector<160x8xbf16>, vector<160x8xf32> -> vector<160x8xf32>
    %201 = vector.extract_strided_slice %200 {offsets = [0, 0], sizes = [40, 8], strides = [1, 1]} : vector<160x8xf32> to vector<40x8xf32>
    %202 = vector.extract_strided_slice %200 {offsets = [40, 0], sizes = [40, 8], strides = [1, 1]} : vector<160x8xf32> to vector<40x8xf32>
    %203 = vector.extract_strided_slice %200 {offsets = [80, 0], sizes = [40, 8], strides = [1, 1]} : vector<160x8xf32> to vector<40x8xf32>
    %204 = vector.extract_strided_slice %200 {offsets = [120, 0], sizes = [40, 8], strides = [1, 1]} : vector<160x8xf32> to vector<40x8xf32>
    %205 = tpu.concatenate %201, %202, %203, %204 in 1 : vector<40x8xf32>, vector<40x8xf32>, vector<40x8xf32>, vector<40x8xf32> -> vector<40x32xf32>
    %206 = arith.truncf %205 : vector<40x32xf32> to vector<40x32xbf16>
    %c1_58 = arith.constant 1 : index
    %c0_59 = arith.constant 0 : index
    %c0_60 = arith.constant 0 : index
    %207 = vector.load %arg5[%c1_58, %c0_59, %c0_60] : memref<2x32x32xbf16, #tpu.memory_space<vmem>>, vector<1x32x32xbf16>
    %208 = vector.shape_cast %207 : vector<1x32x32xbf16> to vector<32x32xbf16>
    %cst_61 = arith.constant dense<0.000000e+00> : vector<40x32xf32>
    %209 = tpu.matmul %206, %208, %cst_61 {dimension_numbers = #tpu.dot_dimension_numbers<[1], [0], [0], [1], [0, 0, 1, 1], [], []>} : vector<40x32xbf16>, vector<32x32xbf16>, vector<40x32xf32> -> vector<40x32xf32>
    %210 = arith.addf %130, %209 : vector<40x32xf32>
    %211 = vector.broadcast %136 : vector<1x32xf32> to vector<40x32xf32>
    %212 = arith.addf %210, %211 : vector<40x32xf32>
    %cst_62 = arith.constant dense<0.000000e+00> : vector<40xf32>
    %213 = vector.multi_reduction <add>, %212, %cst_62 [1] : vector<40x32xf32> to vector<40xf32>
    %214 = vector.shape_cast %213 : vector<40xf32> to vector<40x1xf32>
    %cst_63 = arith.constant 3.200000e+01 : f32
    %215 = vector.broadcast %cst_63 : f32 to vector<40x1xf32>
    %216 = arith.divf %214, %215 : vector<40x1xf32>
    %217 = vector.broadcast %216 : vector<40x1xf32> to vector<40x32xf32>
    %218 = arith.subf %212, %217 : vector<40x32xf32>
    %219 = arith.mulf %218, %218 : vector<40x32xf32>
    %cst_64 = arith.constant dense<0.000000e+00> : vector<40xf32>
    %220 = vector.multi_reduction <add>, %219, %cst_64 [1] : vector<40x32xf32> to vector<40xf32>
    %221 = vector.shape_cast %220 : vector<40xf32> to vector<40x1xf32>
    %cst_65 = arith.constant 3.200000e+01 : f32
    %222 = vector.broadcast %cst_65 : f32 to vector<40x1xf32>
    %223 = arith.divf %221, %222 : vector<40x1xf32>
    %224 = vector.broadcast %216 : vector<40x1xf32> to vector<40x32xf32>
    %225 = arith.subf %212, %224 : vector<40x32xf32>
    %cst_66 = arith.constant 9.99999996E-13 : f32
    %226 = vector.broadcast %cst_66 : f32 to vector<40x1xf32>
    %227 = arith.addf %223, %226 : vector<40x1xf32>
    %228 = math.rsqrt %227 : vector<40x1xf32>
    %229 = vector.broadcast %228 : vector<40x1xf32> to vector<40x32xf32>
    %230 = arith.mulf %225, %229 : vector<40x32xf32>
    %231 = vector.broadcast %137 : vector<1x32xf32> to vector<40x32xf32>
    %232 = arith.mulf %230, %231 : vector<40x32xf32>
    %233 = vector.broadcast %138 : vector<1x32xf32> to vector<40x32xf32>
    %234 = arith.addf %232, %233 : vector<40x32xf32>
    %235 = arith.truncf %234 : vector<40x32xf32> to vector<40x32xbf16>
    %c1_67 = arith.constant 1 : index
    %c0_68 = arith.constant 0 : index
    %c0_69 = arith.constant 0 : index
    %236 = vector.load %arg6[%c1_67, %c0_68, %c0_69] : memref<2x32x64xbf16, #tpu.memory_space<vmem>>, vector<1x32x64xbf16>
    %237 = vector.shape_cast %236 : vector<1x32x64xbf16> to vector<32x64xbf16>
    %cst_70 = arith.constant dense<0.000000e+00> : vector<40x64xf32>
    %238 = tpu.matmul %235, %237, %cst_70 {dimension_numbers = #tpu.dot_dimension_numbers<[1], [0], [0], [1], [0, 0, 1, 1], [], []>} : vector<40x32xbf16>, vector<32x64xbf16>, vector<40x64xf32> -> vector<40x64xf32>
    %239 = vector.broadcast %139 : vector<1x64xf32> to vector<40x64xf32>
    %240 = arith.addf %238, %239 : vector<40x64xf32>
    %cst_71 = arith.constant 5.000000e-01 : f32
    %241 = vector.broadcast %cst_71 : f32 to vector<40x64xf32>
    %242 = arith.mulf %241, %240 : vector<40x64xf32>
    %cst_72 = arith.constant 1.41421354 : f32
    %243 = vector.broadcast %cst_72 : f32 to vector<40x64xf32>
    %244 = arith.divf %240, %243 : vector<40x64xf32>
    %245 = math.erf %244 : vector<40x64xf32>
    %cst_73 = arith.constant 1.000000e+00 : f32
    %246 = vector.broadcast %cst_73 : f32 to vector<40x64xf32>
    %247 = arith.addf %246, %245 : vector<40x64xf32>
    %248 = arith.mulf %242, %247 : vector<40x64xf32>
    %249 = arith.truncf %248 : vector<40x64xf32> to vector<40x64xbf16>
    %c1_74 = arith.constant 1 : index
    %c0_75 = arith.constant 0 : index
    %c0_76 = arith.constant 0 : index
    %250 = vector.load %arg7[%c1_74, %c0_75, %c0_76] : memref<2x64x32xbf16, #tpu.memory_space<vmem>>, vector<1x64x32xbf16>
    %251 = vector.shape_cast %250 : vector<1x64x32xbf16> to vector<64x32xbf16>
    %cst_77 = arith.constant dense<0.000000e+00> : vector<40x32xf32>
    %252 = tpu.matmul %249, %251, %cst_77 {dimension_numbers = #tpu.dot_dimension_numbers<[1], [0], [0], [1], [0, 0, 1, 1], [], []>} : vector<40x64xbf16>, vector<64x32xbf16>, vector<40x32xf32> -> vector<40x32xf32>
    %253 = arith.addf %212, %252 : vector<40x32xf32>
    %254 = vector.broadcast %140 : vector<1x32xf32> to vector<40x32xf32>
    %255 = arith.addf %253, %254 : vector<40x32xf32>
    %c0_78 = arith.constant 0 : index
    %c0_79 = arith.constant 0 : index
    %256 = vector.load %arg9[%c0_78, %c0_79] : memref<4x32xf32, #tpu.memory_space<vmem>>, vector<4x32xf32>
    %257 = vector.extract_strided_slice %256 {offsets = [0, 0], sizes = [1, 32], strides = [1, 1]} : vector<4x32xf32> to vector<1x32xf32>
    %258 = vector.extract_strided_slice %256 {offsets = [1, 0], sizes = [1, 32], strides = [1, 1]} : vector<4x32xf32> to vector<1x32xf32>
    %cst_80 = arith.constant dense<0.000000e+00> : vector<40xf32>
    %259 = vector.multi_reduction <add>, %255, %cst_80 [1] : vector<40x32xf32> to vector<40xf32>
    %260 = vector.shape_cast %259 : vector<40xf32> to vector<40x1xf32>
    %cst_81 = arith.constant 3.200000e+01 : f32
    %261 = vector.broadcast %cst_81 : f32 to vector<40x1xf32>
    %262 = arith.divf %260, %261 : vector<40x1xf32>
    %263 = vector.broadcast %262 : vector<40x1xf32> to vector<40x32xf32>
    %264 = arith.subf %255, %263 : vector<40x32xf32>
    %265 = arith.mulf %264, %264 : vector<40x32xf32>
    %cst_82 = arith.constant dense<0.000000e+00> : vector<40xf32>
    %266 = vector.multi_reduction <add>, %265, %cst_82 [1] : vector<40x32xf32> to vector<40xf32>
    %267 = vector.shape_cast %266 : vector<40xf32> to vector<40x1xf32>
    %cst_83 = arith.constant 3.200000e+01 : f32
    %268 = vector.broadcast %cst_83 : f32 to vector<40x1xf32>
    %269 = arith.divf %267, %268 : vector<40x1xf32>
    %270 = vector.broadcast %262 : vector<40x1xf32> to vector<40x32xf32>
    %271 = arith.subf %255, %270 : vector<40x32xf32>
    %cst_84 = arith.constant 9.99999996E-13 : f32
    %272 = vector.broadcast %cst_84 : f32 to vector<40x1xf32>
    %273 = arith.addf %269, %272 : vector<40x1xf32>
    %274 = math.rsqrt %273 : vector<40x1xf32>
    %275 = vector.broadcast %274 : vector<40x1xf32> to vector<40x32xf32>
    %276 = arith.mulf %271, %275 : vector<40x32xf32>
    %277 = vector.broadcast %257 : vector<1x32xf32> to vector<40x32xf32>
    %278 = arith.mulf %276, %277 : vector<40x32xf32>
    %279 = vector.broadcast %258 : vector<1x32xf32> to vector<40x32xf32>
    %280 = arith.addf %278, %279 : vector<40x32xf32>
    %c0_85 = arith.constant 0 : index
    %c0_86 = arith.constant 0 : index
    %281 = vector.load %arg13[%c0_85, %c0_86] : memref<8x40xf32, #tpu.memory_space<vmem>>, vector<8x40xf32>
    %cst_87 = arith.constant dense<0.000000e+00> : vector<8x32xf32>
    %282 = tpu.matmul %281, %280, %cst_87 {dimension_numbers = #tpu.dot_dimension_numbers<[1], [0], [0], [1], [0, 0, 1, 1], [], []>} : vector<8x40xf32>, vector<40x32xf32>, vector<8x32xf32> -> vector<8x32xf32>
    %283 = vector.extract_strided_slice %256 {offsets = [2, 0], sizes = [1, 32], strides = [1, 1]} : vector<4x32xf32> to vector<1x32xf32>
    %284 = vector.extract_strided_slice %256 {offsets = [3, 0], sizes = [1, 32], strides = [1, 1]} : vector<4x32xf32> to vector<1x32xf32>
    %cst_88 = arith.constant dense<0.000000e+00> : vector<8xf32>
    %285 = vector.multi_reduction <add>, %282, %cst_88 [1] : vector<8x32xf32> to vector<8xf32>
    %286 = vector.shape_cast %285 : vector<8xf32> to vector<8x1xf32>
    %cst_89 = arith.constant 3.200000e+01 : f32
    %287 = vector.broadcast %cst_89 : f32 to vector<8x1xf32>
    %288 = arith.divf %286, %287 : vector<8x1xf32>
    %289 = vector.broadcast %288 : vector<8x1xf32> to vector<8x32xf32>
    %290 = arith.subf %282, %289 : vector<8x32xf32>
    %291 = arith.mulf %290, %290 : vector<8x32xf32>
    %cst_90 = arith.constant dense<0.000000e+00> : vector<8xf32>
    %292 = vector.multi_reduction <add>, %291, %cst_90 [1] : vector<8x32xf32> to vector<8xf32>
    %293 = vector.shape_cast %292 : vector<8xf32> to vector<8x1xf32>
    %cst_91 = arith.constant 3.200000e+01 : f32
    %294 = vector.broadcast %cst_91 : f32 to vector<8x1xf32>
    %295 = arith.divf %293, %294 : vector<8x1xf32>
    %296 = vector.broadcast %288 : vector<8x1xf32> to vector<8x32xf32>
    %297 = arith.subf %282, %296 : vector<8x32xf32>
    %cst_92 = arith.constant 9.99999996E-13 : f32
    %298 = vector.broadcast %cst_92 : f32 to vector<8x1xf32>
    %299 = arith.addf %295, %298 : vector<8x1xf32>
    %300 = math.rsqrt %299 : vector<8x1xf32>
    %301 = vector.broadcast %300 : vector<8x1xf32> to vector<8x32xf32>
    %302 = arith.mulf %297, %301 : vector<8x32xf32>
    %303 = vector.broadcast %283 : vector<1x32xf32> to vector<8x32xf32>
    %304 = arith.mulf %302, %303 : vector<8x32xf32>
    %305 = vector.broadcast %284 : vector<1x32xf32> to vector<8x32xf32>
    %306 = arith.addf %304, %305 : vector<8x32xf32>
    %307 = arith.truncf %306 : vector<8x32xf32> to vector<8x32xbf16>
    %c0_93 = arith.constant 0 : index
    %c0_94 = arith.constant 0 : index
    %308 = vector.load %arg10[%c0_93, %c0_94] : memref<32x128xbf16, #tpu.memory_space<vmem>>, vector<32x128xbf16>
    %cst_95 = arith.constant dense<0.000000e+00> : vector<8x128xf32>
    %309 = tpu.matmul %307, %308, %cst_95 {dimension_numbers = #tpu.dot_dimension_numbers<[1], [0], [0], [1], [0, 0, 1, 1], [], []>} : vector<8x32xbf16>, vector<32x128xbf16>, vector<8x128xf32> -> vector<8x128xf32>
    %c0_96 = arith.constant 0 : index
    %c0_97 = arith.constant 0 : index
    %310 = vector.load %arg11[%c0_96, %c0_97] : memref<1x128xf32, #tpu.memory_space<vmem>>, vector<1x128xf32>
    %311 = vector.broadcast %310 : vector<1x128xf32> to vector<8x128xf32>
    %312 = arith.addf %309, %311 : vector<8x128xf32>
    %c0_98 = arith.constant 0 : index
    %c0_99 = arith.constant 0 : index
    %313 = vector.load %arg14[%c0_98, %c0_99] : memref<8x128xf32, #tpu.memory_space<vmem>>, vector<8x128xf32>
    tpu.vector_store %arg14[%c0_98, %c0_99], %312 {strides = array<i32>} : memref<8x128xf32, #tpu.memory_space<vmem>>, vector<8x128xf32>,
    return
  }
  func.func @transform_0(%arg0: i32) -> (i32, i32) {
    %c0_i32 = arith.constant 0 : i32
    %c0_i32_0 = arith.constant 0 : i32
    return %arg0, %c0_i32 : i32, i32
  }
  func.func @transform_1(%arg0: i32) -> (i32, i32) {
    %c0_i32 = arith.constant 0 : i32
    %c0_i32_0 = arith.constant 0 : i32
    %c0_i32_1 = arith.constant 0 : i32
    return %c0_i32, %c0_i32_0 : i32, i32
  }
  func.func @transform_2(%arg0: i32) -> (i32, i32) {
    %c0_i32 = arith.constant 0 : i32
    %c0_i32_0 = arith.constant 0 : i32
    %c0_i32_1 = arith.constant 0 : i32
    return %c0_i32, %c0_i32_0 : i32, i32
  }
  func.func @transform_3(%arg0: i32) -> (i32, i32, i32) {
    %c0_i32 = arith.constant 0 : i32
    %c0_i32_0 = arith.constant 0 : i32
    %c0_i32_1 = arith.constant 0 : i32
    %c0_i32_2 = arith.constant 0 : i32
    return %c0_i32, %c0_i32_0, %c0_i32_1 : i32, i32, i32
  }
  func.func @transform_4(%arg0: i32) -> (i32, i32, i32) {
    %c0_i32 = arith.constant 0 : i32
    %c0_i32_0 = arith.constant 0 : i32
    %c0_i32_1 = arith.constant 0 : i32
    %c0_i32_2 = arith.constant 0 : i32
    return %c0_i32, %c0_i32_0, %c0_i32_1 : i32, i32, i32
  }
  func.func @transform_5(%arg0: i32) -> (i32, i32, i32) {
    %c0_i32 = arith.constant 0 : i32
    %c0_i32_0 = arith.constant 0 : i32
    %c0_i32_1 = arith.constant 0 : i32
    %c0_i32_2 = arith.constant 0 : i32
    return %c0_i32, %c0_i32_0, %c0_i32_1 : i32, i32, i32
  }
  func.func @transform_6(%arg0: i32) -> (i32, i32, i32) {
    %c0_i32 = arith.constant 0 : i32
    %c0_i32_0 = arith.constant 0 : i32
    %c0_i32_1 = arith.constant 0 : i32
    %c0_i32_2 = arith.constant 0 : i32
    return %c0_i32, %c0_i32_0, %c0_i32_1 : i32, i32, i32
  }
  func.func @transform_7(%arg0: i32) -> (i32, i32, i32) {
    %c0_i32 = arith.constant 0 : i32
    %c0_i32_0 = arith.constant 0 : i32
    %c0_i32_1 = arith.constant 0 : i32
    %c0_i32_2 = arith.constant 0 : i32
    return %c0_i32, %c0_i32_0, %c0_i32_1 : i32, i32, i32
  }
  func.func @transform_8(%arg0: i32) -> (i32, i32) {
    %c0_i32 = arith.constant 0 : i32
    %c0_i32_0 = arith.constant 0 : i32
    %c0_i32_1 = arith.constant 0 : i32
    return %c0_i32, %c0_i32_0 : i32, i32
  }
  func.func @transform_9(%arg0: i32) -> (i32, i32) {
    %c0_i32 = arith.constant 0 : i32
    %c0_i32_0 = arith.constant 0 : i32
    %c0_i32_1 = arith.constant 0 : i32
    return %c0_i32, %c0_i32_0 : i32, i32
  }
  func.func @transform_10(%arg0: i32) -> (i32, i32) {
    %c0_i32 = arith.constant 0 : i32
    %c0_i32_0 = arith.constant 0 : i32
    %c0_i32_1 = arith.constant 0 : i32
    return %c0_i32, %c0_i32_0 : i32, i32
  }
  func.func @transform_11(%arg0: i32) -> (i32, i32) {
    %c0_i32 = arith.constant 0 : i32
    %c0_i32_0 = arith.constant 0 : i32
    %c0_i32_1 = arith.constant 0 : i32
    return %c0_i32, %c0_i32_0 : i32, i32
  }
  func.func @transform_12(%arg0: i32) -> (i32, i32) {
    %c0_i32 = arith.constant 0 : i32
    %c0_i32_0 = arith.constant 0 : i32
    %c0_i32_1 = arith.constant 0 : i32
    return %c0_i32, %c0_i32_0 : i32, i32
  }
  func.func @transform_13(%arg0: i32) -> (i32, i32) {
    %c0_i32 = arith.constant 0 : i32
    %c0_i32_0 = arith.constant 0 : i32
    return %arg0, %c0_i32 : i32, i32
  }
}

</mosaic_0001>

<bundles_post_ra>
// kernel: ast_forward.1
= control target key start
LH: loop header
LB: loop body
LE: loop exit
PB: predicated region body
PF: predicated region fallthrough
CT: control target
= control target key end

     0   :  { %18 = vsyncpa [#allocation3], 0  ;;  %s6975_s0 = inlined_call_operand.vmem [shape: bf16[80,256], index: 0, kind: input, shape index: {}]   ;;  %s6976_s1 = inlined_call_operand.vmem [shape: f32[40,32], index: 1, kind: input, shape index: {}]   ;;  %s6977_s2 = inlined_call_operand.vmem [shape: bf16[256,32], index: 2, kind: input, shape index: {}]   ;;  %s6978_s3 = inlined_call_operand.vmem [shape: bf16[2,32,96], index: 3, kind: input, shape index: {}]   ;;  %s6979_s4 = inlined_call_operand.vmem [shape: bf16[2,32,32], index: 4, kind: input, shape index: {}]   ;;  %s6980_s5 = inlined_call_operand.vmem [shape: bf16[2,32,64], index: 5, kind: input, shape index: {}]   ;;  %s6981_s6 = inlined_call_operand.vmem [shape: bf16[2,64,32], index: 6, kind: input, shape index: {}]   ;;  %s6982_s7 = inlined_call_operand.vmem [shape: f32[2,8,128], index: 7, kind: input, shape index: {}]   ;;  %s6983_s8 = inlined_call_operand.vmem [shape: f32[4,32], index: 8, kind: input, shape index: {}]   ;;  %s6984_s9 = inlined_call_operand.vmem [shape: bf16[32,128], index: 9, kind: input, shape index: {}]   ;;  %s6985_s10 = inlined_call_operand.vmem [shape: f32[1,128], index: 10, kind: input, shape index: {}]   ;;  %s6986_s11 = inlined_call_operand.vmem [shape: f32[160,160], index: 11, kind: input, shape index: {}]   ;;  %s6987_s12 = inlined_call_operand.vmem [shape: f32[8,40], index: 12, kind: input, shape index: {}]   ;;  %s6988_s13 = inlined_call_operand.hbm [shape: f32[16,128], index: 13, kind: output, shape index: {}]  }
   0x1   :  { %20 = vsyncpa [#allocation3 + $0x1], 0  ;;  %s5090_s25 = smov 0   ;;  %s5092_s26 = smov 0  }
   0x2   :  { %s5094_s27 = smov 0   ;;  %s5096_s28 = smov 0  }
   0x3 LB: > { %7012 = sst [smem:[#allocation5_spill]] %s4994_s25  ;;  %s5111_s29 = sadd.s32 4294967295, %s5006_s28   ;;  %s5006_s28 = sphi %s5096_s28, %s7038_s28   ;;  %s5002_s27 = sphi %s5094_s27, %s7040_s27   ;;  %s4998_s26 = sphi %s5092_s26, %s7042_s26   ;;  %s4994_s25 = sphi %s5090_s25, %s7041_s25  }
   0x4   : > { %7013 = sst [smem:[#allocation6_spill]] %s5002_s27  ;;  %s3988_s30 = sadd.s32 4294967294, %s5006_s28  }
   0x5   : > { %s5115_s14 = sadd.s32 1, %s5006_s28   ;;  %s311_s15 = sadd.s32 1, %s5002_s27 }
   0x6   : > { %7014 = sst [smem:[#allocation7_spill]] %s5115_s14  ;;  %s308_s16 = ssub.s32 %s5006_s28, %s5115_s14 }
   0x7   : > { %p321_p0 = scmp.ne.s32.totalorder %s5002_s27, %s4998_s26  ;;  %p309_p1 = scmp.eq.s32.totalorder %s308_s16, 0 }
   0x8   : > { %p322_p2 = scmp.eq.s32.totalorder %s5111_s29, 1  ;;  %p327_p3 = scmp.ne.s32.totalorder %s4998_s26, %s4994_s25 }
   0x9   : > { %p328_p4 = scmp.eq.s32.totalorder %s3988_s30, 1  ;;  %p3991_p7 = scmp.ge.s32.totalorder %s5006_s28, 1 }
   0xa   : > { %s5126_s17 = scalar_select %p309_p1, %s5002_s27, %s311_s15  }
   0xb   : > { %p5128_p5 = por %p322_p2, %p321_p0  ;;  %p5132_p6 = por %p328_p4, %p327_p3 }
   0xc   : > { %7015 = sst [smem:[#allocation8_spill]] %s5126_s17  ;;  %p392_p8 = scmp.lt.s32.totalorder %s5006_s28, 3 }
   0xd   : > { %s7017_s19 = scalar_select %p5132_p6, 1, 0 }
   0xe   : > { %p393_p9 = pnand %p3991_p7, %p392_p8 }
   0xf   : > { %7018 = sst [smem:[#allocation9_spill]] %s7017_s19 }
  0x10   : > { %396 = sbr.rel (%p393_p9) target bundleno = 6722 (0x1a42), region = 72 }
  0x15   : > { %v4546_v0 = vld [vmem:[%s6977_s2 + $0x78] sm:$0xff]   ;;  %s437_s22 = smul.u32 5, %s5111_s29  ;;  %v4548_v2 = vld [vmem:[%s6977_s2 + $0x70] sm:$0xff]   ;;  %v4550_v4 = vld [vmem:[%s6977_s2 + $0x68] sm:$0xff]   ;;  %vm712_vm0 = vcmask 261120   ;;  %vm5009_vm1 = vmmov 0  }
  0x16   : > { %v4547_v1 = vld [vmem:[%s6977_s2 + $0x38] sm:$0xff]   ;;  %4132 = vmatprep.subr.bf16.mxu0 %v4546_v0  ;;  %v4549_v3 = vld [vmem:[%s6977_s2 + $0x30] sm:$0xff]   ;;  %v4551_v5 = vld [vmem:[%s6977_s2 + $0x28] sm:$0xff]   ;;  %s5010_s17 = smov 104   ;;  %s5012_s15 = smov 120   ;;  %vm975_vm2 = vcmask 64512  }
  0x17   : > { %4133 = vmatpush3.bf16.msra.mxu0 %v4547_v1  ;;  %p438_p10 = scmp.lt.s32.totalorder %s437_s22, 9  ;;  %v4552_v6 = vld [vmem:[%s6977_s2 + $0x60] sm:$0xff]   ;;  %v4554_v8 = vld [vmem:[%s6977_s2 + $0x58] sm:$0xff]   ;;  %v4556_v10 = vld [vmem:[%s6977_s2 + $0x50] sm:$0xff]   ;;  %s5014_s20 = smov 96   ;;  %vm1767_vm3 = vcmask 130048  }
  0x18   : > { %4134 = vmatprep.subr.bf16.mxu0 %v4548_v2  ;;  %v4553_v7 = vld [vmem:[%s6977_s2 + $0x20] sm:$0xff]   ;;  %v4555_v9 = vld [vmem:[%s6977_s2 + $0x18] sm:$0xff]   ;;  %v4557_v12 = vld [vmem:[%s6977_s2 + $0x10] sm:$0xff]   ;;  %s5015_s14 = smov 64   ;;  %s7002_s24 = smov 16   ;;  %vm1773_vm4 = vcmask 195584  }
  0x19   : > { %s7044_s22 = smov (!%p438_p10, %s437_s22), 9  ;;  %v4558_v13 = vld [vmem:[%s6977_s2 + $0x48] sm:$0xff]   ;;  %v4560_v15 = vld [vmem:[%s6977_s2 + $0x40] sm:$0xff]   ;;  %v447_v35 = vld [vmem:[%s6976_s1 + $0x10] sm:$0xff]  ;;  %s7000_s30 = smov 24   ;;  %vm2109_vm5 = vcmask 523264  }
  0x1a   : > { %s4131_s16 = sshll.u32 %s7044_s22, 3  ;;  %v4559_v14 = vld [vmem:[%s6977_s2 + $0x8] sm:$0xff]   ;;  %v4561_v16 = vld [vmem:[%s6977_s2] sm:$0xff]   ;;  %v448_v41 = vld [vmem:[%s6976_s1 + $0x18] sm:$0xff]  ;;  %s7027_s19 = smov 24   ;;  %vm3750_vm6 = vcmask 326656  }
  0x1b   : > { %4135 = vmatpush3.bf16.msra.mxu0 %v4549_v3  ;;  %s442_s23 = scalar_lea.vmem %s6975_s0, %s4131_s16  ;;  %v445_v24 = vld [vmem:[%s6976_s1] sm:$0xff]  ;;  %v446_v29 = vld [vmem:[%s6976_s1 + $0x8] sm:$0xff]  ;;  %s5016_s16 = smov 8  }
  0x1c   : > { %4136 = vmatprep.subr.bf16.mxu0 %v4550_v4  ;;  %v4564_v11 = vld [vmem:[%s442_s23 + $0x4] ss:$8 sps:$4 sm:$0xff]   ;;  %v4562_v17 = vld [vmem:[%s442_s23] ss:$8 sps:$4 sm:$0xff]   ;;  %v4565_v18 = vld [vmem:[%s442_s23 + $0x14] ss:$8 sps:$4 sm:$0xff]  }
  0x1d   : > { %642 = vmatprep.mubr.bf16.mxu0 %v4564_v11  ;;  %v454_v19 = vld [vmem:[%s442_s23 + $0x20] sm:$0xff]  ;;  %v4567_v20 = vld [vmem:[%s442_s23 + $0x10] ss:$8 sps:$4 sm:$0xff]   ;;  %s5011_s23 = smov 112   ;;  %s434_s25 = sand.u32 1, %s4998_s26  }
  0x1e   : > { %v4000_v21 = vcombine.high %v454_v19, %v454_v19  ;;  %v3999_v22 = vcombine.low %v454_v19, %v454_v19  ;;  %v449_v47 = vld [vmem:[%s6976_s1 + $0x20] sm:$0xff] }
  0x1f   : > { %4137 = vmatpush3.bf16.msra.mxu0 %v4551_v5 }
  0x20   : > { %4138 = vmatprep.subr.bf16.mxu0 %v4552_v6 }
  0x23   : > { %4139 = vmatpush3.bf16.msra.mxu0 %v4553_v7 }
  0x24   : > { %4140 = vmatprep.subr.bf16.mxu0 %v4554_v8 }
  0x27   : > { %4141 = vmatpush3.bf16.msra.mxu0 %v4555_v9 }
  0x28   : > { %4142 = vmatprep.subr.bf16.mxu0 %v4556_v10 }
  0x2b   : > { %4143 = vmatpush3.bf16.msra.mxu0 %v4557_v12 }
  0x2c   : > { %4144 = vmatprep.subr.bf16.mxu0 %v4558_v13 }
  0x2f   : > { %4145 = vmatpush3.bf16.msra.mxu0 %v4559_v14 }
  0x30   : > { %4146 = vmatprep.subr.bf16.mxu0 %v4560_v15 }
  0x33   : > { %4147 = vmatpush3.bf16.msra.mxu0 %v4561_v16  ;;  %v4570_v16 = vld [vmem:[%s6978_s3 + $0x8] sm:$0xff]  }
  0x36   : > { %643 = vmatmul.mubr.bf16.vlgmr.msra.gmra.mxu0 %v4562_v17  ;;  %v6994_v17 = vmov 0.0  }
  0x37   : > { %650 = vmatprep.mubr.bf16.mxu0 %v4565_v18  ;;  %4219 = vmatprep.subr.bf16.mxu1 %v6994_v17  ;;  %v4571_v18 = vld [vmem:[%s6978_s3] sm:$0xff]  }
  0x38   : > { %4223 = vmatprep.mubr.msk.bf16.mxu1 %vm5009_vm1, %v6994_v17  ;;  %4220 = vmatpush3.bf16.msra.mxu1 %v4570_v16 }
  0x39   : > { %4221 = vmatprep.subr.bf16.mxu1 %v6994_v17 }
  0x3c   : > { %4222 = vmatpush3.bf16.msra.mxu1 %v4571_v18 }
  0x3e   : > { %651 = vmatmul.mubr.bf16.gmra.mxu0 %v4567_v20 }
  0x3f   : > { %658 = vmatprep.mubr.bf16.mxu0 %v4000_v21 }
  0x46   : > { %659 = vmatmul.mubr.bf16.gmra.mxu0 %v3999_v22 }
  0xf6   : > { %v4148_v23 = vpop.f32.mrf.mxu0 }
  0xf8   : > { %v4149_v25 = vpop.f32.mrf.mxu0 }
  0xf9   : > { %v4150_v26 = vadd.f32 %v4149_v25, %v4148_v23  ;;  %v779_v25 = vlaneseq }
  0xfa   : > { %v4151_v27 = vpop.f32.mrf.mxu0 }
  0xfb   : > { %v5193_v28 = vadd.f32 %v4150_v26, %v445_v24 }
  0xfc   : > { %v4152_v30 = vpop.f32.mrf.mxu0 }
  0xfd   : > { %v4153_v31 = vadd.f32 %v4152_v30, %v4151_v27  ;;  %v713_v32 = vsel %vm712_vm0, %v5193_v28, 0.0  ;;  %v5249_v30 = vshrl.u32 %v779_v25, 7 }
  0xfe   : > { %v4154_v33 = vpop.f32.mrf.mxu0  ;;  %714 = vadd.xlane.f32.xlu0 %v713_v32 }
  0xff   : > { %v5200_v34 = vadd.f32 %v4153_v31, %v446_v29  ;;  %7019 = vst [vmem:[#allocation10_spill] sm:$0xff] %v5249_v30 }
 0x100   : > { %v4155_v36 = vpop.f32.mrf.mxu0 }
 0x101   : > { %v4156_v37 = vadd.f32 %v4155_v36, %v4154_v33  ;;  %v716_v38 = vsel %vm712_vm0, %v5200_v34, 0.0 }
 0x102   : > { %v4157_v39 = vpop.f32.mrf.mxu0  ;;  %717 = vadd.xlane.f32.xlu0 %v716_v38 }
 0x103   : > { %v5207_v40 = vadd.f32 %v4156_v37, %v447_v35  ;;  %v5252_v35 = vsub.s32 0, %v5249_v30  ;;  %v711_v37 = vld [vmem:[%s6982_s7] sm:$0xff] }
 0x104   : > { %v4158_v42 = vpop.f32.mrf.mxu0 }
 0x105   : > { %v4159_v43 = vadd.f32 %v4158_v42, %v4157_v39  ;;  %v719_v44 = vsel %vm712_vm0, %v5207_v40, 0.0  ;;  %7020 = vst [vmem:[#allocation11_spill] sm:$0xff] %v5252_v35 }
 0x106   : > { %v4160_v45 = vpop.f32.mrf.mxu0  ;;  %720 = vadd.xlane.f32.xlu1 %v719_v44  ;;  %v5259_v44 = vsub.s32 1, %v5249_v30 }
 0x107   : > { %v5214_v46 = vadd.f32 %v4159_v43, %v448_v41  ;;  %v782_v43 = vrot.slane %v711_v37, %v5252_v35 }
 0x108   : > { %v4161_v48 = vpop.f32.mrf.mxu0  ;;  %7021 = vst [vmem:[#allocation12_spill] sm:$0xff] %v5259_v44 }
 0x109   : > { %v4162_v49 = vadd.f32 %v4161_v48, %v4160_v45  ;;  %v722_v50 = vsel %vm712_vm0, %v5214_v46, 0.0 }
 0x10a   : > { %v4163_v51 = vpop.f32.mrf.mxu0  ;;  %723 = vadd.xlane.f32.xlu1 %v722_v50 }
 0x10b   : > { %v5221_v52 = vadd.f32 %v4162_v49, %v449_v47  ;;  %v791_v49 = vrot.slane %v711_v37, %v5259_v44 }
 0x10c   : > { %v4164_v53 = vpop.f32.mrf.mxu0 }
 0x10d   : > { %v725_v54 = vsel %vm712_vm0, %v5221_v52, 0.0 }
 0x10e   : > { %726 = vadd.xlane.f32.xlu0 %v725_v54 }
 0x187   : > { %v715_v55 = vpop.xlane.xlu0 %714 }
 0x188   : > { %v729_v56 = vmul.f32 0.03125, %v715_v55 }
 0x18a   : > { %v734_v57 = vsub.f32 %v5193_v28, %v729_v56 }
 0x18b   : > { %v718_v58 = vpop.xlane.xlu0 %717 }
 0x18c   : > { %v730_v59 = vmul.f32 0.03125, %v718_v58  ;;  %v739_v60 = vmul.f32 %v734_v57, %v734_v57 }
 0x18e   : > { %v735_v61 = vsub.f32 %v5200_v34, %v730_v59  ;;  %v744_v62 = vsel %vm712_vm0, %v739_v60, 0.0 }
 0x18f   : > { %v721_v63 = vpop.xlane.xlu1 %720  ;;  %745 = vadd.xlane.f32.xlu1 %v744_v62 }
 0x190   : > { %v731_v0 = vmul.f32 0.03125, %v721_v63  ;;  %v740_v1 = vmul.f32 %v735_v61, %v735_v61 }
 0x192   : > { %v5229_v2 = vsub.f32 %v5207_v40, %v731_v0  ;;  %v747_v3 = vsel %vm712_vm0, %v740_v1, 0.0 }
 0x193   : > { %v724_v4 = vpop.xlane.xlu1 %723  ;;  %748 = vadd.xlane.f32.xlu0 %v747_v3 }
 0x194   : > { %v732_v5 = vmul.f32 0.03125, %v724_v4  ;;  %v741_v6 = vmul.f32 %v5229_v2, %v5229_v2 }
 0x196   : > { %v737_v7 = vsub.f32 %v5214_v46, %v732_v5  ;;  %v750_v8 = vsel %vm712_vm0, %v741_v6, 0.0  ;;  %v5271_v5 = vsub.s32 2, %v5249_v30 }
 0x197   : > { %751 = vadd.xlane.f32.xlu1 %v750_v8  ;;  %v727_v9 = vpop.xlane.xlu0 %726 }
 0x198   : > { %v733_v10 = vmul.f32 0.03125, %v727_v9  ;;  %v742_v11 = vmul.f32 %v737_v7, %v737_v7  ;;  %7022 = vst [vmem:[#allocation13_spill] sm:$0xff] %v5271_v5  ;;  %v807_v6 = vrot.slane %v711_v37, %v5271_v5 }
 0x19a   : > { %v738_v12 = vsub.f32 %v5221_v52, %v733_v10  ;;  %v753_v13 = vsel %vm712_vm0, %v742_v11, 0.0 }
 0x19b   : > { %754 = vadd.xlane.f32.xlu0 %v753_v13 }
 0x19c   : > { %v743_v14 = vmul.f32 %v738_v12, %v738_v12 }
 0x19e   : > { %v756_v15 = vsel %vm712_vm0, %v743_v14, 0.0 }
 0x19f   : > { %757 = vadd.xlane.f32.xlu1 %v756_v15 }
 0x218   : > { %v746_v19 = vpop.xlane.xlu1 %745 }
 0x219   : > { %v759_v20 = vmul.f32 0.03125, %v746_v19 }
 0x21b   : > { %v764_v21 = vadd.f32 1e-12, %v759_v20 }
 0x21c   : > { %v749_v22 = vpop.xlane.xlu0 %748 }
 0x21d   : > { %4592 = vrsqrt.f32 %v764_v21  ;;  %v760_v23 = vmul.f32 0.03125, %v749_v22 }
 0x21f   : > { %v765_v24 = vadd.f32 1e-12, %v760_v23 }
 0x220   : > { %v752_v26 = vpop.xlane.xlu1 %751 }
 0x221   : > { %4594 = vrsqrt.f32 %v765_v24  ;;  %v761_v27 = vmul.f32 0.03125, %v752_v26 }
 0x223   : > { %v766_v29 = vadd.f32 1e-12, %v761_v27 }
 0x224   : > { %v755_v31 = vpop.xlane.xlu0 %754 }
 0x225   : > { %4596 = vrsqrt.f32 %v766_v29  ;;  %v762_v32 = vmul.f32 0.03125, %v755_v31 }
 0x227   : > { %v767_v33 = vadd.f32 1e-12, %v762_v32 }
 0x228   : > { %v758_v36 = vpop.xlane.xlu1 %757 }
 0x229   : > { %4598 = vrsqrt.f32 %v767_v33  ;;  %v763_v38 = vmul.f32 0.03125, %v758_v36  ;;  %v6996_v33 = vmov 0  }
 0x22a   : > { %v4593_v39 = vpop.eup %4592  ;;  %1036 = vmatprep.subr.bf16.mxu1 %v6996_v33  ;;  %1589 = vmatprep.subr.bf16.mxu0 %v6996_v33 }
 0x22b   : > { %v768_v41 = vadd.f32 1e-12, %v763_v38  ;;  %v774_v42 = vmul.f32 %v4593_v39, %v734_v57 }
 0x22d   : > { %4600 = vrsqrt.f32 %v768_v41  ;;  %v783_v48 = vmul.f32 %v782_v43, %v774_v42 }
 0x22e   : > { %v4595_v45 = vpop.eup %4594 }
 0x22f   : > { %v775_v47 = vmul.f32 %v4595_v45, %v735_v61  ;;  %v792_v53 = vadd.f32 %v791_v49, %v783_v48 }
 0x231   : > { %v784_v50 = vmul.f32 %v782_v43, %v775_v47 }
 0x232   : > { %v4597_v51 = vpop.eup %4596 }
 0x233   : > { %v793_v54 = vadd.f32 %v791_v49, %v784_v50  ;;  %v776_v55 = vmul.f32 %v4597_v51, %v5229_v2 }
 0x235   : > { %v797_v56 = vpack.c.bf16 %v793_v54, %v792_v53  ;;  %v785_v59 = vmul.f32 %v782_v43, %v776_v55 }
 0x236   : > { %v4599_v58 = vpop.eup %4598 }
 0x237   : > { %4224 = vmatmul.mubr.msk.bf16.vlgmr.msra.gmra.mxu1 %vm712_vm0, %v797_v56  ;;  %v777_v57 = vmul.f32 %v4599_v58, %v737_v7  ;;  %v794_v62 = vadd.f32 %v791_v49, %v785_v59 }
 0x238   : > { %4227 = vmatprep.mubr.msk.bf16.mxu1 %vm5009_vm1, %v6994_v17 }
 0x239   : > { %v786_v60 = vmul.f32 %v782_v43, %v777_v57 }
 0x23a   : > { %v4601_v61 = vpop.eup %4600 }
 0x23b   : > { %v795_v63 = vadd.f32 %v791_v49, %v786_v60  ;;  %v778_v0 = vmul.f32 %v4601_v61, %v738_v12 }
 0x23d   : > { %v798_v1 = vpack.c.bf16 %v795_v63, %v794_v62  ;;  %v787_v3 = vmul.f32 %v782_v43, %v778_v0 }
 0x23f   : > { %4228 = vmatmul.mubr.msk.bf16.gmra.mxu1 %vm712_vm0, %v798_v1  ;;  %v796_v2 = vadd.f32 %v791_v49, %v787_v3 }
 0x240   : > { %4231 = vmatprep.mubr.msk.bf16.mxu1 %vm5009_vm1, %v6994_v17 }
 0x241   : > { %v799_v4 = vpack.c.bf16 %v796_v2, %v796_v2 }
 0x247   : > { %4232 = vmatmul.mubr.msk.bf16.gmra.mxu1 %vm712_vm0, %v799_v4 }
 0x248   : > { %1068 = vmatprep.mubr.bf16.mxu1 %v6996_v33 }
 0x2f7   : > { %v863_v7 = vpop.f32.mrf.mxu1 }
 0x2f8   : > { %v864_v8 = vadd.f32 %v863_v7, %v807_v6 }
 0x2f9   : > { %v4225_v9 = vpop.f32.mrf.mxu1 }
 0x2fa   : > { %920 = vrot.lane.b32.xlu1 %v864_v8, %s5010_s17 }
 0x2fb   : > { %v866_v10 = vpop.f32.mrf.mxu1 }
 0x2fc   : > { %v867_v11 = vadd.f32 %v866_v10, %v807_v6 }
 0x2fd   : > { %v4226_v12 = vpop.f32.mrf.mxu1 }
 0x2fe   : > { %v5275_v13 = vpack.c.bf16 %v867_v11, %v864_v8  ;;  %v4431_v26 = vpack.i.bf16 %v867_v11, %v864_v8 }
 0x2ff   : > { %v871_v14 = vpop.f32.mrf.mxu1 }
 0x300   : > { %v872_v18 = vadd.f32 %v871_v14, %v807_v6 }
 0x301   : > { %v4229_v15 = vpop.f32.mrf.mxu1 }
 0x302   : > { %v4441_v32 = vpack.i.bf16 %v872_v18, %v867_v11 }
 0x303   : > { %v874_v16 = vpop.f32.mrf.mxu1 }
 0x304   : > { %v875_v19 = vadd.f32 %v874_v16, %v807_v6 }
 0x305   : > { %v4230_v20 = vpop.f32.mrf.mxu1 }
 0x306   : > { %v4426_v21 = vpack.i.bf16 %v875_v19, %v872_v18  ;;  %v5277_v22 = vpack.c.bf16 %v875_v19, %v872_v18 }
 0x307   : > { %v879_v23 = vpop.f32.mrf.mxu1 }
 0x308   : > { %v880_v24 = vadd.f32 %v879_v23, %v807_v6  ;;  %4427 = vrot.lane.b32.xlu1 %v4426_v21, %s5011_s23 }
 0x309   : > { %v4233_v25 = vpop.f32.mrf.mxu1 }
 0x30a   : > { %913 = vrot.lane.b32.xlu0 %v880_v24, %s5011_s23  ;;  %v4436_v29 = vpack.i.bf16 %v880_v24, %v875_v19 }
 0x30b   : > { %v882_v27 = vpop.f32.mrf.mxu1 }
 0x30c   : > { %4432 = vrot.lane.b32.xlu1 %v4431_v26, %s5011_s23 }
 0x30d   : > { %v4234_v31 = vpop.f32.mrf.mxu1 }
 0x30e   : > { %4437 = vrot.lane.b32.xlu0 %v4436_v29, %s5012_s15 }
 0x310   : > { %4442 = vrot.lane.b32.xlu1 %v4441_v32, %s5012_s15 }
 0x312   : > { %890 = vrot.lane.b32.xlu0 %v864_v8, %s5012_s15 }
 0x316   : > { %4447 = vrot.lane.b32.xlu0 %v4436_v29, %s5010_s17 }
 0x31a   : > { %4452 = vrot.lane.b32.xlu0 %v4441_v32, %s5010_s17 }
 0x36c   : > { %v921_v36 = vpop.permute.xlu1 %920 }
 0x37a   : > { %v4428_v37 = vpop.permute.xlu1 %4427 }
 0x37b   : > { %v4430_v38 = vunpack.i.h.bf16 %v4428_v37  ;;  %v4429_v39 = vunpack.i.l.bf16 %v4428_v37 }
 0x37c   : > { %v914_v41 = vpop.permute.xlu0 %913 }
 0x37d   : > { %v5290_v42 = vpack.c.bf16 %v921_v36, %v914_v41  ;;  %v5294_v47 = vpack.c.bf16 %v4430_v38, %v4429_v39 }
 0x37e   : > { %v4433_v43 = vpop.permute.xlu1 %4432 }
 0x37f   : > { %969 = vrot.lane.b32.xlu1 %v5290_v42, %s5014_s20  ;;  %v4435_v48 = vunpack.i.h.bf16 %v4433_v43  ;;  %v4434_v49 = vunpack.i.l.bf16 %v4433_v43  ;;  %v672_v43 = vld [vmem:[%s6986_s11 + $0x8] sm:$0xff] }
 0x380   : > { %v4438_v45 = vpop.permute.xlu0 %4437 }
 0x381   : > { %v4440_v50 = vunpack.i.h.bf16 %v4438_v45  ;;  %v4439_v51 = vunpack.i.l.bf16 %v4438_v45  ;;  %v5302_v57 = vpack.c.bf16 %v4435_v48, %v4434_v49 }
 0x382   : > { %v4443_v53 = vpop.permute.xlu1 %4442 }
 0x383   : > { %967 = vrot.lane.b32.xlu1 %v5294_v47, %s5014_s20  ;;  %v5298_v54 = vpack.c.bf16 %v4440_v50, %v4439_v51  ;;  %v4445_v56 = vunpack.i.h.bf16 %v4443_v53  ;;  %v4444_v58 = vunpack.i.l.bf16 %v4443_v53  ;;  %v674_v50 = vld [vmem:[%s6986_s11 + $0x18] sm:$0xff]  ;;  %v673_v51 = vld [vmem:[%s6986_s11 + $0x10] sm:$0xff] }
 0x384   : > { %v891_v55 = vpop.permute.xlu0 %890 }
 0x385   : > { %963 = vrot.lane.b32.xlu0 %v5298_v54, %s5014_s20  ;;  %v5304_v59 = vpack.c.bf16 %v891_v55, %v880_v24  ;;  %v5310_v61 = vpack.c.bf16 %v4445_v56, %v4444_v58 }
 0x387   : > { %965 = vrot.lane.b32.xlu1 %v5302_v57, %s5014_s20 }
 0x388   : > { %v4448_v60 = vpop.permute.xlu0 %4447 }
 0x389   : > { %959 = vrot.lane.b32.xlu0 %v5304_v59, %s5014_s20  ;;  %v4450_v63 = vunpack.i.h.bf16 %v4448_v60  ;;  %v4449_v0 = vunpack.i.l.bf16 %v4448_v60  ;;  %v675_v60 = vld [vmem:[%s6986_s11 + $0x20] sm:$0xff] }
 0x38b   : > { %961 = vrot.lane.b32.xlu1 %v5310_v61, %s5014_s20  ;;  %v5322_v4 = vpack.c.bf16 %v4450_v63, %v4449_v0 }
 0x38c   : > { %v4453_v62 = vpop.permute.xlu0 %4452 }
 0x38d   : > { %v4455_v1 = vunpack.i.h.bf16 %v4453_v62  ;;  %v4454_v3 = vunpack.i.l.bf16 %v4453_v62  ;;  %955 = vrot.lane.b32.xlu0 %v5275_v13, %s5014_s20 }
 0x38f   : > { %957 = vrot.lane.b32.xlu1 %v5277_v22, %s5014_s20  ;;  %v5318_v2 = vpack.c.bf16 %v4455_v1, %v4454_v3 }
 0x391   : > { %971 = vrot.lane.b32.xlu0 %v5318_v2, %s5014_s20 }
 0x393   : > { %973 = vrot.lane.b32.xlu1 %v5322_v4, %s5014_s20 }
 0x395   : > { %1541 = vrot.lane.b32.xlu0 %v5294_v47, %s5015_s14 }
 0x397   : > { %1539 = vrot.lane.b32.xlu1 %v5302_v57, %s5015_s14 }
 0x399   : > { %1533 = vrot.lane.b32.xlu0 %v5304_v59, %s5015_s14 }
 0x39b   : > { %1535 = vrot.lane.b32.xlu1 %v5310_v61, %s5015_s14 }
 0x39d   : > { %1537 = vrot.lane.b32.xlu0 %v5298_v54, %s5015_s14 }
 0x39f   : > { %1543 = vrot.lane.b32.xlu1 %v5290_v42, %s5015_s14 }
 0x3f1   : > { %v970_v6 = vpop.permute.xlu1 %969 }
 0x3f2   : > { %v1028_v7 = vsel %vm975_vm2, %v970_v6, 0  ;;  %v678_v6 = vld [vmem:[%s6986_s11 + $0x38] sm:$0xff] }
 0x3f3   : > { %1037 = vmatpush1.bf16.xpose.msra.mxu1 %v1028_v7  ;;  %v677_v7 = vld [vmem:[%s6986_s11 + $0x30] sm:$0xff] }
 0x3f4   : > { %1038 = vmatprep.subr.bf16.mxu1 %v6996_v33 }
 0x3f5   : > { %v968_v8 = vpop.permute.xlu1 %967 }
 0x3f6   : > { %v1025_v11 = vsel %vm975_vm2, %v968_v8, 0 }
 0x3f7   : > { %v964_v9 = vpop.permute.xlu0 %963 }
 0x3f8   : > { %v1019_v21 = vsel %vm975_vm2, %v964_v9, 0 }
 0x3f9   : > { %v966_v10 = vpop.permute.xlu1 %965 }
 0x3fa   : > { %v1022_v16 = vsel %vm975_vm2, %v966_v10, 0 }
 0x3fb   : > { %1039 = vmatpush1.bf16.xpose.msra.mxu1 %v1025_v11  ;;  %v960_v14 = vpop.permute.xlu0 %959 }
 0x3fc   : > { %1040 = vmatprep.subr.bf16.mxu1 %v6996_v33  ;;  %v1013_v31 = vsel %vm975_vm2, %v960_v14, 0 }
 0x3fd   : > { %v962_v12 = vpop.permute.xlu1 %961 }
 0x3fe   : > { %v1016_v27 = vsel %vm975_vm2, %v962_v12, 0 }
 0x3ff   : > { %v956_v18 = vpop.permute.xlu0 %955 }
 0x400   : > { %v1007_v37 = vsel %vm975_vm2, %v956_v18, 0 }
 0x401   : > { %v958_v15 = vpop.permute.xlu1 %957 }
 0x402   : > { %v1010_v36 = vsel %vm975_vm2, %v958_v15, 0  ;;  %v680_v15 = vld [vmem:[%s6986_s11 + $0x48] sm:$0xff] }
 0x403   : > { %1041 = vmatpush1.bf16.xpose.msra.mxu1 %v1022_v16  ;;  %v972_v23 = vpop.permute.xlu0 %971  ;;  %v679_v16 = vld [vmem:[%s6986_s11 + $0x40] sm:$0xff] }
 0x404   : > { %1042 = vmatprep.subr.bf16.mxu1 %v6996_v33  ;;  %v1031_v39 = vsel %vm975_vm2, %v972_v23, 0 }
 0x405   : > { %v974_v19 = vpop.permute.xlu1 %973 }
 0x406   : > { %v1034_v38 = vsel %vm975_vm2, %v974_v19, 0 }
 0x407   : > { %v1542_v25 = vpop.permute.xlu0 %1541 }
 0x409   : > { %v1540_v20 = vpop.permute.xlu1 %1539 }
 0x40b   : > { %1043 = vmatpush1.bf16.xpose.msra.mxu1 %v1019_v21  ;;  %v1534_v29 = vpop.permute.xlu0 %1533 }
 0x40c   : > { %1044 = vmatprep.subr.bf16.mxu1 %v6996_v33 }
 0x40d   : > { %v1536_v24 = vpop.permute.xlu1 %1535 }
 0x40f   : > { %v1538_v32 = vpop.permute.xlu0 %1537 }
 0x411   : > { %v1544_v26 = vpop.permute.xlu1 %1543 }
 0x412   : > { %1590 = vmatpush1.bf16.msra.mxu0 %v1544_v26  ;;  %v681_v26 = vld [vmem:[%s6986_s11 + $0x50] sm:$0xff] }
 0x413   : > { %1045 = vmatpush1.bf16.xpose.msra.mxu1 %v1016_v27  ;;  %1591 = vmatprep.subr.bf16.mxu0 %v6996_v33 }
 0x414   : > { %1046 = vmatprep.subr.bf16.mxu1 %v6996_v33 }
 0x416   : > { %1592 = vmatpush1.bf16.msra.mxu0 %v1542_v25  ;;  %v682_v25 = vld [vmem:[%s6986_s11 + $0x58] sm:$0xff] }
 0x417   : > { %1593 = vmatprep.subr.bf16.mxu0 %v6996_v33 }
 0x41a   : > { %1594 = vmatpush1.bf16.msra.mxu0 %v1540_v20 }
 0x41b   : > { %1047 = vmatpush1.bf16.xpose.msra.mxu1 %v1013_v31  ;;  %1595 = vmatprep.subr.bf16.mxu0 %v6996_v33 }
 0x41c   : > { %1048 = vmatprep.subr.bf16.mxu1 %v6996_v33 }
 0x41e   : > { %1596 = vmatpush1.bf16.msra.mxu0 %v1538_v32 }
 0x41f   : > { %1597 = vmatprep.subr.bf16.mxu0 %v6996_v33 }
 0x422   : > { %1598 = vmatpush1.bf16.msra.mxu0 %v1536_v24 }
 0x423   : > { %1049 = vmatpush1.bf16.xpose.msra.mxu1 %v1010_v36  ;;  %1599 = vmatprep.subr.bf16.mxu0 %v6996_v33 }
 0x424   : > { %1050 = vmatprep.subr.bf16.mxu1 %v6996_v33 }
 0x426   : > { %1600 = vmatpush1.bf16.msra.mxu0 %v1534_v29 }
 0x427   : > { %1601 = vmatprep.subr.bf16.mxu0 %v6996_v33 }
 0x42b   : > { %1051 = vmatpush1.bf16.xpose.msra.mxu1 %v1007_v37 }
 0x42c   : > { %1064 = vmatprep.subr.bf16.mxu1 %v6996_v33 }
 0x433   : > { %1065 = vmatpush2.bf16.xpose.msra.mxu1 %v1034_v38  ;;  %v684_v38 = vld [vmem:[%s6986_s11 + $0x68] sm:$0xff] }
 0x434   : > { %1066 = vmatprep.subr.bf16.mxu1 %v6996_v33 }
 0x43b   : > { %1067 = vmatpush2.bf16.xpose.msra.mxu1 %v1031_v39  ;;  %v683_v39 = vld [vmem:[%s6986_s11 + $0x60] sm:$0xff] }
 0x43c   : > { %4251 = vmatprep.subr.bf16.mxu1 %v6994_v17 }
 0x442   : > { %4022 = vmatmul.mubr.msk.bf16.vlgmr.msra.gmra.mxu1 %vm975_vm2, %v5275_v13 }
 0x443   : > { %1078 = vmatprep.mubr.bf16.mxu1 %v6996_v33 }
 0x44a   : > { %4023 = vmatmul.mubr.msk.bf16.gmra.mxu1 %vm975_vm2, %v5277_v22 }
 0x44b   : > { %1088 = vmatprep.mubr.bf16.mxu1 %v6996_v33 }
 0x452   : > { %4024 = vmatmul.mubr.msk.bf16.gmra.mxu1 %vm975_vm2, %v5304_v59  ;;  %v676_v59 = vld [vmem:[%s6986_s11 + $0x28] sm:$0xff] }
 0x453   : > { %1098 = vmatprep.mubr.bf16.mxu1 %v6996_v33 }
 0x45a   : > { %4025 = vmatmul.mubr.msk.bf16.gmra.mxu1 %vm975_vm2, %v5310_v61 }
 0x45b   : > { %1108 = vmatprep.mubr.bf16.mxu1 %v6996_v33 }
 0x462   : > { %4026 = vmatmul.mubr.msk.bf16.gmra.mxu1 %vm975_vm2, %v5298_v54 }
 0x463   : > { %1118 = vmatprep.mubr.bf16.mxu1 %v6996_v33 }
 0x46a   : > { %4027 = vmatmul.mubr.msk.bf16.gmra.mxu1 %vm975_vm2, %v5302_v57 }
 0x46b   : > { %1128 = vmatprep.mubr.bf16.mxu1 %v6996_v33 }
 0x472   : > { %4028 = vmatmul.mubr.msk.bf16.gmra.mxu1 %vm975_vm2, %v5294_v47 }
 0x473   : > { %1138 = vmatprep.mubr.bf16.mxu1 %v6996_v33 }
 0x47a   : > { %4029 = vmatmul.mubr.msk.bf16.gmra.mxu1 %vm975_vm2, %v5290_v42  ;;  %v671_v42 = vld [vmem:[%s6986_s11] sm:$0xff] }
 0x47b   : > { %1148 = vmatprep.mubr.bf16.mxu1 %v6996_v33 }
 0x482   : > { %4030 = vmatmul.mubr.msk.bf16.gmra.mxu1 %vm975_vm2, %v5318_v2 }
 0x483   : > { %1158 = vmatprep.mubr.bf16.mxu1 %v6996_v33 }
 0x48a   : > { %4031 = vmatmul.mubr.msk.bf16.gmra.mxu1 %vm975_vm2, %v5322_v4 }
 0x48b   : > { %4255 = vmatprep.mubr.msk.bf16.mxu1 %vm5009_vm1, %v6994_v17 }
 0x502   : > { %v1070_v41 = vpop.f32.mrf.mxu1 }
 0x503   : > { %v5403_v48 = vadd.f32 %v1070_v41, %v671_v42 }
 0x504   : > { %v1072_v45 = vpop.f32.mrf.mxu1 }
 0x505   : > { %v5401_v47 = vadd.f32 %v1072_v45, %v672_v43 }
 0x506   : > { %v1074_v49 = vpop.f32.mrf.mxu1 }
 0x507   : > { %v1169_v53 = vsel %vm712_vm0, %v5401_v47, -inf  ;;  %v5416_v58 = vadd.f32 %v1074_v49, %v673_v51  ;;  %v686_v51 = vld [vmem:[%s6986_s11 + $0x78] sm:$0xff] }
 0x508   : > { %v1076_v54 = vpop.f32.mrf.mxu1  ;;  %v1170_v55 = vmax.f32 %v5403_v48, %v1169_v53  ;;  %v685_v53 = vld [vmem:[%s6986_s11 + $0x70] sm:$0xff] }
 0x509   : > { %v5414_v56 = vadd.f32 %v1076_v54, %v674_v50 }
 0x50a   : > { %v1080_v57 = vpop.f32.mrf.mxu1  ;;  %1171 = vmax.xlane.f32.xlu1 %v1170_v55 }
 0x50b   : > { %v1173_v61 = vsel %vm712_vm0, %v5414_v56, -inf  ;;  %v5429_v1 = vadd.f32 %v1080_v57, %v675_v60 }
 0x50c   : > { %v1082_v62 = vpop.f32.mrf.mxu1  ;;  %v1174_v63 = vmax.f32 %v5416_v58, %v1173_v61 }
 0x50d   : > { %v5427_v0 = vadd.f32 %v1082_v62, %v676_v59  ;;  %v688_v62 = vld [vmem:[%s6986_s11 + $0x88] sm:$0xff] }
 0x50e   : > { %v1084_v3 = vpop.f32.mrf.mxu1  ;;  %1175 = vmax.xlane.f32.xlu0 %v1174_v63  ;;  %v687_v63 = vld [vmem:[%s6986_s11 + $0x80] sm:$0xff] }
 0x50f   : > { %v1177_v8 = vsel %vm712_vm0, %v5427_v0, -inf  ;;  %v5442_v12 = vadd.f32 %v1084_v3, %v677_v7 }
 0x510   : > { %v1086_v9 = vpop.f32.mrf.mxu1  ;;  %v1178_v10 = vmax.f32 %v5429_v1, %v1177_v8 }
 0x511   : > { %v5440_v11 = vadd.f32 %v1086_v9, %v678_v6 }
 0x512   : > { %v1090_v14 = vpop.f32.mrf.mxu1  ;;  %1179 = vmax.xlane.f32.xlu0 %v1178_v10 }
 0x513   : > { %v1181_v18 = vsel %vm712_vm0, %v5440_v11, -inf  ;;  %v5455_v23 = vadd.f32 %v1090_v14, %v679_v16  ;;  %v690_v14 = vld [vmem:[%s6986_s11 + $0x98] sm:$0xff] }
 0x514   : > { %v1092_v19 = vpop.f32.mrf.mxu1  ;;  %v1182_v20 = vmax.f32 %v5442_v12, %v1181_v18 }
 0x515   : > { %v5453_v21 = vadd.f32 %v1092_v19, %v680_v15  ;;  %v689_v15 = vld [vmem:[%s6986_s11 + $0x90] sm:$0xff] }
 0x516   : > { %v1094_v24 = vpop.f32.mrf.mxu1  ;;  %1183 = vmax.xlane.f32.xlu0 %v1182_v20 }
 0x517   : > { %v1185_v27 = vsel %vm712_vm0, %v5453_v21, -inf  ;;  %v5468_v36 = vadd.f32 %v1094_v24, %v681_v26 }
 0x518   : > { %v1096_v29 = vpop.f32.mrf.mxu1  ;;  %v1186_v31 = vmax.f32 %v5455_v23, %v1185_v27 }
 0x519   : > { %v5466_v32 = vadd.f32 %v1096_v29, %v682_v25 }
 0x51a   : > { %v1100_v37 = vpop.f32.mrf.mxu1  ;;  %1187 = vmax.xlane.f32.xlu1 %v1186_v31 }
 0x51b   : > { %v1189_v41 = vsel %vm712_vm0, %v5466_v32, -inf  ;;  %v5481_v49 = vadd.f32 %v1100_v37, %v683_v39 }
 0x51c   : > { %v1102_v43 = vpop.f32.mrf.mxu1  ;;  %v1190_v42 = vmax.f32 %v5468_v36, %v1189_v41 }
 0x51d   : > { %v5479_v45 = vadd.f32 %v1102_v43, %v684_v38 }
 0x51e   : > { %v1104_v50 = vpop.f32.mrf.mxu1  ;;  %1191 = vmax.xlane.f32.xlu0 %v1190_v42 }
 0x51f   : > { %v1193_v54 = vsel %vm712_vm0, %v5479_v45, -inf  ;;  %v5494_v60 = vadd.f32 %v1104_v50, %v685_v53 }
 0x520   : > { %v1106_v55 = vpop.f32.mrf.mxu1  ;;  %v1194_v57 = vmax.f32 %v5481_v49, %v1193_v54 }
 0x521   : > { %v5492_v59 = vadd.f32 %v1106_v55, %v686_v51 }
 0x522   : > { %v1110_v61 = vpop.f32.mrf.mxu1  ;;  %1195 = vmax.xlane.f32.xlu1 %v1194_v57  ;;  %v692_v57 = vld [vmem:[%s6986_s11 + $0xa8] sm:$0xff] }
 0x523   : > { %v1197_v3 = vsel %vm712_vm0, %v5492_v59, -inf  ;;  %v5507_v9 = vadd.f32 %v1110_v61, %v687_v63  ;;  %v694_v63 = vld [vmem:[%s6986_s11 + $0xb8] sm:$0xff] }
 0x524   : > { %v1112_v6 = vpop.f32.mrf.mxu1  ;;  %v1198_v7 = vmax.f32 %v5494_v60, %v1197_v3 }
 0x525   : > { %v5505_v8 = vadd.f32 %v1112_v6, %v688_v62 }
 0x526   : > { %v1114_v10 = vpop.f32.mrf.mxu1  ;;  %1199 = vmax.xlane.f32.xlu0 %v1198_v7 }
 0x527   : > { %v1201_v16 = vsel %vm712_vm0, %v5505_v8, -inf  ;;  %v5520_v24 = vadd.f32 %v1114_v10, %v689_v15  ;;  %v698_v15 = vld [vmem:[%s6986_s11 + $0xd8] sm:$0xff] }
 0x528   : > { %v1116_v18 = vpop.f32.mrf.mxu1  ;;  %v1202_v19 = vmax.f32 %v5507_v9, %v1201_v16  ;;  %v700_v16 = vld [vmem:[%s6986_s11 + $0xe8] sm:$0xff] }
 0x529   : > { %v5518_v20 = vadd.f32 %v1116_v18, %v690_v14 }
 0x52a   : > { %v1120_v25 = vpop.f32.mrf.mxu1  ;;  %1203 = vmax.xlane.f32.xlu1 %v1202_v19  ;;  %v693_v19 = vld [vmem:[%s6986_s11 + $0xb0] sm:$0xff] }
 0x52b   : > { %v1205_v26 = vsel %vm712_vm0, %v5518_v20, -inf }
 0x52c   : > { %v1122_v27 = vpop.f32.mrf.mxu1  ;;  %v1206_v29 = vmax.f32 %v5520_v24, %v1205_v26  ;;  %v695_v26 = vld [vmem:[%s6986_s11 + $0xc0] sm:$0xff] }
 0x52d   : > { %v5532_v62 = vadd.f32 %v1122_v27, %v692_v57 }
 0x52e   : > { %v1124_v31 = vpop.f32.mrf.mxu1  ;;  %1207 = vmax.xlane.f32.xlu0 %v1206_v29 }
 0x52f   : > { %v1209_v10 = vsel %vm712_vm0, %v5532_v62, -inf  ;;  %v5572_v57 = vadd.f32 %v1124_v31, %v693_v19  ;;  %v699_v31 = vld [vmem:[%s6986_s11 + $0xe0] sm:$0xff] }
 0x530   : > { %v1126_v37 = vpop.f32.mrf.mxu1 }
 0x531   : > { %v5543_v6 = vadd.f32 %v1126_v37, %v694_v63 }
 0x532   : > { %v1130_v38 = vpop.f32.mrf.mxu1 }
 0x533   : > { %v1213_v37 = vsel %vm712_vm0, %v5543_v6, -inf  ;;  %v5574_v63 = vadd.f32 %v1130_v38, %v695_v26 }
 0x534   : > { %v1132_v39 = vpop.f32.mrf.mxu1  ;;  %v1214_v38 = vmax.f32 %v5572_v57, %v1213_v37  ;;  %v706_v37 = vld [vmem:[%s6986_s11 + $0x118] sm:$0xff] }
 0x536   : > { %v1134_v41 = vpop.f32.mrf.mxu1 }
 0x538   : > { %v1136_v43 = vpop.f32.mrf.mxu1 }
 0x539   : > { %v5564_v27 = vadd.f32 %v1136_v43, %v698_v15  ;;  %v704_v43 = vld [vmem:[%s6986_s11 + $0x108] sm:$0xff] }
 0x53a   : > { %v1140_v42 = vpop.f32.mrf.mxu1 }
 0x53b   : > { %1531 = vrot.lane.b32.xlu1 %v5277_v22, %s5015_s14  ;;  %v696_v22 = vld [vmem:[%s6986_s11 + $0xc8] sm:$0xff]  ;;  %v1221_v19 = vsel %vm712_vm0, %v5564_v27, -inf  ;;  %v5600_v17 = vadd.f32 %v1140_v42, %v699_v31 }
 0x53c   : > { %v1142_v50 = vpop.f32.mrf.mxu1  ;;  %v5545_v7 = vadd.f32 %v1132_v39, %v696_v22  ;;  %v702_v22 = vld [vmem:[%s6986_s11 + $0xf8] sm:$0xff] }
 0x53d   : > { %v5566_v29 = vadd.f32 %v1142_v50, %v700_v16 }
 0x53e   : > { %v1144_v51 = vpop.f32.mrf.mxu1  ;;  %v1217_v39 = vsel %vm712_vm0, %v5545_v7, -inf }
 0x53f   : > { %v1225_v26 = vsel %vm712_vm0, %v5566_v29, -inf }
 0x540   : > { %v1146_v53 = vpop.f32.mrf.mxu1 }
 0x541   : > { %v5590_v15 = vadd.f32 %v1146_v53, %v702_v22  ;;  %v708_v53 = vld [vmem:[%s6986_s11 + $0x128] sm:$0xff]  ;;  %v1226_v22 = vmax.f32 %v5600_v17, %v1225_v26 }
 0x542   : > { %v1150_v54 = vpop.f32.mrf.mxu1 }
 0x543   : > { %v1229_v31 = vsel %vm712_vm0, %v5590_v15, -inf }
 0x544   : > { %1529 = vrot.lane.b32.xlu0 %v5275_v13, %s5015_s14  ;;  %v1152_v55 = vpop.f32.mrf.mxu1  ;;  %v691_v13 = vld [vmem:[%s6986_s11 + $0xa0] sm:$0xff] }
 0x545   : > { %v5549_v14 = vadd.f32 %v1120_v25, %v691_v13  ;;  %v697_v13 = vld [vmem:[%s6986_s11 + $0xd0] sm:$0xff]  ;;  %v5592_v16 = vadd.f32 %v1152_v55, %v704_v43 }
 0x546   : > { %v1154_v61 = vpop.f32.mrf.mxu1 }
 0x547   : > { %v1210_v25 = vmax.f32 %v5549_v14, %v1209_v10  ;;  %v1218_v10 = vmax.f32 %v5574_v63, %v1217_v39  ;;  %v701_v39 = vld [vmem:[%s6986_s11 + $0xf0] sm:$0xff] }
 0x548   : > { %v1156_v3 = vpop.f32.mrf.mxu1 }
 0x549   : > { %v5616_v43 = vadd.f32 %v1156_v3, %v706_v37  ;;  %v705_v3 = vld [vmem:[%s6986_s11 + $0x110] sm:$0xff] }
 0x54a   : > { %v1160_v18 = vpop.f32.mrf.mxu1 }
 0x54b   : > { %v1237_v37 = vsel %vm712_vm0, %v5616_v43, -inf }
 0x54c   : > { %v1162_v50 = vpop.f32.mrf.mxu1 }
 0x54e   : > { %v1164_v55 = vpop.f32.mrf.mxu1 }
 0x550   : > { %v1166_v5 = vpop.f32.mrf.mxu1 }
 0x55f   : > { %1211 = vmax.xlane.f32.xlu1 %v1210_v25  ;;  %v5598_v25 = vadd.f32 %v1134_v41, %v697_v13  ;;  %v703_v41 = vld [vmem:[%s6986_s11 + $0x100] sm:$0xff]  ;;  %v5618_v13 = vadd.f32 %v1162_v50, %v708_v53 }
 0x560   : > { %v5626_v33 = vadd.f32 %v1150_v54, %v703_v41  ;;  %v707_v50 = vld [vmem:[%s6986_s11 + $0x120] sm:$0xff] }
 0x561   : > { %v1222_v42 = vmax.f32 %v5598_v25, %v1221_v19  ;;  %v710_v19 = vld [vmem:[%s6986_s11 + $0x138] sm:$0xff]  ;;  %v1241_v53 = vsel %vm712_vm0, %v5618_v13, -inf  ;;  %v5647_v41 = vadd.f32 %v1160_v18, %v707_v50 }
 0x562   : > { %v5639_v26 = vadd.f32 %v1166_v5, %v710_v19 }
 0x563   : > { %1215 = vmax.xlane.f32.xlu0 %v1214_v38  ;;  %1219 = vmax.xlane.f32.xlu1 %v1218_v10  ;;  %v1233_v38 = vsel %vm712_vm0, %v5592_v16, -inf  ;;  %v5624_v10 = vadd.f32 %v1144_v51, %v701_v39  ;;  %v5645_v39 = vadd.f32 %v1154_v61, %v705_v3  ;;  %v1242_v5 = vmax.f32 %v5647_v41, %v1241_v53 }
 0x564   : > { %v1234_v54 = vmax.f32 %v5626_v33, %v1233_v38 }
 0x565   : > { %v1230_v51 = vmax.f32 %v5624_v10, %v1229_v31  ;;  %v1245_v31 = vsel %vm712_vm0, %v5639_v26, -inf }
 0x567   : > { %1223 = vmax.xlane.f32.xlu0 %v1222_v42  ;;  %1227 = vmax.xlane.f32.xlu1 %v1226_v22  ;;  %v709_v42 = vld [vmem:[%s6986_s11 + $0x130] sm:$0xff]  ;;  %v1238_v22 = vmax.f32 %v5645_v39, %v1237_v37 }
 0x568   : > { %v5656_v38 = vadd.f32 %v1164_v55, %v709_v42 }
 0x56a   : > { %v1246_v61 = vmax.f32 %v5656_v38, %v1245_v31 }
 0x56b   : > { %1231 = vmax.xlane.f32.xlu0 %v1230_v51  ;;  %1235 = vmax.xlane.f32.xlu1 %v1234_v54 }
 0x56f   : > { %1239 = vmax.xlane.f32.xlu0 %v1238_v22  ;;  %1243 = vmax.xlane.f32.xlu1 %v1242_v5 }
 0x573   : > { %1247 = vmax.xlane.f32.xlu0 %v1246_v61 }
 0x593   : > { %v1172_v18 = vpop.xlane.xlu1 %1171 }
 0x594   : > { %v1249_v19 = vsub.f32 %v5403_v48, %v1172_v18  ;;  %v1250_v3 = vsub.f32 %v5401_v47, %v1172_v18 }
 0x596   : > { %v1289_v50 = vmul.f32 1.442695, %v1249_v19  ;;  %v1291_v51 = vmul.f32 1.442695, %v1250_v3 }
 0x597   : > { %v1176_v54 = vpop.xlane.xlu0 %1175 }
 0x598   : > { %4602 = vpow2.f32 %v1289_v50  ;;  %v1251_v37 = vsub.f32 %v5416_v58, %v1176_v54  ;;  %v1252_v53 = vsub.f32 %v5414_v56, %v1176_v54 }
 0x599   : > { %4604 = vpow2.f32 %v1291_v51 }
 0x59a   : > { %v1293_v55 = vmul.f32 1.442695, %v1251_v37  ;;  %v1295_v42 = vmul.f32 1.442695, %v1252_v53 }
 0x59b   : > { %v1180_v22 = vpop.xlane.xlu0 %1179 }
 0x59c   : > { %4606 = vpow2.f32 %v1293_v55  ;;  %v1253_v5 = vsub.f32 %v5429_v1, %v1180_v22  ;;  %v1254_v31 = vsub.f32 %v5427_v0, %v1180_v22 }
 0x59d   : > { %4608 = vpow2.f32 %v1295_v42 }
 0x59e   : > { %v1297_v48 = vmul.f32 1.442695, %v1253_v5  ;;  %v1299_v47 = vmul.f32 1.442695, %v1254_v31 }
 0x59f   : > { %v1184_v61 = vpop.xlane.xlu0 %1183 }
 0x5a0   : > { %4610 = vpow2.f32 %v1297_v48  ;;  %v1255_v18 = vsub.f32 %v5442_v12, %v1184_v61  ;;  %v1256_v58 = vsub.f32 %v5440_v11, %v1184_v61 }
 0x5a1   : > { %4612 = vpow2.f32 %v1299_v47 }
 0x5a2   : > { %v1301_v56 = vmul.f32 1.442695, %v1255_v18  ;;  %v1303_v19 = vmul.f32 1.442695, %v1256_v58 }
 0x5a3   : > { %v1188_v3 = vpop.xlane.xlu1 %1187 }
 0x5a4   : > { %4614 = vpow2.f32 %v1301_v56  ;;  %v1257_v50 = vsub.f32 %v5455_v23, %v1188_v3  ;;  %v1258_v1 = vsub.f32 %v5453_v21, %v1188_v3 }
 0x5a5   : > { %v5669_v51 = vpop.eup %4602  ;;  %4616 = vpow2.f32 %v1303_v19 }
 0x5a6   : > { %v5671_v0 = vpop.eup %4604  ;;  %v1305_v54 = vmul.f32 1.442695, %v1257_v50  ;;  %v1307_v37 = vmul.f32 1.442695, %v1258_v1 }
 0x5a7   : > { %v1192_v53 = vpop.xlane.xlu0 %1191  ;;  %v1369_v11 = vsel %vm712_vm0, %v5671_v0, 0.0 }
 0x5a8   : > { %4618 = vpow2.f32 %v1305_v54  ;;  %v1259_v12 = vsub.f32 %v5468_v36, %v1192_v53  ;;  %v1260_v55 = vsub.f32 %v5466_v32, %v1192_v53  ;;  %v1370_v23 = vadd.f32 %v5669_v51, %v1369_v11 }
 0x5a9   : > { %v5678_v42 = vpop.eup %4606  ;;  %4620 = vpow2.f32 %v1307_v37 }
 0x5aa   : > { %v5680_v21 = vpop.eup %4608  ;;  %v1309_v22 = vmul.f32 1.442695, %v1259_v12  ;;  %v1311_v5 = vmul.f32 1.442695, %v1260_v55  ;;  %1371 = vadd.xlane.f32.xlu1 %v1370_v23 }
 0x5ab   : > { %v1196_v31 = vpop.xlane.xlu1 %1195  ;;  %v1373_v48 = vsel %vm712_vm0, %v5680_v21, 0.0 }
 0x5ac   : > { %4622 = vpow2.f32 %v1309_v22  ;;  %v1261_v47 = vsub.f32 %v5481_v49, %v1196_v31  ;;  %v1262_v36 = vsub.f32 %v5479_v45, %v1196_v31  ;;  %v1374_v32 = vadd.f32 %v5678_v42, %v1373_v48 }
 0x5ad   : > { %v5687_v61 = vpop.eup %4610  ;;  %4624 = vpow2.f32 %v1311_v5 }
 0x5ae   : > { %v5689_v18 = vpop.eup %4612  ;;  %v1313_v58 = vmul.f32 1.442695, %v1261_v47  ;;  %v1315_v56 = vmul.f32 1.442695, %v1262_v36  ;;  %1375 = vadd.xlane.f32.xlu0 %v1374_v32  ;;  %v7023_v47 = vmov 0  }
 0x5af   : > { %v1200_v19 = vpop.xlane.xlu0 %1199  ;;  %v1377_v3 = vsel %vm712_vm0, %v5689_v18, 0.0 }
 0x5b0   : > { %4626 = vpow2.f32 %v1313_v58  ;;  %v1263_v50 = vsub.f32 %v5494_v60, %v1200_v19  ;;  %v1264_v49 = vsub.f32 %v5492_v59, %v1200_v19  ;;  %v1378_v45 = vadd.f32 %v5687_v61, %v1377_v3 }
 0x5b1   : > { %v5696_v1 = vpop.eup %4614  ;;  %4628 = vpow2.f32 %v1315_v56 }
 0x5b2   : > { %v5698_v54 = vpop.eup %4616  ;;  %v1317_v37 = vmul.f32 1.442695, %v1263_v50  ;;  %v1319_v53 = vmul.f32 1.442695, %v1264_v49  ;;  %1379 = vadd.xlane.f32.xlu1 %v1378_v45 }
 0x5b3   : > { %v1204_v11 = vpop.xlane.xlu1 %1203  ;;  %v1381_v12 = vsel %vm712_vm0, %v5698_v54, 0.0 }
 0x5b4   : > { %4630 = vpow2.f32 %v1317_v37  ;;  %v1382_v55 = vadd.f32 %v5696_v1, %v1381_v12 }
 0x5b5   : > { %v5703_v60 = vpop.eup %4618  ;;  %4632 = vpow2.f32 %v1319_v53 }
 0x5b6   : > { %v5705_v59 = vpop.eup %4620  ;;  %1383 = vadd.xlane.f32.xlu0 %v1382_v55  ;;  %v1266_v55 = vsub.f32 %v5505_v8, %v1204_v11 }
 0x5b7   : > { %v1208_v23 = vpop.xlane.xlu0 %1207  ;;  %v1532_v22 = vpop.permute.xlu1 %1531  ;;  %v1385_v5 = vsel %vm712_vm0, %v5705_v59, 0.0 }
 0x5b8   : > { %1602 = vmatpush1.bf16.msra.mxu0 %v1532_v22  ;;  %v1386_v31 = vadd.f32 %v5703_v60, %v1385_v5  ;;  %v1265_v22 = vsub.f32 %v5507_v9, %v1204_v11  ;;  %v1323_v5 = vmul.f32 1.442695, %v1266_v55 }
 0x5b9   : > { %v5710_v48 = vpop.eup %4622  ;;  %1603 = vmatprep.subr.bf16.mxu0 %v7023_v47 }
 0x5ba   : > { %v5713_v36 = vpop.eup %4624  ;;  %1387 = vadd.xlane.f32.xlu1 %v1386_v31  ;;  %v1268_v31 = vsub.f32 %v5518_v20, %v1208_v23  ;;  %4634 = vpow2.f32 %v1323_v5 }
 0x5bb   : > { %v1530_v32 = vpop.permute.xlu0 %1529  ;;  %v1389_v58 = vsel %vm712_vm0, %v5713_v36, 0.0 }
 0x5bc   : > { %1604 = vmatpush1.bf16.msra.mxu0 %v1530_v32  ;;  %v1390_v56 = vadd.f32 %v5710_v48, %v1389_v58  ;;  %v1321_v32 = vmul.f32 1.442695, %v1265_v22  ;;  %v1267_v58 = vsub.f32 %v5520_v24, %v1208_v23 }
 0x5bd   : > { %v5718_v19 = vpop.eup %4626  ;;  %1617 = vmatprep.subr.bf16.mxu0 %v7023_v47 }
 0x5be   : > { %v5721_v3 = vpop.eup %4628  ;;  %1391 = vadd.xlane.f32.xlu0 %v1390_v56  ;;  %v1327_v56 = vmul.f32 1.442695, %v1268_v31  ;;  %4636 = vpow2.f32 %v1321_v32 }
 0x5bf   : > { %v1393_v50 = vsel %vm712_vm0, %v5721_v3, 0.0 }
 0x5c0   : > { %v1394_v49 = vadd.f32 %v5718_v19, %v1393_v50  ;;  %v1325_v50 = vmul.f32 1.442695, %v1267_v58  ;;  %4638 = vpow2.f32 %v1327_v56 }
 0x5c1   : > { %v5726_v45 = vpop.eup %4630 }
 0x5c2   : > { %v5728_v37 = vpop.eup %4632  ;;  %1395 = vadd.xlane.f32.xlu1 %v1394_v49  ;;  %4640 = vpow2.f32 %v1325_v50 }
 0x5c3   : > { %v1397_v53 = vsel %vm712_vm0, %v5728_v37, 0.0 }
 0x5c4   : > { %v1398_v12 = vadd.f32 %v5726_v45, %v1397_v53 }
 0x5c6   : > { %1399 = vadd.xlane.f32.xlu0 %v1398_v12 }
 0x5c7   : > { %v5743_v12 = vpop.eup %4634 }
 0x5c8   : > { %v1401_v56 = vsel %vm712_vm0, %v5743_v12, 0.0 }
 0x5d3   : > { %1547 = vrot.lane.b32.xlu1 %v5322_v4, %s5015_s14 }
 0x5dc   : > { %1545 = vrot.lane.b32.xlu0 %v5318_v2, %s5015_s14 }
 0x5e8   : > { %v1212_v4 = vpop.xlane.xlu1 %1211 }
 0x5e9   : > { %v1269_v8 = vsub.f32 %v5549_v14, %v1212_v4  ;;  %v1270_v9 = vsub.f32 %v5532_v62, %v1212_v4  ;;  %v5749_v62 = vpop.eup %4636 }
 0x5ea   : > { %v5753_v50 = vpop.eup %4638 }
 0x5eb   : > { %v1329_v11 = vmul.f32 1.442695, %v1269_v8  ;;  %v1331_v49 = vmul.f32 1.442695, %v1270_v9 }
 0x5ec   : > { %v1216_v20 = vpop.xlane.xlu0 %1215  ;;  %v1220_v53 = vpop.xlane.xlu1 %1219 }
 0x5ed   : > { %4642 = vpow2.f32 %v1329_v11  ;;  %v1271_v2 = vsub.f32 %v5572_v57, %v1216_v20  ;;  %v1272_v24 = vsub.f32 %v5543_v6, %v1216_v20  ;;  %v1273_v23 = vsub.f32 %v5574_v63, %v1220_v53 }
 0x5ee   : > { %4644 = vpow2.f32 %v1331_v49  ;;  %v1274_v55 = vsub.f32 %v5545_v7, %v1220_v53  ;;  %v1402_v53 = vadd.f32 %v5749_v62, %v1401_v56 }
 0x5ef   : > { %v1333_v22 = vmul.f32 1.442695, %v1271_v2  ;;  %v1335_v14 = vmul.f32 1.442695, %v1272_v24  ;;  %v1337_v5 = vmul.f32 1.442695, %v1273_v23  ;;  %v5762_v2 = vpop.eup %4640 }
 0x5f0   : > { %v1339_v31 = vmul.f32 1.442695, %v1274_v55  ;;  %v1224_v32 = vpop.xlane.xlu0 %1223  ;;  %v1228_v58 = vpop.xlane.xlu1 %1227 }
 0x5f1   : > { %4646 = vpow2.f32 %v1333_v22  ;;  %v1275_v6 = vsub.f32 %v5598_v25, %v1224_v32  ;;  %v1276_v57 = vsub.f32 %v5564_v27, %v1224_v32  ;;  %v1277_v7 = vsub.f32 %v5600_v17, %v1228_v58 }
 0x5f2   : > { %4648 = vpow2.f32 %v1335_v14  ;;  %v1278_v63 = vsub.f32 %v5566_v29, %v1228_v58  ;;  %v1405_v25 = vsel %vm712_vm0, %v5753_v50, 0.0 }
 0x5f3   : > { %4650 = vpow2.f32 %v1337_v5  ;;  %v1341_v4 = vmul.f32 1.442695, %v1275_v6  ;;  %v1343_v8 = vmul.f32 1.442695, %v1276_v57  ;;  %v1345_v9 = vmul.f32 1.442695, %v1277_v7 }
 0x5f4   : > { %4652 = vpow2.f32 %v1339_v31  ;;  %v1347_v11 = vmul.f32 1.442695, %v1278_v63  ;;  %v1232_v49 = vpop.xlane.xlu0 %1231  ;;  %v1236_v20 = vpop.xlane.xlu1 %1235  ;;  %v1406_v32 = vadd.f32 %v5762_v2, %v1405_v25 }
 0x5f5   : > { %4654 = vpow2.f32 %v1341_v4  ;;  %v1279_v17 = vsub.f32 %v5624_v10, %v1232_v49  ;;  %v1280_v27 = vsub.f32 %v5590_v15, %v1232_v49  ;;  %v1281_v29 = vsub.f32 %v5626_v33, %v1236_v20 }
 0x5f6   : > { %4656 = vpow2.f32 %v1343_v8  ;;  %v1282_v24 = vsub.f32 %v5592_v16, %v1236_v20 }
 0x5f7   : > { %4658 = vpow2.f32 %v1345_v9  ;;  %v1349_v23 = vmul.f32 1.442695, %v1279_v17  ;;  %v1351_v55 = vmul.f32 1.442695, %v1280_v27  ;;  %v1353_v22 = vmul.f32 1.442695, %v1281_v29  ;;  %1403 = vadd.xlane.f32.xlu1 %v1402_v53 }
 0x5f8   : > { %4660 = vpow2.f32 %v1347_v11  ;;  %v1355_v14 = vmul.f32 1.442695, %v1282_v24  ;;  %v1240_v5 = vpop.xlane.xlu0 %1239  ;;  %v1244_v31 = vpop.xlane.xlu1 %1243 }
 0x5f9   : > { %4662 = vpow2.f32 %v1349_v23  ;;  %v1283_v10 = vsub.f32 %v5645_v39, %v1240_v5  ;;  %v1284_v15 = vsub.f32 %v5616_v43, %v1240_v5  ;;  %v1285_v33 = vsub.f32 %v5647_v41, %v1244_v31 }
 0x5fa   : > { %v5772_v58 = vpop.eup %4642  ;;  %4664 = vpow2.f32 %v1351_v55  ;;  %v1286_v16 = vsub.f32 %v5618_v13, %v1244_v31 }
 0x5fb   : > { %v5775_v56 = vpop.eup %4644  ;;  %4666 = vpow2.f32 %v1353_v22  ;;  %v1357_v6 = vmul.f32 1.442695, %v1283_v10  ;;  %v1359_v57 = vmul.f32 1.442695, %v1284_v15  ;;  %v1361_v7 = vmul.f32 1.442695, %v1285_v33  ;;  %1407 = vadd.xlane.f32.xlu0 %v1406_v32 }
 0x5fc   : > { %4668 = vpow2.f32 %v1355_v14  ;;  %v1363_v63 = vmul.f32 1.442695, %v1286_v16  ;;  %v1248_v4 = vpop.xlane.xlu0 %1247  ;;  %v1409_v43 = vsel %vm712_vm0, %v5775_v56, 0.0 }
 0x5fd   : > { %4670 = vpow2.f32 %v1357_v6  ;;  %v1287_v39 = vsub.f32 %v5656_v38, %v1248_v4  ;;  %v1288_v41 = vsub.f32 %v5639_v26, %v1248_v4  ;;  %v1410_v13 = vadd.f32 %v5772_v58, %v1409_v43 }
 0x5fe   : > { %v5782_v8 = vpop.eup %4646  ;;  %4672 = vpow2.f32 %v1359_v57 }
 0x5ff   : > { %v5784_v9 = vpop.eup %4648  ;;  %4674 = vpow2.f32 %v1361_v7  ;;  %v1365_v11 = vmul.f32 1.442695, %v1287_v39  ;;  %v1367_v49 = vmul.f32 1.442695, %v1288_v41  ;;  %1411 = vadd.xlane.f32.xlu1 %v1410_v13 }
 0x600   : > { %v5786_v20 = vpop.eup %4650  ;;  %4676 = vpow2.f32 %v1363_v63  ;;  %v1413_v53 = vsel %vm712_vm0, %v5784_v9, 0.0 }
 0x601   : > { %v5790_v38 = vpop.eup %4652  ;;  %4678 = vpow2.f32 %v1365_v11  ;;  %v1414_v26 = vadd.f32 %v5782_v8, %v1413_v53 }
 0x602   : > { %v5793_v25 = vpop.eup %4654  ;;  %4680 = vpow2.f32 %v1367_v49  ;;  %v1417_v17 = vsel %vm712_vm0, %v5790_v38, 0.0 }
 0x603   : > { %v5797_v27 = vpop.eup %4656  ;;  %1415 = vadd.xlane.f32.xlu0 %v1414_v26  ;;  %v1418_v29 = vadd.f32 %v5786_v20, %v1417_v17 }
 0x604   : > { %v5800_v24 = vpop.eup %4658  ;;  %v1421_v23 = vsel %vm712_vm0, %v5797_v27, 0.0 }
 0x605   : > { %v5804_v55 = vpop.eup %4660  ;;  %1419 = vadd.xlane.f32.xlu1 %v1418_v29  ;;  %v1422_v22 = vadd.f32 %v5793_v25, %v1421_v23 }
 0x606   : > { %v5807_v14 = vpop.eup %4662  ;;  %v1425_v5 = vsel %vm712_vm0, %v5804_v55, 0.0 }
 0x607   : > { %v5811_v31 = vpop.eup %4664  ;;  %1423 = vadd.xlane.f32.xlu0 %v1422_v22  ;;  %v1426_v32 = vadd.f32 %v5800_v24, %v1425_v5 }
 0x608   : > { %v5814_v10 = vpop.eup %4666  ;;  %v1429_v15 = vsel %vm712_vm0, %v5811_v31, 0.0 }
 0x609   : > { %v5818_v33 = vpop.eup %4668  ;;  %1427 = vadd.xlane.f32.xlu1 %v1426_v32  ;;  %v1430_v16 = vadd.f32 %v5807_v14, %v1429_v15 }
 0x60a   : > { %v5821_v6 = vpop.eup %4670  ;;  %v1433_v57 = vsel %vm712_vm0, %v5818_v33, 0.0 }
 0x60b   : > { %v5825_v7 = vpop.eup %4672  ;;  %1431 = vadd.xlane.f32.xlu0 %v1430_v16  ;;  %v1434_v63 = vadd.f32 %v5814_v10, %v1433_v57 }
 0x60c   : > { %v5828_v4 = vpop.eup %4674  ;;  %v1437_v43 = vsel %vm712_vm0, %v5825_v7, 0.0 }
 0x60d   : > { %v5832_v39 = vpop.eup %4676  ;;  %1435 = vadd.xlane.f32.xlu1 %v1434_v63  ;;  %v1438_v41 = vadd.f32 %v5821_v6, %v1437_v43 }
 0x60e   : > { %v5835_v13 = vpop.eup %4678  ;;  %v1441_v11 = vsel %vm712_vm0, %v5832_v39, 0.0 }
 0x60f   : > { %v5839_v49 = vpop.eup %4680  ;;  %1439 = vadd.xlane.f32.xlu0 %v1438_v41  ;;  %v1442_v53 = vadd.f32 %v5828_v4, %v1441_v11 }
 0x610   : > { %v1445_v26 = vsel %vm712_vm0, %v5839_v49, 0.0 }
 0x611   : > { %1443 = vadd.xlane.f32.xlu1 %v1442_v53  ;;  %v1446_v17 = vadd.f32 %v5835_v13, %v1445_v26 }
 0x613   : > { %1447 = vadd.xlane.f32.xlu0 %v1446_v17 }
 0x633   : > { %v1372_v29 = vpop.xlane.xlu1 %1371 }
 0x634   : > { %4682 = vrcp.f32 %v1372_v29 }
 0x637   : > { %v1376_v23 = vpop.xlane.xlu0 %1375 }
 0x638   : > { %4684 = vrcp.f32 %v1376_v23 }
 0x63b   : > { %v1380_v5 = vpop.xlane.xlu1 %1379 }
 0x63f   : > { %v1384_v22 = vpop.xlane.xlu0 %1383 }
 0x640   : > { %4686 = vrcp.f32 %v1384_v22 }
 0x641   : > { %v4683_v32 = vpop.eup %4682  ;;  %4688 = vrcp.f32 %v1380_v5 }
 0x642   : > { %v1470_v16 = vmul.f32 %v4683_v32, %v5671_v0  ;;  %v1469_v22 = vmul.f32 %v4683_v32, %v5669_v51 }
 0x643   : > { %v1388_v63 = vpop.xlane.xlu1 %1387 }
 0x645   : > { %v4685_v15 = vpop.eup %4684 }
 0x646   : > { %v1472_v57 = vmul.f32 %v4685_v15, %v5680_v21  ;;  %v1471_v23 = vmul.f32 %v4685_v15, %v5678_v42 }
 0x647   : > { %v1392_v43 = vpop.xlane.xlu0 %1391 }
 0x648   : > { %v1510_v41 = vpack.c.bf16 %v1472_v57, %v1470_v16  ;;  %4690 = vrcp.f32 %v1392_v43  ;;  %v1509_v16 = vpack.c.bf16 %v1471_v23, %v1469_v22  ;;  %v7024_v57 = vmov 0.0  }
 0x649   : > { %4692 = vrcp.f32 %v1388_v63 }
 0x64a   : > { %4032 = vmatprep.mubr.msk.bf16.mxu0 %vm712_vm0, %v1510_v41 }
 0x64b   : > { %v1396_v11 = vpop.xlane.xlu1 %1395 }
 0x64d   : > { %v4687_v53 = vpop.eup %4686 }
 0x64e   : > { %v4689_v29 = vpop.eup %4688  ;;  %v1476_v0 = vmul.f32 %v4687_v53, %v5698_v54  ;;  %v1475_v42 = vmul.f32 %v4687_v53, %v5696_v1 }
 0x64f   : > { %v1400_v26 = vpop.xlane.xlu0 %1399  ;;  %v1548_v17 = vpop.permute.xlu1 %1547  ;;  %v1474_v5 = vmul.f32 %v4689_v29, %v5689_v18  ;;  %v1473_v15 = vmul.f32 %v4689_v29, %v5687_v61 }
 0x650   : > { %1618 = vmatpush2.bf16.msra.mxu0 %v1548_v17  ;;  %4694 = vrcp.f32 %v1400_v26 }
 0x651   : > { %1619 = vmatprep.subr.bf16.mxu0 %v7023_v47  ;;  %4696 = vrcp.f32 %v1396_v11  ;;  %v1512_v63 = vpack.c.bf16 %v1476_v0, %v1474_v5  ;;  %v1511_v32 = vpack.c.bf16 %v1475_v42, %v1473_v15 }
 0x653   : > { %v1546_v21 = vpop.permute.xlu0 %1545 }
 0x654   : > { %1620 = vmatpush2.bf16.msra.mxu0 %v1546_v21 }
 0x655   : > { %4235 = vmatprep.subr.bf16.mxu0 %v7024_v57  ;;  %v4691_v43 = vpop.eup %4690 }
 0x656   : > { %v4693_v41 = vpop.eup %4692  ;;  %v1480_v54 = vmul.f32 %v4691_v43, %v5713_v36  ;;  %v1479_v17 = vmul.f32 %v4691_v43, %v5710_v48 }
 0x657   : > { %1622 = vmatmul.mubr.bf16.vlgmr.msra.gmra.mxu0 %v1509_v16  ;;  %v1478_v51 = vmul.f32 %v4693_v41, %v5705_v59  ;;  %v1477_v0 = vmul.f32 %v4693_v41, %v5703_v60 }
 0x658   : > { %4033 = vmatprep.mubr.msk.bf16.mxu0 %vm712_vm0, %v1512_v63 }
 0x659   : > { %v1514_v11 = vpack.c.bf16 %v1480_v54, %v1478_v51  ;;  %v1513_v36 = vpack.c.bf16 %v1479_v17, %v1477_v0 }
 0x65d   : > { %v4695_v18 = vpop.eup %4694 }
 0x65e   : > { %v4697_v26 = vpop.eup %4696  ;;  %v1484_v23 = vmul.f32 %v4695_v18, %v5728_v37  ;;  %v1483_v61 = vmul.f32 %v4695_v18, %v5726_v45 }
 0x65f   : > { %1630 = vmatmul.mubr.bf16.gmra.mxu0 %v1511_v32  ;;  %v1482_v1 = vmul.f32 %v4697_v26, %v5721_v3  ;;  %v1481_v59 = vmul.f32 %v4697_v26, %v5718_v19 }
 0x660   : > { %4034 = vmatprep.mubr.msk.bf16.mxu0 %vm712_vm0, %v1514_v11 }
 0x661   : > { %v1516_v53 = vpack.c.bf16 %v1484_v23, %v1482_v1  ;;  %v1515_v29 = vpack.c.bf16 %v1483_v61, %v1481_v59 }
 0x667   : > { %1638 = vmatmul.mubr.bf16.gmra.mxu0 %v1513_v36 }
 0x668   : > { %4035 = vmatprep.mubr.msk.bf16.mxu0 %vm712_vm0, %v1516_v53 }
 0x66f   : > { %1646 = vmatmul.mubr.bf16.gmra.mxu0 %v1515_v29 }
 0x680   : > { %v1404_v21 = vpop.xlane.xlu1 %1403 }
 0x681   : > { %4698 = vrcp.f32 %v1404_v21 }
 0x684   : > { %v1408_v48 = vpop.xlane.xlu0 %1407 }
 0x685   : > { %4700 = vrcp.f32 %v1408_v48 }
 0x688   : > { %v1412_v37 = vpop.xlane.xlu1 %1411 }
 0x689   : > { %4702 = vrcp.f32 %v1412_v37 }
 0x68c   : > { %v1416_v60 = vpop.xlane.xlu0 %1415 }
 0x68d   : > { %4704 = vrcp.f32 %v1416_v60 }
 0x68e   : > { %v1420_v3 = vpop.xlane.xlu1 %1419  ;;  %v4699_v22 = vpop.eup %4698 }
 0x68f   : > { %4706 = vrcp.f32 %v1420_v3  ;;  %v1486_v45 = vmul.f32 %v4699_v22, %v5743_v12  ;;  %v1485_v43 = vmul.f32 %v4699_v22, %v5749_v62 }
 0x690   : > { %v1424_v5 = vpop.xlane.xlu0 %1423 }
 0x691   : > { %4708 = vrcp.f32 %v1424_v5 }
 0x692   : > { %v4701_v16 = vpop.eup %4700  ;;  %v1428_v63 = vpop.xlane.xlu1 %1427 }
 0x693   : > { %v1488_v19 = vmul.f32 %v4701_v16, %v5753_v50  ;;  %v1487_v41 = vmul.f32 %v4701_v16, %v5762_v2  ;;  %4710 = vrcp.f32 %v1428_v63 }
 0x694   : > { %v1432_v42 = vpop.xlane.xlu0 %1431 }
 0x695   : > { %4712 = vrcp.f32 %v1432_v42  ;;  %v1518_v54 = vpack.c.bf16 %v1488_v19, %v1486_v45  ;;  %v1517_v15 = vpack.c.bf16 %v1487_v41, %v1485_v43 }
 0x696   : > { %v4703_v51 = vpop.eup %4702  ;;  %v1436_v18 = vpop.xlane.xlu1 %1435 }
 0x697   : > { %4036 = vmatprep.mubr.msk.bf16.mxu0 %vm712_vm0, %v1518_v54  ;;  %v1490_v12 = vmul.f32 %v4703_v51, %v5775_v56  ;;  %v1489_v62 = vmul.f32 %v4703_v51, %v5772_v58 }
 0x698   : > { %v1440_v32 = vpop.xlane.xlu0 %1439  ;;  %1654 = vmatmul.mubr.bf16.gmra.mxu0 %v1517_v15 }
 0x699   : > { %4714 = vrcp.f32 %v1440_v32 }
 0x69a   : > { %v4705_v11 = vpop.eup %4704  ;;  %4716 = vrcp.f32 %v1436_v18  ;;  %v1444_v59 = vpop.xlane.xlu1 %1443 }
 0x69b   : > { %v1492_v50 = vmul.f32 %v4705_v11, %v5784_v9  ;;  %v1491_v2 = vmul.f32 %v4705_v11, %v5782_v8 }
 0x69c   : > { %v4707_v26 = vpop.eup %4706  ;;  %v1448_v53 = vpop.xlane.xlu0 %1447 }
 0x69d   : > { %v1520_v17 = vpack.c.bf16 %v1492_v50, %v1490_v12  ;;  %v1519_v23 = vpack.c.bf16 %v1491_v2, %v1489_v62  ;;  %v1494_v1 = vmul.f32 %v4707_v26, %v5790_v38  ;;  %4718 = vrcp.f32 %v1448_v53 }
 0x69e   : > { %v4709_v0 = vpop.eup %4708  ;;  %v1493_v29 = vmul.f32 %v4707_v26, %v5786_v20  ;;  %4720 = vrcp.f32 %v1444_v59 }
 0x69f   : > { %4037 = vmatprep.mubr.msk.bf16.mxu0 %vm712_vm0, %v1520_v17  ;;  %v1496_v36 = vmul.f32 %v4709_v0, %v5797_v27  ;;  %v1495_v58 = vmul.f32 %v4709_v0, %v5793_v25  ;;  %v4573_v0 = vld [vmem:[%s6979_s4] sm:$0xff]  }
 0x6a0   : > { %1662 = vmatmul.mubr.bf16.gmra.mxu0 %v1519_v23  ;;  %v4711_v56 = vpop.eup %4710 }
 0x6a1   : > { %v1522_v61 = vpack.c.bf16 %v1496_v36, %v1494_v1  ;;  %v1498_v38 = vmul.f32 %v4711_v56, %v5804_v55  ;;  %v1521_v21 = vpack.c.bf16 %v1495_v58, %v1493_v29  ;;  %v1497_v3 = vmul.f32 %v4711_v56, %v5800_v24 }
 0x6a2   : > { %v4713_v9 = vpop.eup %4712 }
 0x6a3   : > { %4038 = vmatprep.mubr.msk.bf16.mxu0 %vm712_vm0, %v1522_v61  ;;  %v1500_v8 = vmul.f32 %v4713_v9, %v5811_v31  ;;  %v1499_v60 = vmul.f32 %v4713_v9, %v5807_v14 }
 0x6a5   : > { %v1524_v27 = vpack.c.bf16 %v1500_v8, %v1498_v38  ;;  %v1523_v22 = vpack.c.bf16 %v1499_v60, %v1497_v3 }
 0x6a6   : > { %v4715_v48 = vpop.eup %4714 }
 0x6a7   : > { %v4717_v37 = vpop.eup %4716  ;;  %v1504_v25 = vmul.f32 %v4715_v48, %v5825_v7  ;;  %v1503_v16 = vmul.f32 %v4715_v48, %v5821_v6 }
 0x6a8   : > { %1670 = vmatmul.mubr.bf16.gmra.mxu0 %v1521_v21  ;;  %v1502_v31 = vmul.f32 %v4717_v37, %v5818_v33  ;;  %v1501_v45 = vmul.f32 %v4717_v37, %v5814_v10 }
 0x6a9   : > { %4039 = vmatprep.mubr.msk.bf16.mxu0 %vm712_vm0, %v1524_v27 }
 0x6aa   : > { %v1526_v20 = vpack.c.bf16 %v1504_v25, %v1502_v31  ;;  %v4719_v5 = vpop.eup %4718  ;;  %v1525_v7 = vpack.c.bf16 %v1503_v16, %v1501_v45 }
 0x6ab   : > { %v4721_v55 = vpop.eup %4720  ;;  %v1508_v63 = vmul.f32 %v4719_v5, %v5839_v49  ;;  %v1507_v24 = vmul.f32 %v4719_v5, %v5835_v13 }
 0x6ac   : > { %v1506_v14 = vmul.f32 %v4721_v55, %v5832_v39  ;;  %v1505_v33 = vmul.f32 %v4721_v55, %v5828_v4  ;;  %v4572_v4 = vld [vmem:[%s6979_s4 + $0x8] sm:$0xff]  }
 0x6ad   : > { %4236 = vmatpush3.bf16.msra.mxu0 %v4572_v4 }
 0x6ae   : > { %v1528_v19 = vpack.c.bf16 %v1508_v63, %v1506_v14  ;;  %v1527_v43 = vpack.c.bf16 %v1507_v24, %v1505_v33  ;;  %4237 = vmatprep.subr.bf16.mxu0 %v7024_v57 }
 0x6b0   : > { %1678 = vmatmul.mubr.bf16.gmra.mxu0 %v1523_v22 }
 0x6b1   : > { %4040 = vmatprep.mubr.msk.bf16.mxu0 %vm712_vm0, %v1526_v20  ;;  %4238 = vmatpush3.bf16.msra.mxu0 %v4573_v0 }
 0x6b2   : > { %4267 = vmatprep.subr.bf16.mxu0 %v7024_v57 }
 0x6b8   : > { %1686 = vmatmul.mubr.bf16.gmra.mxu0 %v1525_v7 }
 0x6b9   : > { %4041 = vmatprep.mubr.msk.bf16.mxu0 %vm712_vm0, %v1528_v19 }
 0x6c0   : > { %1694 = vmatmul.mubr.bf16.gmra.mxu0 %v1527_v43 }
 0x6c1   : > { %4239 = vmatprep.mubr.msk.bf16.mxu0 %vm5009_vm1, %v7024_v57 }
 0x717   : > { %v5899_v6 = vpop.f32.mrf.mxu0 }
 0x719   : > { %v1625_v49 = vpop.f32.mrf.mxu0 }
 0x71b   : > { %v5901_v10 = vpop.f32.mrf.mxu0 }
 0x71d   : > { %v1628_v39 = vpop.f32.mrf.mxu0 }
 0x71f   : > { %v5903_v41 = vpop.f32.mrf.mxu0 }
 0x721   : > { %v1633_v42 = vpop.f32.mrf.mxu0 }
 0x723   : > { %v5905_v54 = vpop.f32.mrf.mxu0 }
 0x725   : > { %v1636_v15 = vpop.f32.mrf.mxu0 }
 0x727   : > { %v5907_v13 = vpop.f32.mrf.mxu0 }
 0x729   : > { %v1641_v51 = vpop.f32.mrf.mxu0 }
 0x72b   : > { %v1642_v32 = vpop.f32.mrf.mxu0 }
 0x72d   : > { %v1644_v11 = vpop.f32.mrf.mxu0 }
 0x72f   : > { %v1647_v18 = vpop.f32.mrf.mxu0 }
 0x730   : > { %v4456_v12 = vpack.i.bf16 %v1647_v18, %v1642_v32 }
 0x731   : > { %v1649_v50 = vpop.f32.mrf.mxu0 }
 0x732   : > { %4457 = vrot.lane.b32.xlu1 %v4456_v12, %s5016_s16 }
 0x733   : > { %v1650_v62 = vpop.f32.mrf.mxu0 }
 0x735   : > { %v1652_v2 = vpop.f32.mrf.mxu0 }
 0x758   : > { %v1655_v26 = vpop.f32.mrf.mxu0 }
 0x759   : > { %v4471_v31 = vpack.i.bf16 %v1655_v26, %v1650_v62 }
 0x75a   : > { %v1657_v17 = vpop.f32.mrf.mxu0 }
 0x75c   : > { %v1658_v23 = vpop.f32.mrf.mxu0 }
 0x75e   : > { %v1660_v1 = vpop.f32.mrf.mxu0 }
 0x760   : > { %v1663_v36 = vpop.f32.mrf.mxu0 }
 0x762   : > { %v1665_v53 = vpop.f32.mrf.mxu0 }
 0x764   : > { %v1666_v56 = vpop.f32.mrf.mxu0 }
 0x765   : > { %v4461_v61 = vpack.i.bf16 %v1666_v56, %v1663_v36 }
 0x766   : > { %v1668_v9 = vpop.f32.mrf.mxu0 }
 0x767   : > { %4462 = vrot.lane.b32.xlu0 %v4461_v61, %s7002_s24 }
 0x768   : > { %v1671_v59 = vpop.f32.mrf.mxu0 }
 0x76a   : > { %v1673_v58 = vpop.f32.mrf.mxu0 }
 0x76c   : > { %v1674_v8 = vpop.f32.mrf.mxu0 }
 0x76d   : > { %v4476_v5 = vpack.i.bf16 %v1674_v8, %v1671_v59 }
 0x76e   : > { %v1676_v29 = vpop.f32.mrf.mxu0 }
 0x770   : > { %v1679_v38 = vpop.f32.mrf.mxu0 }
 0x772   : > { %v1681_v21 = vpop.f32.mrf.mxu0 }
 0x774   : > { %v1682_v27 = vpop.f32.mrf.mxu0 }
 0x776   : > { %v1684_v48 = vpop.f32.mrf.mxu0 }
 0x778   : > { %v1687_v37 = vpop.f32.mrf.mxu0 }
 0x779   : > { %v4466_v60 = vpack.i.bf16 %v1687_v37, %v1682_v27  ;;  %v5956_v27 = vsub.s32 3, %v5249_v30 }
 0x77a   : > { %v1689_v25 = vpop.f32.mrf.mxu0 }
 0x77b   : > { %4467 = vrot.lane.b32.xlu1 %v4466_v60, %s7000_s30 }
 0x77c   : > { %v1690_v3 = vpop.f32.mrf.mxu0 }
 0x77e   : > { %v1692_v22 = vpop.f32.mrf.mxu0 }
 0x77f   : > { %4472 = vrot.lane.b32.xlu1 %v4471_v31, %s5016_s16 }
 0x780   : > { %v1695_v20 = vpop.f32.mrf.mxu0 }
 0x781   : > { %v4481_v55 = vpack.i.bf16 %v1695_v20, %v1690_v3 }
 0x782   : > { %v1697_v16 = vpop.f32.mrf.mxu0 }
 0x783   : > { %4477 = vrot.lane.b32.xlu1 %v4476_v5, %s7002_s24  ;;  %4482 = vrot.lane.b32.xlu0 %v4481_v55, %s7000_s30 }
 0x784   : > { %v1698_v63 = vpop.f32.mrf.mxu0 }
 0x786   : > { %v1700_v45 = vpop.f32.mrf.mxu0 }
 0x787   : > { %1715 = vrot.lane.b32.xlu1 %v1658_v23, %s5016_s16  ;;  %1735 = vrot.lane.b32.xlu0 %v1679_v38, %s7002_s24  ;;  %s3992_s24 = sshll.u32 %s434_s25, 3 }
 0x788   : > { %s436_s21 = scalar_lea.vmem [#allocation2], %s3992_s24 }
 0x789   : > { %s3929_s27 = sshll.u32 %s436_s21, 4  ;;  %s6936_s27 = int_to_ptr.vmem [resolvable:$true] %s3929_s27 }
 0x78b   : > { %1755 = vrot.lane.b32.xlu1 %v1698_v63, %s7000_s30  ;;  %s7026_s30 = smov 16  }
 0x7a4   : > { %v4458_v14 = vpop.permute.xlu1 %4457 }
 0x7a5   : > { %v4460_v19 = vunpack.i.h.bf16 %v4458_v14  ;;  %v4459_v24 = vunpack.i.l.bf16 %v4458_v14 }
 0x7a7   : > { %v1763_v39 = vsel %vm975_vm2, %v5901_v10, %v4460_v19  ;;  %v1762_v42 = vsel %vm975_vm2, %v5899_v6, %v4459_v24 }
 0x7d9   : > { %v4463_v7 = vpop.permute.xlu0 %4462 }
 0x7da   : > { %v4465_v33 = vunpack.i.h.bf16 %v4463_v7  ;;  %v4464_v43 = vunpack.i.l.bf16 %v4463_v7 }
 0x7dc   : > { %v1768_v51 = vsel %vm1767_vm3, %v1762_v42, %v4464_v43  ;;  %v1769_v32 = vsel %vm1767_vm3, %v1763_v39, %v4465_v33 }
 0x7ed   : > { %v4468_v49 = vpop.permute.xlu1 %4467 }
 0x7ee   : > { %v4470_v15 = vunpack.i.h.bf16 %v4468_v49  ;;  %v4469_v4 = vunpack.i.l.bf16 %v4468_v49 }
 0x7f0   : > { %v1774_v11 = vsel %vm1773_vm4, %v1768_v51, %v4469_v4  ;;  %v1775_v18 = vsel %vm1773_vm4, %v1769_v32, %v4470_v15  ;;  %v4574_v51 = vld [vmem:[%s6980_s5 + $0x8] sm:$0xff]  }
 0x7f1   : > { %v1779_v12 = vpack.c.bf16 %v1775_v18, %v1774_v11  ;;  %v4473_v50 = vpop.permute.xlu1 %4472  ;;  %4252 = vmatpush3.bf16.msra.mxu1 %v4574_v51 }
 0x7f2   : > { %v4475_v62 = vunpack.i.h.bf16 %v4473_v50  ;;  %v4474_v2 = vunpack.i.l.bf16 %v4473_v50  ;;  %4253 = vmatprep.subr.bf16.mxu1 %v7024_v57 }
 0x7f3   : > { %4240 = vmatmul.mubr.msk.bf16.vlgmr.msra.gmra.mxu0 %vm712_vm0, %v1779_v12 }
 0x7f4   : > { %4243 = vmatprep.mubr.msk.bf16.mxu0 %vm5009_vm1, %v7024_v57  ;;  %v1765_v1 = vsel %vm975_vm2, %v5905_v54, %v4475_v62  ;;  %v1764_v36 = vsel %vm975_vm2, %v5903_v41, %v4474_v2 }
 0x7f5   : > { %v4483_v6 = vpop.permute.xlu0 %4482  ;;  %v4478_v10 = vpop.permute.xlu1 %4477 }
 0x7f6   : > { %v4485_v26 = vunpack.i.h.bf16 %v4483_v6  ;;  %v4484_v17 = vunpack.i.l.bf16 %v4483_v6  ;;  %v4480_v23 = vunpack.i.h.bf16 %v4478_v10  ;;  %v4479_v0 = vunpack.i.l.bf16 %v4478_v10 }
 0x7f8   : > { %v1770_v53 = vsel %vm1767_vm3, %v1764_v36, %v4479_v0  ;;  %v1771_v56 = vsel %vm1767_vm3, %v1765_v1, %v4480_v23 }
 0x7f9   : > { %v1716_v61 = vpop.permute.xlu1 %1715  ;;  %v1776_v9 = vsel %vm1773_vm4, %v1770_v53, %v4484_v17  ;;  %v1777_v59 = vsel %vm1773_vm4, %v1771_v56, %v4485_v26  ;;  %v1736_v8 = vpop.permute.xlu0 %1735 }
 0x7fa   : > { %v1780_v58 = vpack.c.bf16 %v1777_v59, %v1776_v9  ;;  %v1766_v29 = vsel %vm975_vm2, %v5907_v13, %v1716_v61  ;;  %v5961_v13 = vld [vmem:[%s6982_s7] sm:$0xff] }
 0x7fb   : > { %v1772_v41 = vsel %vm1767_vm3, %v1766_v29, %v1736_v8  ;;  %v1871_v48 = vrot.slane %v5961_v13, %v5956_v27 }
 0x7fc   : > { %4244 = vmatmul.mubr.msk.bf16.gmra.mxu0 %vm712_vm0, %v1780_v58 }
 0x7fd   : > { %v1756_v54 = vpop.permute.xlu1 %1755  ;;  %4247 = vmatprep.mubr.msk.bf16.mxu0 %vm5009_vm1, %v7024_v57 }
 0x7fe   : > { %v1778_v38 = vsel %vm1773_vm4, %v1772_v41, %v1756_v54  ;;  %v4575_v41 = vld [vmem:[%s6980_s5] sm:$0xff]  }
 0x7ff   : > { %v1781_v21 = vpack.c.bf16 %v1778_v38, %v1778_v38  ;;  %4254 = vmatpush3.bf16.msra.mxu1 %v4575_v41 }
 0x800   : > { %4287 = vmatprep.subr.bf16.mxu1 %v7024_v57 }
 0x804   : > { %4248 = vmatmul.mubr.msk.bf16.gmra.mxu0 %vm712_vm0, %v1781_v21 }
 0x805   : > { %4275 = vmatprep.mubr.msk.bf16.mxu0 %vm5009_vm1, %v7024_v57 }
 0x8b3   : > { %v1841_v37 = vpop.f32.mrf.mxu0 }
 0x8b4   : > { %v1863_v60 = vadd.f32 %v1841_v37, %v5193_v28 }
 0x8b5   : > { %v4241_v25 = vpop.f32.mrf.mxu0 }
 0x8b6   : > { %v5966_v3 = vadd.f32 %v1871_v48, %v1863_v60 }
 0x8b7   : > { %v1844_v31 = vpop.f32.mrf.mxu0 }
 0x8b8   : > { %v1864_v22 = vadd.f32 %v1844_v31, %v5200_v34  ;;  %v1877_v20 = vsel %vm712_vm0, %v5966_v3, 0.0 }
 0x8b9   : > { %1878 = vadd.xlane.f32.xlu0 %v1877_v20  ;;  %v4242_v5 = vpop.f32.mrf.mxu0 }
 0x8ba   : > { %v5971_v55 = vadd.f32 %v1871_v48, %v1864_v22 }
 0x8bc   : > { %v1849_v16 = vpop.f32.mrf.mxu0  ;;  %v1880_v63 = vsel %vm712_vm0, %v5971_v55, 0.0 }
 0x8bd   : > { %v1865_v45 = vadd.f32 %v1849_v16, %v5207_v40  ;;  %1881 = vadd.xlane.f32.xlu1 %v1880_v63  ;;  %v7007_v63 = vsub.s32 4, %v5249_v30 }
 0x8be   : > { %v4245_v28 = vpop.f32.mrf.mxu0 }
 0x8bf   : > { %v5976_v14 = vadd.f32 %v1871_v48, %v1865_v45 }
 0x8c0   : > { %v1852_v7 = vpop.f32.mrf.mxu0 }
 0x8c1   : > { %v1866_v34 = vadd.f32 %v1852_v7, %v5214_v46  ;;  %v1883_v19 = vsel %vm712_vm0, %v5976_v14, 0.0 }
 0x8c2   : > { %1884 = vadd.xlane.f32.xlu0 %v1883_v19  ;;  %v4246_v24 = vpop.f32.mrf.mxu0  ;;  %v1945_v19 = vrot.slane %v5961_v13, %v7007_v63 }
 0x8c3   : > { %v5981_v33 = vadd.f32 %v1871_v48, %v1866_v34 }
 0x8c4   : > { %v1857_v43 = vpop.f32.mrf.mxu0 }
 0x8c5   : > { %v1867_v49 = vadd.f32 %v1857_v43, %v5221_v52  ;;  %v1886_v40 = vsel %vm712_vm0, %v5981_v33, 0.0  ;;  %v7006_v43 = vsub.s32 5, %v5249_v30 }
 0x8c6   : > { %1887 = vadd.xlane.f32.xlu0 %v1886_v40  ;;  %v4249_v39 = vpop.f32.mrf.mxu0 }
 0x8c7   : > { %v5986_v42 = vadd.f32 %v1871_v48, %v1867_v49 }
 0x8c8   : > { %v1860_v15 = vpop.f32.mrf.mxu0 }
 0x8c9   : > { %v1889_v46 = vsel %vm712_vm0, %v5986_v42, 0.0 }
 0x8ca   : > { %1890 = vadd.xlane.f32.xlu0 %v1889_v46  ;;  %v4250_v4 = vpop.f32.mrf.mxu0  ;;  %v1954_v46 = vrot.slane %v5961_v13, %v7006_v43 }
 0x942   : > { %v1879_v52 = vpop.xlane.xlu0 %1878 }
 0x943   : > { %v1892_v32 = vmul.f32 0.03125, %v1879_v52 }
 0x945   : > { %v1897_v11 = vsub.f32 %v5966_v3, %v1892_v32 }
 0x946   : > { %v1882_v18 = vpop.xlane.xlu1 %1881 }
 0x947   : > { %v1893_v12 = vmul.f32 0.03125, %v1882_v18  ;;  %v1902_v50 = vmul.f32 %v1897_v11, %v1897_v11 }
 0x949   : > { %v1898_v62 = vsub.f32 %v5971_v55, %v1893_v12  ;;  %v1907_v2 = vsel %vm712_vm0, %v1902_v50, 0.0 }
 0x94a   : > { %1908 = vadd.xlane.f32.xlu1 %v1907_v2 }
 0x94b   : > { %v1885_v6 = vpop.xlane.xlu0 %1884  ;;  %v1903_v10 = vmul.f32 %v1898_v62, %v1898_v62 }
 0x94c   : > { %v1894_v26 = vmul.f32 0.03125, %v1885_v6 }
 0x94d   : > { %v1910_v17 = vsel %vm712_vm0, %v1903_v10, 0.0 }
 0x94e   : > { %v1899_v23 = vsub.f32 %v5976_v14, %v1894_v26  ;;  %1911 = vadd.xlane.f32.xlu0 %v1910_v17 }
 0x94f   : > { %v1888_v0 = vpop.xlane.xlu0 %1887 }
 0x950   : > { %v1895_v1 = vmul.f32 0.03125, %v1888_v0  ;;  %v1904_v36 = vmul.f32 %v1899_v23, %v1899_v23 }
 0x952   : > { %v1900_v53 = vsub.f32 %v5981_v33, %v1895_v1  ;;  %v1913_v56 = vsel %vm712_vm0, %v1904_v36, 0.0 }
 0x953   : > { %1914 = vadd.xlane.f32.xlu1 %v1913_v56  ;;  %v1891_v61 = vpop.xlane.xlu0 %1890  ;;  %v4577_v56 = vld [vmem:[%s6981_s6 + $0x10] sm:$0xff]  }
 0x954   : > { %v1896_v9 = vmul.f32 0.03125, %v1891_v61  ;;  %v1905_v59 = vmul.f32 %v1900_v53, %v1900_v53  ;;  %v4578_v61 = vld [vmem:[%s6981_s6 + $0x8] sm:$0xff]  }
 0x956   : > { %v1901_v58 = vsub.f32 %v5986_v42, %v1896_v9  ;;  %v1916_v8 = vsel %vm712_vm0, %v1905_v59, 0.0  ;;  %v4579_v9 = vld [vmem:[%s6981_s6] sm:$0xff]   ;;  %v7005_v59 = vsub.s32 6, %v5249_v30 }
 0x957   : > { %1917 = vadd.xlane.f32.xlu0 %v1916_v8 }
 0x958   : > { %v1906_v29 = vmul.f32 %v1901_v58, %v1901_v58 }
 0x95a   : > { %v1919_v54 = vsel %vm712_vm0, %v1906_v29, 0.0 }
 0x95b   : > { %1920 = vadd.xlane.f32.xlu1 %v1919_v54 }
 0x9d3   : > { %v1909_v38 = vpop.xlane.xlu1 %1908 }
 0x9d4   : > { %v1922_v21 = vmul.f32 0.03125, %v1909_v38 }
 0x9d6   : > { %v1927_v48 = vadd.f32 1e-12, %v1922_v21 }
 0x9d7   : > { %v1912_v37 = vpop.xlane.xlu0 %1911 }
 0x9d8   : > { %4722 = vrsqrt.f32 %v1927_v48  ;;  %v1923_v60 = vmul.f32 0.03125, %v1912_v37 }
 0x9da   : > { %v1928_v25 = vadd.f32 1e-12, %v1923_v60 }
 0x9dc   : > { %4724 = vrsqrt.f32 %v1928_v25  ;;  %v1915_v31 = vpop.xlane.xlu1 %1914 }
 0x9dd   : > { %v1924_v22 = vmul.f32 0.03125, %v1915_v31 }
 0x9df   : > { %v1929_v20 = vadd.f32 1e-12, %v1924_v22 }
 0x9e0   : > { %v1918_v5 = vpop.xlane.xlu0 %1917 }
 0x9e1   : > { %4726 = vrsqrt.f32 %v1929_v20  ;;  %v1925_v16 = vmul.f32 0.03125, %v1918_v5 }
 0x9e3   : > { %v1930_v45 = vadd.f32 1e-12, %v1925_v16 }
 0x9e4   : > { %v1921_v28 = vpop.xlane.xlu1 %1920 }
 0x9e5   : > { %v4723_v7 = vpop.eup %4722  ;;  %4728 = vrsqrt.f32 %v1930_v45  ;;  %v1926_v34 = vmul.f32 0.03125, %v1921_v28 }
 0x9e6   : > { %v1937_v24 = vmul.f32 %v4723_v7, %v1897_v11 }
 0x9e7   : > { %v1931_v49 = vadd.f32 1e-12, %v1926_v34 }
 0x9e8   : > { %v1946_v39 = vmul.f32 %v1945_v19, %v1937_v24 }
 0x9e9   : > { %v4725_v40 = vpop.eup %4724  ;;  %4730 = vrsqrt.f32 %v1931_v49 }
 0x9ea   : > { %v1938_v15 = vmul.f32 %v4725_v40, %v1898_v62  ;;  %v1955_v52 = vadd.f32 %v1954_v46, %v1946_v39 }
 0x9ec   : > { %v1947_v4 = vmul.f32 %v1945_v19, %v1938_v15 }
 0x9ee   : > { %v4727_v51 = vpop.eup %4726  ;;  %v1956_v32 = vadd.f32 %v1954_v46, %v1947_v4 }
 0x9ef   : > { %v1939_v18 = vmul.f32 %v4727_v51, %v1899_v23 }
 0x9f0   : > { %v1960_v12 = vpack.c.bf16 %v1956_v32, %v1955_v52 }
 0x9f1   : > { %v1948_v2 = vmul.f32 %v1945_v19, %v1939_v18 }
 0x9f2   : > { %v4729_v50 = vpop.eup %4728  ;;  %4256 = vmatmul.mubr.msk.bf16.vlgmr.msra.gmra.mxu1 %vm712_vm0, %v1960_v12 }
 0x9f3   : > { %4259 = vmatprep.mubr.msk.bf16.mxu1 %vm5009_vm1, %v7024_v57  ;;  %v1940_v11 = vmul.f32 %v4729_v50, %v1900_v53  ;;  %v1957_v10 = vadd.f32 %v1954_v46, %v1948_v2  ;;  %v4576_v53 = vld [vmem:[%s6981_s6 + $0x18] sm:$0xff]  }
 0x9f4   : > { %4268 = vmatpush3.bf16.msra.mxu0 %v4576_v53 }
 0x9f5   : > { %v1949_v6 = vmul.f32 %v1945_v19, %v1940_v11  ;;  %4269 = vmatprep.subr.bf16.mxu0 %v7024_v57 }
 0x9f6   : > { %v4731_v62 = vpop.eup %4730 }
 0x9f7   : > { %v1958_v26 = vadd.f32 %v1954_v46, %v1949_v6  ;;  %v1941_v17 = vmul.f32 %v4731_v62, %v1901_v58  ;;  %v1970_v58 = vrot.slane %v5961_v13, %v7005_v59 }
 0x9f8   : > { %4270 = vmatpush3.bf16.msra.mxu0 %v4577_v56  ;;  %v7004_v56 = vsub.s32 7, %v5249_v30 }
 0x9f9   : > { %v1961_v0 = vpack.c.bf16 %v1958_v26, %v1957_v10  ;;  %v1950_v1 = vmul.f32 %v1945_v19, %v1941_v17  ;;  %4271 = vmatprep.subr.bf16.mxu0 %v7024_v57 }
 0x9fb   : > { %4260 = vmatmul.mubr.msk.bf16.gmra.mxu1 %vm712_vm0, %v1961_v0  ;;  %v1959_v23 = vadd.f32 %v1954_v46, %v1950_v1 }
 0x9fc   : > { %4263 = vmatprep.mubr.msk.bf16.mxu1 %vm5009_vm1, %v7024_v57  ;;  %4272 = vmatpush3.bf16.msra.mxu0 %v4578_v61  ;;  %v2183_v61 = vrot.slane %v5961_v13, %v7004_v56  ;;  %v4932_v56 = vld [vmem:[%s6986_s11 + $0xc0] sm:$0xff] }
 0x9fd   : > { %v1962_v36 = vpack.c.bf16 %v1959_v23, %v1959_v23  ;;  %4273 = vmatprep.subr.bf16.mxu0 %v7024_v57 }
 0xa00   : > { %4274 = vmatpush3.bf16.msra.mxu0 %v4579_v9 }
 0xa01   : > { %2513 = vmatprep.subr.bf16.mxu0 %v7023_v47 }
 0xa03   : > { %4264 = vmatmul.mubr.msk.bf16.gmra.mxu1 %vm712_vm0, %v1962_v36 }
 0xa04   : > { %4291 = vmatprep.mubr.msk.bf16.mxu1 %vm5009_vm1, %v7024_v57 }
 0xab2   : > { %v2026_v8 = vpop.f32.mrf.mxu1 }
 0xab3   : > { %v2027_v29 = vadd.f32 %v2026_v8, %v1970_v58 }
 0xab4   : > { %v4257_v54 = vpop.f32.mrf.mxu1 }
 0xab5   : > { %v2054_v41 = vmul.f32 0.70710677, %v2027_v29  ;;  %v2048_v15 = vmul.f32 0.5, %v2027_v29 }
 0xab6   : > { %v2029_v38 = vpop.f32.mrf.mxu1 }
 0xab7   : > { %4732 = verf.f32 %v2054_v41  ;;  %v2030_v21 = vadd.f32 %v2029_v38, %v1970_v58 }
 0xab8   : > { %v4258_v48 = vpop.f32.mrf.mxu1 }
 0xab9   : > { %v2055_v37 = vmul.f32 0.70710677, %v2030_v21  ;;  %v2049_v46 = vmul.f32 0.5, %v2030_v21 }
 0xabb   : > { %4734 = verf.f32 %v2055_v37  ;;  %v2034_v60 = vpop.f32.mrf.mxu1 }
 0xabc   : > { %v2035_v25 = vadd.f32 %v2034_v60, %v1970_v58 }
 0xabd   : > { %v4261_v31 = vpop.f32.mrf.mxu1 }
 0xabe   : > { %v2056_v22 = vmul.f32 0.70710677, %v2035_v25  ;;  %v2050_v2 = vmul.f32 0.5, %v2035_v25 }
 0xabf   : > { %v2037_v20 = vpop.f32.mrf.mxu1 }
 0xac0   : > { %4736 = verf.f32 %v2056_v22  ;;  %v2038_v5 = vadd.f32 %v2037_v20, %v1970_v58 }
 0xac1   : > { %v4262_v16 = vpop.f32.mrf.mxu1 }
 0xac2   : > { %v2057_v45 = vmul.f32 0.70710677, %v2038_v5  ;;  %v2051_v6 = vmul.f32 0.5, %v2038_v5 }
 0xac3   : > { %v2042_v28 = vpop.f32.mrf.mxu1 }
 0xac4   : > { %v4733_v7 = vpop.eup %4732  ;;  %4738 = verf.f32 %v2057_v45  ;;  %v2043_v34 = vadd.f32 %v2042_v28, %v1970_v58 }
 0xac5   : > { %v4265_v19 = vpop.f32.mrf.mxu1  ;;  %v2064_v49 = vadd.f32 1.0, %v4733_v7 }
 0xac6   : > { %v2058_v24 = vmul.f32 0.70710677, %v2043_v34  ;;  %v2052_v23 = vmul.f32 0.5, %v2043_v34 }
 0xac7   : > { %v2045_v40 = vpop.f32.mrf.mxu1  ;;  %v2069_v52 = vmul.f32 %v2064_v49, %v2048_v15 }
 0xac8   : > { %v4735_v39 = vpop.eup %4734  ;;  %4740 = verf.f32 %v2058_v24 }
 0xac9   : > { %v2065_v4 = vadd.f32 1.0, %v4735_v39  ;;  %v4266_v51 = vpop.f32.mrf.mxu1 }
 0xacb   : > { %v2070_v32 = vmul.f32 %v2065_v4, %v2049_v46 }
 0xacd   : > { %v4737_v18 = vpop.eup %4736  ;;  %v2074_v12 = vpack.c.bf16 %v2070_v32, %v2069_v52 }
 0xace   : > { %v2066_v50 = vadd.f32 1.0, %v4737_v18 }
 0xacf   : > { %4276 = vmatmul.mubr.msk.bf16.vlgmr.msra.gmra.mxu0 %vm2109_vm5, %v2074_v12 }
 0xad0   : > { %4279 = vmatprep.mubr.msk.bf16.mxu0 %vm5009_vm1, %v7024_v57  ;;  %v2071_v10 = vmul.f32 %v2066_v50, %v2050_v2 }
 0xad1   : > { %v4739_v11 = vpop.eup %4738 }
 0xad2   : > { %v2067_v62 = vadd.f32 1.0, %v4739_v11 }
 0xad4   : > { %v2072_v26 = vmul.f32 %v2067_v62, %v2051_v6 }
 0xad5   : > { %v4741_v17 = vpop.eup %4740 }
 0xad6   : > { %v2075_v0 = vpack.c.bf16 %v2072_v26, %v2071_v10  ;;  %v2068_v1 = vadd.f32 1.0, %v4741_v17 }
 0xad8   : > { %4280 = vmatmul.mubr.msk.bf16.gmra.mxu0 %vm2109_vm5, %v2075_v0  ;;  %v2073_v36 = vmul.f32 %v2068_v1, %v2052_v23 }
 0xad9   : > { %4283 = vmatprep.mubr.msk.bf16.mxu0 %vm5009_vm1, %v7024_v57 }
 0xada   : > { %v2076_v53 = vpack.c.bf16 %v2073_v36, %v2073_v36 }
 0xae0   : > { %4284 = vmatmul.mubr.msk.bf16.gmra.mxu0 %vm2109_vm5, %v2076_v53  ;;  %v4580_v53 = vld [vmem:[%s6978_s3 + $0x18] sm:$0xff]  }
 0xae1   : > { %2545 = vmatprep.mubr.bf16.mxu0 %v7023_v47  ;;  %4288 = vmatpush3.bf16.msra.mxu1 %v4580_v53 }
 0xae2   : > { %4289 = vmatprep.subr.bf16.mxu1 %v7024_v57 }
 0xb8f   : > { %v2153_v9 = vpop.f32.mrf.mxu0 }
 0xb90   : > { %v2175_v58 = vadd.f32 %v2153_v9, %v5966_v3 }
 0xb91   : > { %v4277_v8 = vpop.f32.mrf.mxu0 }
 0xb92   : > { %v6058_v29 = vadd.f32 %v2183_v61, %v2175_v58 }
 0xb93   : > { %v2156_v54 = vpop.f32.mrf.mxu0 }
 0xb94   : > { %v2176_v41 = vadd.f32 %v2156_v54, %v5971_v55  ;;  %v2191_v38 = vsel %vm712_vm0, %v6058_v29, 0.0 }
 0xb95   : > { %2192 = vadd.xlane.f32.xlu0 %v2191_v38  ;;  %v4278_v21 = vpop.f32.mrf.mxu0 }
 0xb96   : > { %v6063_v48 = vadd.f32 %v2183_v61, %v2176_v41 }
 0xb98   : > { %v2161_v37 = vpop.f32.mrf.mxu0  ;;  %v2194_v13 = vsel %vm712_vm0, %v6063_v48, 0.0 }
 0xb99   : > { %v2177_v60 = vadd.f32 %v2161_v37, %v5976_v14  ;;  %2195 = vadd.xlane.f32.xlu1 %v2194_v13 }
 0xb9a   : > { %v4281_v3 = vpop.f32.mrf.mxu0 }
 0xb9b   : > { %v6068_v25 = vadd.f32 %v2183_v61, %v2177_v60 }
 0xb9c   : > { %v2164_v31 = vpop.f32.mrf.mxu0 }
 0xb9d   : > { %v2178_v55 = vadd.f32 %v2164_v31, %v5981_v33  ;;  %v2197_v22 = vsel %vm712_vm0, %v6068_v25, 0.0  ;;  %v4059_v31 = vld [vmem:[%s6982_s7 + $0x8] sm:$0xff] }
 0xb9e   : > { %2198 = vadd.xlane.f32.xlu0 %v2197_v22  ;;  %v4282_v20 = vpop.f32.mrf.mxu0 }
 0xb9f   : > { %v6073_v5 = vadd.f32 %v2183_v61, %v2178_v55 }
 0xba0   : > { %v2169_v16 = vpop.f32.mrf.mxu0 }
 0xba1   : > { %v2179_v45 = vadd.f32 %v2169_v16, %v5986_v42  ;;  %v2200_v14 = vsel %vm712_vm0, %v6073_v5, 0.0 }
 0xba2   : > { %2201 = vadd.xlane.f32.xlu1 %v2200_v14  ;;  %v4285_v28 = vpop.f32.mrf.mxu0 }
 0xba3   : > { %v6078_v7 = vadd.f32 %v2183_v61, %v2179_v45  ;;  %v4581_v61 = vld [vmem:[%s6978_s3 + $0x10] sm:$0xff]   ;;  %v2259_v45 = vrot.slane %v4059_v31, %v5252_v35 }
 0xba4   : > { %v2172_v34 = vpop.f32.mrf.mxu0  ;;  %4290 = vmatpush3.bf16.msra.mxu1 %v4581_v61 }
 0xba5   : > { %v2203_v33 = vsel %vm712_vm0, %v6078_v7, 0.0  ;;  %3066 = vmatprep.subr.bf16.mxu1 %v7023_v47 }
 0xba6   : > { %2204 = vadd.xlane.f32.xlu0 %v2203_v33  ;;  %v4286_v19 = vpop.f32.mrf.mxu0  ;;  %v2268_v33 = vrot.slane %v4059_v31, %v5259_v44 }
 0xc1e   : > { %v2193_v24 = vpop.xlane.xlu0 %2192 }
 0xc1f   : > { %v2206_v49 = vmul.f32 0.03125, %v2193_v24 }
 0xc21   : > { %v2211_v40 = vsub.f32 %v6058_v29, %v2206_v49 }
 0xc22   : > { %v2196_v39 = vpop.xlane.xlu1 %2195 }
 0xc23   : > { %v2207_v15 = vmul.f32 0.03125, %v2196_v39  ;;  %v2216_v42 = vmul.f32 %v2211_v40, %v2211_v40 }
 0xc25   : > { %v2212_v46 = vsub.f32 %v6063_v48, %v2207_v15  ;;  %v2221_v4 = vsel %vm712_vm0, %v2216_v42, 0.0 }
 0xc26   : > { %2222 = vadd.xlane.f32.xlu1 %v2221_v4 }
 0xc27   : > { %v2199_v51 = vpop.xlane.xlu0 %2198  ;;  %v2217_v52 = vmul.f32 %v2212_v46, %v2212_v46 }
 0xc28   : > { %v2208_v32 = vmul.f32 0.03125, %v2199_v51 }
 0xc29   : > { %v2224_v18 = vsel %vm712_vm0, %v2217_v52, 0.0 }
 0xc2a   : > { %v2213_v12 = vsub.f32 %v6068_v25, %v2208_v32  ;;  %2225 = vadd.xlane.f32.xlu0 %v2224_v18 }
 0xc2b   : > { %v2202_v50 = vpop.xlane.xlu1 %2201 }
 0xc2c   : > { %v2209_v11 = vmul.f32 0.03125, %v2202_v50  ;;  %v2218_v2 = vmul.f32 %v2213_v12, %v2213_v12 }
 0xc2e   : > { %v2214_v6 = vsub.f32 %v6073_v5, %v2209_v11  ;;  %v2227_v62 = vsel %vm712_vm0, %v2218_v2, 0.0 }
 0xc2f   : > { %2228 = vadd.xlane.f32.xlu1 %v2227_v62  ;;  %v2205_v10 = vpop.xlane.xlu0 %2204 }
 0xc30   : > { %v2210_v26 = vmul.f32 0.03125, %v2205_v10  ;;  %v2219_v17 = vmul.f32 %v2214_v6, %v2214_v6 }
 0xc32   : > { %v2215_v0 = vsub.f32 %v6078_v7, %v2210_v26  ;;  %v2230_v1 = vsel %vm712_vm0, %v2219_v17, 0.0  ;;  %v7025_v17 = vld [vmem:[#allocation13_spill] sm:$0xff] }
 0xc33   : > { %2231 = vadd.xlane.f32.xlu0 %v2230_v1  ;;  %v2285_v1 = vrot.slane %v4059_v31, %v7025_v17 }
 0xc34   : > { %v2220_v23 = vmul.f32 %v2215_v0, %v2215_v0 }
 0xc36   : > { %v2233_v36 = vsel %vm712_vm0, %v2220_v23, 0.0 }
 0xc37   : > { %2234 = vadd.xlane.f32.xlu1 %v2233_v36 }
 0xcaf   : > { %v2223_v9 = vpop.xlane.xlu1 %2222 }
 0xcb0   : > { %v2236_v58 = vmul.f32 0.03125, %v2223_v9 }
 0xcb2   : > { %v2241_v8 = vadd.f32 1e-12, %v2236_v58 }
 0xcb3   : > { %v2226_v54 = vpop.xlane.xlu0 %2225 }
 0xcb4   : > { %4742 = vrsqrt.f32 %v2241_v8  ;;  %v2237_v41 = vmul.f32 0.03125, %v2226_v54 }
 0xcb6   : > { %v2242_v38 = vadd.f32 1e-12, %v2237_v41 }
 0xcb8   : > { %4744 = vrsqrt.f32 %v2242_v38  ;;  %v2229_v21 = vpop.xlane.xlu1 %2228 }
 0xcb9   : > { %v2238_v37 = vmul.f32 0.03125, %v2229_v21 }
 0xcbb   : > { %v2243_v13 = vadd.f32 1e-12, %v2238_v37 }
 0xcbc   : > { %v2232_v60 = vpop.xlane.xlu0 %2231 }
 0xcbd   : > { %4746 = vrsqrt.f32 %v2243_v13  ;;  %v2239_v3 = vmul.f32 0.03125, %v2232_v60 }
 0xcbf   : > { %v2244_v55 = vadd.f32 1e-12, %v2239_v3 }
 0xcc0   : > { %v2235_v22 = vpop.xlane.xlu1 %2234 }
 0xcc1   : > { %v4743_v20 = vpop.eup %4742  ;;  %4748 = vrsqrt.f32 %v2244_v55  ;;  %v2240_v16 = vmul.f32 0.03125, %v2235_v22 }
 0xcc2   : > { %v2251_v14 = vmul.f32 %v4743_v20, %v2211_v40 }
 0xcc3   : > { %v2245_v28 = vadd.f32 1e-12, %v2240_v16 }
 0xcc4   : > { %v2260_v19 = vmul.f32 %v2259_v45, %v2251_v14 }
 0xcc5   : > { %v4745_v34 = vpop.eup %4744  ;;  %4750 = vrsqrt.f32 %v2245_v28 }
 0xcc6   : > { %v2252_v24 = vmul.f32 %v4745_v34, %v2212_v46  ;;  %v2269_v15 = vadd.f32 %v2268_v33, %v2260_v19 }
 0xcc8   : > { %v2261_v49 = vmul.f32 %v2259_v45, %v2252_v24 }
 0xcca   : > { %v4747_v39 = vpop.eup %4746  ;;  %v2270_v42 = vadd.f32 %v2268_v33, %v2261_v49 }
 0xccb   : > { %v2253_v4 = vmul.f32 %v4747_v39, %v2213_v12 }
 0xccc   : > { %v2274_v51 = vpack.c.bf16 %v2270_v42, %v2269_v15 }
 0xccd   : > { %v2262_v32 = vmul.f32 %v2259_v45, %v2253_v4 }
 0xcce   : > { %v4749_v52 = vpop.eup %4748  ;;  %4292 = vmatmul.mubr.msk.bf16.vlgmr.msra.gmra.mxu1 %vm712_vm0, %v2274_v51 }
 0xccf   : > { %4295 = vmatprep.mubr.msk.bf16.mxu1 %vm5009_vm1, %v7024_v57  ;;  %v2254_v40 = vmul.f32 %v4749_v52, %v2214_v6  ;;  %v2271_v11 = vadd.f32 %v2268_v33, %v2262_v32 }
 0xcd1   : > { %v2263_v18 = vmul.f32 %v2259_v45, %v2254_v40 }
 0xcd2   : > { %v4751_v50 = vpop.eup %4750 }
 0xcd3   : > { %v2272_v2 = vadd.f32 %v2268_v33, %v2263_v18  ;;  %v2255_v62 = vmul.f32 %v4751_v50, %v2215_v0 }
 0xcd5   : > { %v2275_v46 = vpack.c.bf16 %v2272_v2, %v2271_v11  ;;  %v2264_v10 = vmul.f32 %v2259_v45, %v2255_v62 }
 0xcd7   : > { %4296 = vmatmul.mubr.msk.bf16.gmra.mxu1 %vm712_vm0, %v2275_v46  ;;  %v2273_v12 = vadd.f32 %v2268_v33, %v2264_v10 }
 0xcd8   : > { %4299 = vmatprep.mubr.msk.bf16.mxu1 %vm5009_vm1, %v7024_v57 }
 0xcd9   : > { %v2276_v26 = vpack.c.bf16 %v2273_v12, %v2273_v12 }
 0xcdf   : > { %4300 = vmatmul.mubr.msk.bf16.gmra.mxu1 %vm712_vm0, %v2276_v26 }
 0xd8e   : > { %v2341_v6 = vpop.f32.mrf.mxu1 }
 0xd8f   : > { %v2342_v23 = vadd.f32 %v2341_v6, %v2285_v1 }
 0xd90   : > { %v4293_v36 = vpop.f32.mrf.mxu1 }
 0xd91   : > { %2398 = vrot.lane.b32.xlu1 %v2342_v23, %s5010_s17 }
 0xd92   : > { %v2344_v53 = vpop.f32.mrf.mxu1 }
 0xd93   : > { %v2345_v0 = vadd.f32 %v2344_v53, %v2285_v1 }
 0xd94   : > { %v4294_v61 = vpop.f32.mrf.mxu1 }
 0xd95   : > { %v6114_v9 = vpack.c.bf16 %v2345_v0, %v2342_v23  ;;  %v4491_v55 = vpack.i.bf16 %v2345_v0, %v2342_v23 }
 0xd97   : > { %v2349_v58 = vpop.f32.mrf.mxu1 }
 0xd98   : > { %v2350_v41 = vadd.f32 %v2349_v58, %v2285_v1 }
 0xd99   : > { %v4297_v8 = vpop.f32.mrf.mxu1 }
 0xd9a   : > { %v4501_v45 = vpack.i.bf16 %v2350_v41, %v2345_v0 }
 0xd9b   : > { %v2352_v54 = vpop.f32.mrf.mxu1 }
 0xd9c   : > { %v2353_v38 = vadd.f32 %v2352_v54, %v2285_v1 }
 0xd9d   : > { %v4298_v21 = vpop.f32.mrf.mxu1 }
 0xd9e   : > { %v4486_v37 = vpack.i.bf16 %v2353_v38, %v2350_v41  ;;  %v6116_v13 = vpack.c.bf16 %v2353_v38, %v2350_v41 }
 0xd9f   : > { %v2357_v60 = vpop.f32.mrf.mxu1 }
 0xda0   : > { %v2358_v3 = vadd.f32 %v2357_v60, %v2285_v1  ;;  %4487 = vrot.lane.b32.xlu1 %v4486_v37, %s5011_s23 }
 0xda1   : > { %v4301_v31 = vpop.f32.mrf.mxu1 }
 0xda2   : > { %2391 = vrot.lane.b32.xlu0 %v2358_v3, %s5011_s23  ;;  %v4496_v20 = vpack.i.bf16 %v2358_v3, %v2353_v38 }
 0xda3   : > { %v2360_v22 = vpop.f32.mrf.mxu1 }
 0xda4   : > { %4492 = vrot.lane.b32.xlu1 %v4491_v55, %s5011_s23 }
 0xda5   : > { %v4302_v16 = vpop.f32.mrf.mxu1 }
 0xda6   : > { %4497 = vrot.lane.b32.xlu0 %v4496_v20, %s5012_s15 }
 0xda8   : > { %4502 = vrot.lane.b32.xlu1 %v4501_v45, %s5012_s15 }
 0xdaa   : > { %2368 = vrot.lane.b32.xlu0 %v2342_v23, %s5012_s15  ;;  %s3916_s15 = scalar_lea.sflag [#allocation3], %s434_s25 }
 0xdae   : > { %4507 = vrot.lane.b32.xlu0 %v4496_v20, %s5010_s17 }
 0xdb2   : > { %4512 = vrot.lane.b32.xlu0 %v4501_v45, %s5010_s17 }
 0xe03   : > { %v2399_v14 = vpop.permute.xlu1 %2398 }
 0xe12   : > { %v4488_v28 = vpop.permute.xlu1 %4487 }
 0xe13   : > { %v4490_v34 = vunpack.i.h.bf16 %v4488_v28  ;;  %v4489_v33 = vunpack.i.l.bf16 %v4488_v28 }
 0xe14   : > { %v2392_v19 = vpop.permute.xlu0 %2391 }
 0xe15   : > { %v6126_v24 = vpack.c.bf16 %v2399_v14, %v2392_v19  ;;  %v6130_v39 = vpack.c.bf16 %v4490_v34, %v4489_v33 }
 0xe16   : > { %v4493_v49 = vpop.permute.xlu1 %4492 }
 0xe17   : > { %2447 = vrot.lane.b32.xlu1 %v6126_v24, %s5014_s20  ;;  %v4495_v42 = vunpack.i.h.bf16 %v4493_v49  ;;  %v4494_v4 = vunpack.i.l.bf16 %v4493_v49 }
 0xe18   : > { %v4498_v15 = vpop.permute.xlu0 %4497 }
 0xe19   : > { %v4500_v51 = vunpack.i.h.bf16 %v4498_v15  ;;  %v4499_v52 = vunpack.i.l.bf16 %v4498_v15  ;;  %v6136_v50 = vpack.c.bf16 %v4495_v42, %v4494_v4 }
 0xe1a   : > { %v4503_v40 = vpop.permute.xlu1 %4502 }
 0xe1b   : > { %v6132_v32 = vpack.c.bf16 %v4500_v51, %v4499_v52  ;;  %2445 = vrot.lane.b32.xlu1 %v6130_v39, %s5014_s20  ;;  %v4505_v11 = vunpack.i.h.bf16 %v4503_v40  ;;  %v4504_v2 = vunpack.i.l.bf16 %v4503_v40  ;;  %v4905_v52 = vld [vmem:[%s6986_s11 + $0x8] sm:$0xff]  ;;  %v4906_v40 = vld [vmem:[%s6986_s11] sm:$0xff] }
 0xe1c   : > { %v2369_v18 = vpop.permute.xlu0 %2368 }
 0xe1d   : > { %2441 = vrot.lane.b32.xlu0 %v6132_v32, %s5014_s20  ;;  %v6140_v62 = vpack.c.bf16 %v2369_v18, %v2358_v3  ;;  %v6144_v10 = vpack.c.bf16 %v4505_v11, %v4504_v2 }
 0xe1f   : > { %2443 = vrot.lane.b32.xlu1 %v6136_v50, %s5014_s20 }
 0xe20   : > { %v4508_v46 = vpop.permute.xlu0 %4507 }
 0xe21   : > { %2437 = vrot.lane.b32.xlu0 %v6140_v62, %s5014_s20  ;;  %v4510_v26 = vunpack.i.h.bf16 %v4508_v46  ;;  %v4509_v1 = vunpack.i.l.bf16 %v4508_v46 }
 0xe23   : > { %2439 = vrot.lane.b32.xlu1 %v6144_v10, %s5014_s20  ;;  %v6156_v53 = vpack.c.bf16 %v4510_v26, %v4509_v1 }
 0xe24   : > { %v4513_v12 = vpop.permute.xlu0 %4512 }
 0xe25   : > { %v4515_v6 = vunpack.i.h.bf16 %v4513_v12  ;;  %v4514_v23 = vunpack.i.l.bf16 %v4513_v12  ;;  %2433 = vrot.lane.b32.xlu0 %v6114_v9, %s5014_s20 }
 0xe27   : > { %v6152_v36 = vpack.c.bf16 %v4515_v6, %v4514_v23  ;;  %2435 = vrot.lane.b32.xlu1 %v6116_v13, %s5014_s20 }
 0xe29   : > { %2449 = vrot.lane.b32.xlu0 %v6152_v36, %s5014_s20 }
 0xe2b   : > { %2451 = vrot.lane.b32.xlu1 %v6156_v53, %s5014_s20 }
 0xe2d   : > { %3018 = vrot.lane.b32.xlu0 %v6130_v39, %s5015_s14 }
 0xe2f   : > { %3016 = vrot.lane.b32.xlu1 %v6136_v50, %s5015_s14 }
 0xe31   : > { %3010 = vrot.lane.b32.xlu0 %v6140_v62, %s5015_s14 }
 0xe33   : > { %3012 = vrot.lane.b32.xlu1 %v6144_v10, %s5015_s14 }
 0xe35   : > { %3014 = vrot.lane.b32.xlu0 %v6132_v32, %s5015_s14 }
 0xe37   : > { %3020 = vrot.lane.b32.xlu1 %v6126_v24, %s5015_s14 }
 0xe89   : > { %v2448_v0 = vpop.permute.xlu1 %2447 }
 0xe8a   : > { %v2505_v61 = vsel %vm975_vm2, %v2448_v0, 0  ;;  %v4909_v0 = vld [vmem:[%s6986_s11 + $0x28] sm:$0xff] }
 0xe8b   : > { %2514 = vmatpush1.bf16.xpose.msra.mxu0 %v2505_v61 }
 0xe8c   : > { %2515 = vmatprep.subr.bf16.mxu0 %v7023_v47 }
 0xe8d   : > { %v2446_v58 = vpop.permute.xlu1 %2445 }
 0xe8e   : > { %v2502_v41 = vsel %vm975_vm2, %v2446_v58, 0  ;;  %v4910_v58 = vld [vmem:[%s6986_s11 + $0x20] sm:$0xff] }
 0xe8f   : > { %v2442_v8 = vpop.permute.xlu0 %2441 }
 0xe90   : > { %v2496_v22 = vsel %vm975_vm2, %v2442_v8, 0 }
 0xe91   : > { %v2444_v54 = vpop.permute.xlu1 %2443 }
 0xe92   : > { %v2499_v60 = vsel %vm975_vm2, %v2444_v54, 0 }
 0xe93   : > { %2516 = vmatpush1.bf16.xpose.msra.mxu0 %v2502_v41  ;;  %v2438_v21 = vpop.permute.xlu0 %2437 }
 0xe94   : > { %2517 = vmatprep.subr.bf16.mxu0 %v7023_v47  ;;  %v2490_v33 = vsel %vm975_vm2, %v2438_v21, 0 }
 0xe95   : > { %v2440_v38 = vpop.permute.xlu1 %2439 }
 0xe96   : > { %v2493_v28 = vsel %vm975_vm2, %v2440_v38, 0 }
 0xe97   : > { %v2434_v3 = vpop.permute.xlu0 %2433 }
 0xe98   : > { %v2484_v15 = vsel %vm975_vm2, %v2434_v3, 0  ;;  %v4912_v3 = vld [vmem:[%s6986_s11 + $0x30] sm:$0xff] }
 0xe99   : > { %v2436_v37 = vpop.permute.xlu1 %2435 }
 0xe9a   : > { %v2487_v49 = vsel %vm975_vm2, %v2436_v37, 0  ;;  %v4911_v37 = vld [vmem:[%s6986_s11 + $0x38] sm:$0xff] }
 0xe9b   : > { %2518 = vmatpush1.bf16.xpose.msra.mxu0 %v2499_v60  ;;  %v2450_v20 = vpop.permute.xlu0 %2449 }
 0xe9c   : > { %2519 = vmatprep.subr.bf16.mxu0 %v7023_v47  ;;  %v2508_v4 = vsel %vm975_vm2, %v2450_v20, 0 }
 0xe9d   : > { %v2452_v31 = vpop.permute.xlu1 %2451 }
 0xe9e   : > { %v2511_v42 = vsel %vm975_vm2, %v2452_v31, 0 }
 0xe9f   : > { %v3019_v45 = vpop.permute.xlu0 %3018 }
 0xea1   : > { %v3017_v55 = vpop.permute.xlu1 %3016 }
 0xea3   : > { %2520 = vmatpush1.bf16.xpose.msra.mxu0 %v2496_v22  ;;  %v3011_v34 = vpop.permute.xlu0 %3010 }
 0xea4   : > { %2521 = vmatprep.subr.bf16.mxu0 %v7023_v47 }
 0xea5   : > { %v3013_v16 = vpop.permute.xlu1 %3012 }
 0xea7   : > { %v3015_v19 = vpop.permute.xlu0 %3014 }
 0xea9   : > { %v3021_v14 = vpop.permute.xlu1 %3020 }
 0xeaa   : > { %3067 = vmatpush1.bf16.msra.mxu1 %v3021_v14 }
 0xeab   : > { %2522 = vmatpush1.bf16.xpose.msra.mxu0 %v2493_v28  ;;  %3068 = vmatprep.subr.bf16.mxu1 %v7023_v47  ;;  %v4914_v28 = vld [vmem:[%s6986_s11 + $0x40] sm:$0xff] }
 0xeac   : > { %2523 = vmatprep.subr.bf16.mxu0 %v7023_v47 }
 0xeae   : > { %3069 = vmatpush1.bf16.msra.mxu1 %v3019_v45  ;;  %v4913_v45 = vld [vmem:[%s6986_s11 + $0x48] sm:$0xff] }
 0xeaf   : > { %3070 = vmatprep.subr.bf16.mxu1 %v7023_v47 }
 0xeb2   : > { %3071 = vmatpush1.bf16.msra.mxu1 %v3017_v55 }
 0xeb3   : > { %2524 = vmatpush1.bf16.xpose.msra.mxu0 %v2490_v33  ;;  %3072 = vmatprep.subr.bf16.mxu1 %v7023_v47 }
 0xeb4   : > { %2525 = vmatprep.subr.bf16.mxu0 %v7023_v47 }
 0xeb6   : > { %3073 = vmatpush1.bf16.msra.mxu1 %v3015_v19 }
 0xeb7   : > { %3074 = vmatprep.subr.bf16.mxu1 %v7023_v47 }
 0xeba   : > { %3075 = vmatpush1.bf16.msra.mxu1 %v3013_v16 }
 0xebb   : > { %2526 = vmatpush1.bf16.xpose.msra.mxu0 %v2487_v49  ;;  %3076 = vmatprep.subr.bf16.mxu1 %v7023_v47 }
 0xebc   : > { %2527 = vmatprep.subr.bf16.mxu0 %v7023_v47 }
 0xebe   : > { %3077 = vmatpush1.bf16.msra.mxu1 %v3011_v34 }
 0xebf   : > { %3078 = vmatprep.subr.bf16.mxu1 %v7023_v47 }
 0xec3   : > { %2528 = vmatpush1.bf16.xpose.msra.mxu0 %v2484_v15 }
 0xec4   : > { %2541 = vmatprep.subr.bf16.mxu0 %v7023_v47 }
 0xecb   : > { %2542 = vmatpush2.bf16.xpose.msra.mxu0 %v2511_v42  ;;  %v4915_v42 = vld [vmem:[%s6986_s11 + $0x58] sm:$0xff] }
 0xecc   : > { %2543 = vmatprep.subr.bf16.mxu0 %v7023_v47 }
 0xed3   : > { %2544 = vmatpush2.bf16.xpose.msra.mxu0 %v2508_v4 }
 0xed4   : > { %4319 = vmatprep.subr.bf16.mxu0 %v7024_v57 }
 0xeda   : > { %4069 = vmatmul.mubr.msk.bf16.vlgmr.msra.gmra.mxu0 %vm975_vm2, %v6114_v9 }
 0xedb   : > { %2555 = vmatprep.mubr.bf16.mxu0 %v7023_v47 }
 0xee2   : > { %4070 = vmatmul.mubr.msk.bf16.gmra.mxu0 %vm975_vm2, %v6116_v13 }
 0xee3   : > { %2565 = vmatprep.mubr.bf16.mxu0 %v7023_v47 }
 0xeea   : > { %4071 = vmatmul.mubr.msk.bf16.gmra.mxu0 %vm975_vm2, %v6140_v62  ;;  %v4907_v62 = vld [vmem:[%s6986_s11 + $0x18] sm:$0xff] }
 0xeeb   : > { %2575 = vmatprep.mubr.bf16.mxu0 %v7023_v47 }
 0xef2   : > { %4072 = vmatmul.mubr.msk.bf16.gmra.mxu0 %vm975_vm2, %v6144_v10  ;;  %v4908_v10 = vld [vmem:[%s6986_s11 + $0x10] sm:$0xff] }
 0xef3   : > { %2585 = vmatprep.mubr.bf16.mxu0 %v7023_v47 }
 0xefa   : > { %4073 = vmatmul.mubr.msk.bf16.gmra.mxu0 %vm975_vm2, %v6132_v32 }
 0xefb   : > { %2595 = vmatprep.mubr.bf16.mxu0 %v7023_v47 }
 0xf02   : > { %4074 = vmatmul.mubr.msk.bf16.gmra.mxu0 %vm975_vm2, %v6136_v50 }
 0xf03   : > { %2605 = vmatprep.mubr.bf16.mxu0 %v7023_v47 }
 0xf0a   : > { %4075 = vmatmul.mubr.msk.bf16.gmra.mxu0 %vm975_vm2, %v6130_v39 }
 0xf0b   : > { %2615 = vmatprep.mubr.bf16.mxu0 %v7023_v47 }
 0xf12   : > { %4076 = vmatmul.mubr.msk.bf16.gmra.mxu0 %vm975_vm2, %v6126_v24 }
 0xf13   : > { %2625 = vmatprep.mubr.bf16.mxu0 %v7023_v47 }
 0xf1a   : > { %4077 = vmatmul.mubr.msk.bf16.gmra.mxu0 %vm975_vm2, %v6152_v36 }
 0xf1b   : > { %2635 = vmatprep.mubr.bf16.mxu0 %v7023_v47 }
 0xf22   : > { %4078 = vmatmul.mubr.msk.bf16.gmra.mxu0 %vm975_vm2, %v6156_v53 }
 0xf23   : > { %4323 = vmatprep.mubr.msk.bf16.mxu0 %vm5009_vm1, %v7024_v57 }
 0xf9a   : > { %v2547_v51 = vpop.f32.mrf.mxu0 }
 0xf9b   : > { %v6239_v32 = vadd.f32 %v4906_v40, %v2547_v51  ;;  %v4916_v51 = vld [vmem:[%s6986_s11 + $0x50] sm:$0xff] }
 0xf9c   : > { %v2549_v39 = vpop.f32.mrf.mxu0 }
 0xf9d   : > { %v6234_v24 = vadd.f32 %v4905_v52, %v2549_v39 }
 0xf9e   : > { %v2551_v18 = vpop.f32.mrf.mxu0 }
 0xf9f   : > { %v2646_v50 = vsel %vm712_vm0, %v6234_v24, -inf  ;;  %v6252_v12 = vadd.f32 %v4908_v10, %v2551_v18 }
 0xfa0   : > { %v2647_v11 = vmax.f32 %v6239_v32, %v2646_v50  ;;  %v2553_v2 = vpop.f32.mrf.mxu0 }
 0xfa1   : > { %v6247_v46 = vadd.f32 %v4907_v62, %v2553_v2  ;;  %v4918_v62 = vld [vmem:[%s6986_s11 + $0x60] sm:$0xff] }
 0xfa2   : > { %v2557_v26 = vpop.f32.mrf.mxu0  ;;  %2648 = vmax.xlane.f32.xlu1 %v2647_v11  ;;  %v4917_v11 = vld [vmem:[%s6986_s11 + $0x68] sm:$0xff] }
 0xfa3   : > { %v2650_v1 = vsel %vm712_vm0, %v6247_v46, -inf  ;;  %v6265_v8 = vadd.f32 %v4910_v58, %v2557_v26 }
 0xfa4   : > { %v2651_v6 = vmax.f32 %v6252_v12, %v2650_v1  ;;  %v2559_v23 = vpop.f32.mrf.mxu0 }
 0xfa5   : > { %v6260_v61 = vadd.f32 %v4909_v0, %v2559_v23  ;;  %v4919_v0 = vld [vmem:[%s6986_s11 + $0x78] sm:$0xff] }
 0xfa6   : > { %v2561_v54 = vpop.f32.mrf.mxu0  ;;  %2652 = vmax.xlane.f32.xlu0 %v2651_v6 }
 0xfa7   : > { %v2654_v41 = vsel %vm712_vm0, %v6260_v61, -inf  ;;  %v6278_v31 = vadd.f32 %v4912_v3, %v2561_v54  ;;  %v4920_v54 = vld [vmem:[%s6986_s11 + $0x70] sm:$0xff] }
 0xfa8   : > { %v2655_v38 = vmax.f32 %v6265_v8, %v2654_v41  ;;  %v2563_v21 = vpop.f32.mrf.mxu0 }
 0xfa9   : > { %v6273_v60 = vadd.f32 %v4911_v37, %v2563_v21 }
 0xfaa   : > { %v2567_v55 = vpop.f32.mrf.mxu0  ;;  %2656 = vmax.xlane.f32.xlu0 %v2655_v38 }
 0xfab   : > { %v2658_v22 = vsel %vm712_vm0, %v6273_v60, -inf  ;;  %v6291_v34 = vadd.f32 %v4914_v28, %v2567_v55  ;;  %v4921_v55 = vld [vmem:[%s6986_s11 + $0x88] sm:$0xff] }
 0xfac   : > { %v2659_v20 = vmax.f32 %v6278_v31, %v2658_v22  ;;  %v2569_v16 = vpop.f32.mrf.mxu0 }
 0xfad   : > { %v6286_v14 = vadd.f32 %v4913_v45, %v2569_v16 }
 0xfae   : > { %v2571_v33 = vpop.f32.mrf.mxu0  ;;  %2660 = vmax.xlane.f32.xlu0 %v2659_v20  ;;  %v4922_v20 = vld [vmem:[%s6986_s11 + $0x80] sm:$0xff] }
 0xfaf   : > { %v2662_v19 = vsel %vm712_vm0, %v6286_v14, -inf  ;;  %v6304_v39 = vadd.f32 %v4916_v51, %v2571_v33 }
 0xfb0   : > { %v2663_v49 = vmax.f32 %v6291_v34, %v2662_v19  ;;  %v2573_v15 = vpop.f32.mrf.mxu0 }
 0xfb1   : > { %v6299_v4 = vadd.f32 %v4915_v42, %v2573_v15  ;;  %v4924_v42 = vld [vmem:[%s6986_s11 + $0x90] sm:$0xff] }
 0xfb2   : > { %v2577_v52 = vpop.f32.mrf.mxu0  ;;  %2664 = vmax.xlane.f32.xlu1 %v2663_v49  ;;  %v4923_v49 = vld [vmem:[%s6986_s11 + $0x98] sm:$0xff] }
 0xfb3   : > { %v2666_v40 = vsel %vm712_vm0, %v6299_v4, -inf  ;;  %v6317_v10 = vadd.f32 %v4918_v62, %v2577_v52 }
 0xfb4   : > { %v2667_v18 = vmax.f32 %v6304_v39, %v2666_v40  ;;  %v2579_v50 = vpop.f32.mrf.mxu0 }
 0xfb5   : > { %v6312_v2 = vadd.f32 %v4917_v11, %v2579_v50 }
 0xfb6   : > { %v2581_v26 = vpop.f32.mrf.mxu0  ;;  %2668 = vmax.xlane.f32.xlu0 %v2667_v18 }
 0xfb7   : > { %v2670_v1 = vsel %vm712_vm0, %v6312_v2, -inf  ;;  %v6330_v41 = vadd.f32 %v4920_v54, %v2581_v26 }
 0xfb8   : > { %v2671_v6 = vmax.f32 %v6317_v10, %v2670_v1  ;;  %v2583_v23 = vpop.f32.mrf.mxu0 }
 0xfb9   : > { %v6325_v58 = vadd.f32 %v4919_v0, %v2583_v23 }
 0xfba   : > { %v2587_v38 = vpop.f32.mrf.mxu0  ;;  %2672 = vmax.xlane.f32.xlu1 %v2671_v6 }
 0xfbb   : > { %v2674_v21 = vsel %vm712_vm0, %v6325_v58, -inf  ;;  %v6343_v16 = vadd.f32 %v4922_v20, %v2587_v38  ;;  %v4925_v20 = vld [vmem:[%s6986_s11 + $0xa8] sm:$0xff] }
 0xfbc   : > { %v2675_v37 = vmax.f32 %v6330_v41, %v2674_v21  ;;  %v2589_v3 = vpop.f32.mrf.mxu0 }
 0xfbd   : > { %v6338_v22 = vadd.f32 %v4921_v55, %v2589_v3 }
 0xfbe   : > { %v2591_v45 = vpop.f32.mrf.mxu0  ;;  %2676 = vmax.xlane.f32.xlu0 %v2675_v37 }
 0xfbf   : > { %v2678_v28 = vsel %vm712_vm0, %v6338_v22, -inf  ;;  %v6356_v51 = vadd.f32 %v4924_v42, %v2591_v45  ;;  %v4928_v42 = vld [vmem:[%s6986_s11 + $0xa0] sm:$0xff] }
 0xfc0   : > { %v2679_v33 = vmax.f32 %v6343_v16, %v2678_v28  ;;  %v2593_v19 = vpop.f32.mrf.mxu0 }
 0xfc1   : > { %v6351_v15 = vadd.f32 %v4923_v49, %v2593_v19 }
 0xfc2   : > { %v2597_v52 = vpop.f32.mrf.mxu0  ;;  %2680 = vmax.xlane.f32.xlu1 %v2679_v33 }
 0xfc3   : > { %v2682_v40 = vsel %vm712_vm0, %v6351_v15, -inf }
 0xfc4   : > { %v2683_v18 = vmax.f32 %v6356_v51, %v2682_v40  ;;  %v2599_v50 = vpop.f32.mrf.mxu0  ;;  %v6385_v40 = vadd.f32 %v4928_v42, %v2597_v52  ;;  %v4930_v52 = vld [vmem:[%s6986_s11 + $0xe8] sm:$0xff] }
 0xfc5   : > { %v6368_v45 = vadd.f32 %v4925_v20, %v2599_v50 }
 0xfc6   : > { %v2601_v11 = vpop.f32.mrf.mxu0  ;;  %2684 = vmax.xlane.f32.xlu0 %v2683_v18 }
 0xfc7   : > { %v2686_v33 = vsel %vm712_vm0, %v6368_v45, -inf }
 0xfc8   : > { %v2603_v62 = vpop.f32.mrf.mxu0  ;;  %v2687_v50 = vmax.f32 %v6385_v40, %v2686_v33  ;;  %v4931_v33 = vld [vmem:[%s6986_s11 + $0xb0] sm:$0xff] }
 0xfc9   : > { %v6405_v42 = vadd.f32 %v4931_v33, %v2601_v11  ;;  %v4933_v11 = vld [vmem:[%s6986_s11 + $0xf8] sm:$0xff] }
 0xfca   : > { %v2607_v26 = vpop.f32.mrf.mxu0 }
 0xfcb   : > { %v6410_v59 = vadd.f32 %v4932_v56, %v2607_v26  ;;  %v4934_v56 = vld [vmem:[%s6986_s11 + $0x108] sm:$0xff] }
 0xfcc   : > { %v2609_v1 = vpop.f32.mrf.mxu0 }
 0xfce   : > { %v2611_v6 = vpop.f32.mrf.mxu0 }
 0xfd0   : > { %v2613_v23 = vpop.f32.mrf.mxu0 }
 0xfd2   : > { %v2617_v0 = vpop.f32.mrf.mxu0 }
 0xfd3   : > { %3008 = vrot.lane.b32.xlu1 %v6116_v13, %s5015_s14  ;;  %v4926_v13 = vld [vmem:[%s6986_s11 + $0xb8] sm:$0xff] }
 0xfd4   : > { %v2619_v54 = vpop.f32.mrf.mxu0  ;;  %v6375_v19 = vadd.f32 %v4926_v13, %v2603_v62 }
 0xfd6   : > { %v2621_v38 = vpop.f32.mrf.mxu0  ;;  %v2690_v20 = vsel %vm712_vm0, %v6375_v19, -inf }
 0xfd8   : > { %v2623_v21 = vpop.f32.mrf.mxu0 }
 0xfd9   : > { %v6421_v33 = vadd.f32 %v4933_v11, %v2623_v21 }
 0xfda   : > { %v2627_v37 = vpop.f32.mrf.mxu0 }
 0xfdc   : > { %3006 = vrot.lane.b32.xlu0 %v6114_v9, %s5015_s14  ;;  %v2629_v3 = vpop.f32.mrf.mxu0  ;;  %v4927_v9 = vld [vmem:[%s6986_s11 + $0xc8] sm:$0xff] }
 0xfdd   : > { %v6380_v49 = vadd.f32 %v4927_v9, %v2609_v1  ;;  %v4929_v1 = vld [vmem:[%s6986_s11 + $0xd8] sm:$0xff]  ;;  %v6400_v9 = vadd.f32 %v4930_v52, %v2619_v54  ;;  %v6426_v26 = vadd.f32 %v4934_v56, %v2629_v3  ;;  %v2706_v56 = vsel %vm712_vm0, %v6421_v33, -inf }
 0xfde   : > { %v2631_v55 = vpop.f32.mrf.mxu0  ;;  %v6395_v13 = vadd.f32 %v4929_v1, %v2613_v23  ;;  %v2691_v1 = vmax.f32 %v6405_v42, %v2690_v20 }
 0xfdf   : > { %v2694_v62 = vsel %vm712_vm0, %v6380_v49, -inf  ;;  %v2702_v52 = vsel %vm712_vm0, %v6400_v9, -inf }
 0xfe0   : > { %v2633_v28 = vpop.f32.mrf.mxu0  ;;  %v2695_v43 = vmax.f32 %v6410_v59, %v2694_v62  ;;  %v2698_v54 = vsel %vm712_vm0, %v6395_v13, -inf  ;;  %v4936_v62 = vld [vmem:[%s6986_s11 + $0xe0] sm:$0xff] }
 0xfe1   : > { %v6436_v63 = vadd.f32 %v4936_v62, %v2617_v0 }
 0xfe2   : > { %v2637_v18 = vpop.f32.mrf.mxu0 }
 0xfe3   : > { %v2703_v3 = vmax.f32 %v6436_v63, %v2702_v52  ;;  %v4940_v52 = vld [vmem:[%s6986_s11 + $0x100] sm:$0xff] }
 0xfe4   : > { %v2639_v23 = vpop.f32.mrf.mxu0  ;;  %v6462_v62 = vadd.f32 %v4940_v52, %v2627_v37  ;;  %v4942_v37 = vld [vmem:[%s6986_s11 + $0x110] sm:$0xff] }
 0xfe6   : > { %v2641_v21 = vpop.f32.mrf.mxu0 }
 0xff7   : > { %2688 = vmax.xlane.f32.xlu1 %v2687_v50  ;;  %v4935_v50 = vld [vmem:[%s6986_s11 + $0xd0] sm:$0xff] }
 0xff8   : > { %v6431_v20 = vadd.f32 %v4935_v50, %v2611_v6  ;;  %v2710_v6 = vsel %vm712_vm0, %v6426_v26, -inf  ;;  %v4937_v50 = vld [vmem:[%s6986_s11 + $0x118] sm:$0xff] }
 0xff9   : > { %v6447_v17 = vadd.f32 %v4937_v50, %v2633_v28  ;;  %v2643_v28 = vpop.f32.mrf.mxu0 }
 0xffa   : > { %v2699_v11 = vmax.f32 %v6431_v20, %v2698_v54 }
 0xffb   : > { %2692 = vmax.xlane.f32.xlu0 %v2691_v1  ;;  %2696 = vmax.xlane.f32.xlu1 %v2695_v43  ;;  %v4938_v43 = vld [vmem:[%s6986_s11 + $0x128] sm:$0xff]  ;;  %v4939_v1 = vld [vmem:[%s6986_s11 + $0xf0] sm:$0xff] }
 0xffc   : > { %v6452_v0 = vadd.f32 %v4938_v43, %v2639_v23  ;;  %v6457_v54 = vadd.f32 %v4939_v1, %v2621_v38  ;;  %v2711_v23 = vmax.f32 %v6462_v62, %v2710_v6  ;;  %v2714_v43 = vsel %vm712_vm0, %v6447_v17, -inf  ;;  %v4941_v1 = vld [vmem:[%s6986_s11 + $0x138] sm:$0xff] }
 0xffd   : > { %v6473_v44 = vadd.f32 %v4941_v1, %v2643_v28 }
 0xffe   : > { %v2707_v50 = vmax.f32 %v6457_v54, %v2706_v56  ;;  %v2718_v38 = vsel %vm712_vm0, %v6452_v0, -inf }
 0xfff   : > { %2700 = vmax.xlane.f32.xlu0 %v2699_v11  ;;  %2704 = vmax.xlane.f32.xlu1 %v2703_v3  ;;  %v6478_v11 = vadd.f32 %v4942_v37, %v2631_v55  ;;  %v4943_v3 = vld [vmem:[%s6986_s11 + $0x120] sm:$0xff]  ;;  %v2722_v28 = vsel %vm712_vm0, %v6473_v44, -inf  ;;  %v4944_v55 = vld [vmem:[%s6986_s11 + $0x130] sm:$0xff] }
0x1000   : > { %v6483_v56 = vadd.f32 %v4943_v3, %v2637_v18  ;;  %v6492_v1 = vadd.f32 %v4944_v55, %v2641_v21 }
0x1001   : > { %v2715_v6 = vmax.f32 %v6478_v11, %v2714_v43 }
0x1002   : > { %v2719_v52 = vmax.f32 %v6483_v56, %v2718_v38  ;;  %v2723_v18 = vmax.f32 %v6492_v1, %v2722_v28 }
0x1003   : > { %2708 = vmax.xlane.f32.xlu0 %v2707_v50  ;;  %2712 = vmax.xlane.f32.xlu1 %v2711_v23 }
0x1007   : > { %2716 = vmax.xlane.f32.xlu0 %v2715_v6  ;;  %2720 = vmax.xlane.f32.xlu1 %v2719_v52 }
0x100b   : > { %2724 = vmax.xlane.f32.xlu0 %v2723_v18 }
0x102b   : > { %v2649_v50 = vpop.xlane.xlu1 %2648 }
0x102c   : > { %v2726_v23 = vsub.f32 %v6239_v32, %v2649_v50  ;;  %v2727_v43 = vsub.f32 %v6234_v24, %v2649_v50 }
0x102e   : > { %v2766_v38 = vmul.f32 1.442695, %v2726_v23  ;;  %v2768_v37 = vmul.f32 1.442695, %v2727_v43 }
0x102f   : > { %v2653_v3 = vpop.xlane.xlu0 %2652 }
0x1030   : > { %4752 = vpow2.f32 %v2766_v38  ;;  %v2728_v35 = vsub.f32 %v6252_v12, %v2653_v3  ;;  %v2729_v30 = vsub.f32 %v6247_v46, %v2653_v3 }
0x1031   : > { %4754 = vpow2.f32 %v2768_v37 }
0x1032   : > { %v2770_v21 = vmul.f32 1.442695, %v2728_v35  ;;  %v2772_v6 = vmul.f32 1.442695, %v2729_v30 }
0x1033   : > { %v2657_v52 = vpop.xlane.xlu0 %2656 }
0x1034   : > { %4756 = vpow2.f32 %v2770_v21  ;;  %v2730_v28 = vsub.f32 %v6265_v8, %v2657_v52  ;;  %v2731_v55 = vsub.f32 %v6260_v61, %v2657_v52 }
0x1035   : > { %4758 = vpow2.f32 %v2772_v6 }
0x1036   : > { %v2774_v32 = vmul.f32 1.442695, %v2730_v28  ;;  %v2776_v24 = vmul.f32 1.442695, %v2731_v55 }
0x1037   : > { %v2661_v18 = vpop.xlane.xlu0 %2660 }
0x1038   : > { %4760 = vpow2.f32 %v2774_v32  ;;  %v2732_v50 = vsub.f32 %v6278_v31, %v2661_v18  ;;  %v2733_v12 = vsub.f32 %v6273_v60, %v2661_v18 }
0x1039   : > { %4762 = vpow2.f32 %v2776_v24 }
0x103a   : > { %v2778_v46 = vmul.f32 1.442695, %v2732_v50  ;;  %v2780_v23 = vmul.f32 1.442695, %v2733_v12 }
0x103b   : > { %v2665_v35 = vpop.xlane.xlu1 %2664 }
0x103c   : > { %4764 = vpow2.f32 %v2778_v46  ;;  %v2734_v30 = vsub.f32 %v6291_v34, %v2665_v35  ;;  %v2735_v8 = vsub.f32 %v6286_v14, %v2665_v35 }
0x103d   : > { %v6505_v43 = vpop.eup %4752  ;;  %4766 = vpow2.f32 %v2780_v23 }
0x103e   : > { %v6507_v61 = vpop.eup %4754  ;;  %v2782_v38 = vmul.f32 1.442695, %v2734_v30  ;;  %v2784_v37 = vmul.f32 1.442695, %v2735_v8 }
0x103f   : > { %v2669_v3 = vpop.xlane.xlu0 %2668  ;;  %v2846_v60 = vsel %vm712_vm0, %v6507_v61, 0.0 }
0x1040   : > { %4768 = vpow2.f32 %v2782_v38  ;;  %v2736_v31 = vsub.f32 %v6304_v39, %v2669_v3  ;;  %v2737_v21 = vsub.f32 %v6299_v4, %v2669_v3  ;;  %v2847_v34 = vadd.f32 %v6505_v43, %v2846_v60 }
0x1041   : > { %v6514_v6 = vpop.eup %4756  ;;  %4770 = vpow2.f32 %v2784_v37 }
0x1042   : > { %v6516_v14 = vpop.eup %4758  ;;  %v2786_v52 = vmul.f32 1.442695, %v2736_v31  ;;  %v2788_v28 = vmul.f32 1.442695, %v2737_v21  ;;  %2848 = vadd.xlane.f32.xlu1 %v2847_v34 }
0x1043   : > { %v2673_v55 = vpop.xlane.xlu1 %2672  ;;  %v2850_v32 = vsel %vm712_vm0, %v6516_v14, 0.0 }
0x1044   : > { %4772 = vpow2.f32 %v2786_v52  ;;  %v2738_v24 = vsub.f32 %v6317_v10, %v2673_v55  ;;  %v2739_v39 = vsub.f32 %v6312_v2, %v2673_v55  ;;  %v2851_v4 = vadd.f32 %v6514_v6, %v2850_v32 }
0x1045   : > { %v6523_v18 = vpop.eup %4760  ;;  %4774 = vpow2.f32 %v2788_v28 }
0x1046   : > { %v6525_v50 = vpop.eup %4762  ;;  %v2790_v12 = vmul.f32 1.442695, %v2738_v24  ;;  %v2792_v46 = vmul.f32 1.442695, %v2739_v39  ;;  %2852 = vadd.xlane.f32.xlu0 %v2851_v4 }
0x1047   : > { %v2677_v23 = vpop.xlane.xlu0 %2676  ;;  %v2854_v35 = vsel %vm712_vm0, %v6525_v50, 0.0 }
0x1048   : > { %4776 = vpow2.f32 %v2790_v12  ;;  %v2740_v30 = vsub.f32 %v6330_v41, %v2677_v23  ;;  %v2741_v10 = vsub.f32 %v6325_v58, %v2677_v23  ;;  %v2855_v2 = vadd.f32 %v6523_v18, %v2854_v35 }
0x1049   : > { %v6532_v8 = vpop.eup %4764  ;;  %4778 = vpow2.f32 %v2792_v46 }
0x104a   : > { %v6534_v38 = vpop.eup %4766  ;;  %v2794_v37 = vmul.f32 1.442695, %v2740_v30  ;;  %v2796_v3 = vmul.f32 1.442695, %v2741_v10  ;;  %2856 = vadd.xlane.f32.xlu1 %v2855_v2 }
0x104b   : > { %v2681_v60 = vpop.xlane.xlu1 %2680  ;;  %v2858_v31 = vsel %vm712_vm0, %v6534_v38, 0.0 }
0x104c   : > { %4780 = vpow2.f32 %v2794_v37  ;;  %v2859_v21 = vadd.f32 %v6532_v8, %v2858_v31  ;;  %v2743_v31 = vsub.f32 %v6338_v22, %v2681_v60 }
0x104d   : > { %v6539_v41 = vpop.eup %4768  ;;  %4782 = vpow2.f32 %v2796_v3 }
0x104e   : > { %v6541_v58 = vpop.eup %4770  ;;  %2860 = vadd.xlane.f32.xlu0 %v2859_v21  ;;  %v2742_v21 = vsub.f32 %v6343_v16, %v2681_v60 }
0x104f   : > { %v2685_v34 = vpop.xlane.xlu0 %2684  ;;  %v3009_v52 = vpop.permute.xlu1 %3008  ;;  %v2862_v28 = vsel %vm712_vm0, %v6541_v58, 0.0 }
0x1050   : > { %3079 = vmatpush1.bf16.msra.mxu1 %v3009_v52  ;;  %v2863_v55 = vadd.f32 %v6539_v41, %v2862_v28  ;;  %v2800_v52 = vmul.f32 1.442695, %v2743_v31  ;;  %v2745_v28 = vsub.f32 %v6351_v15, %v2685_v34 }
0x1051   : > { %v6546_v32 = vpop.eup %4772  ;;  %3080 = vmatprep.subr.bf16.mxu1 %v7023_v47 }
0x1052   : > { %v6549_v24 = vpop.eup %4774  ;;  %2864 = vadd.xlane.f32.xlu1 %v2863_v55  ;;  %v2798_v55 = vmul.f32 1.442695, %v2742_v21  ;;  %4784 = vpow2.f32 %v2800_v52 }
0x1053   : > { %v3007_v39 = vpop.permute.xlu0 %3006  ;;  %v2866_v4 = vsel %vm712_vm0, %v6549_v24, 0.0 }
0x1054   : > { %3081 = vmatpush1.bf16.msra.mxu1 %v3007_v39  ;;  %v2867_v12 = vadd.f32 %v6546_v32, %v2866_v4  ;;  %v2744_v39 = vsub.f32 %v6356_v51, %v2685_v34  ;;  %v2804_v4 = vmul.f32 1.442695, %v2745_v28  ;;  %4786 = vpow2.f32 %v2798_v55 }
0x1055   : > { %v6554_v46 = vpop.eup %4776  ;;  %3094 = vmatprep.subr.bf16.mxu1 %v7023_v47 }
0x1056   : > { %v6557_v23 = vpop.eup %4778  ;;  %2868 = vadd.xlane.f32.xlu0 %v2867_v12  ;;  %v2802_v12 = vmul.f32 1.442695, %v2744_v39  ;;  %4788 = vpow2.f32 %v2804_v4 }
0x1057   : > { %v2870_v35 = vsel %vm712_vm0, %v6557_v23, 0.0 }
0x1058   : > { %v2871_v30 = vadd.f32 %v6554_v46, %v2870_v35  ;;  %4790 = vpow2.f32 %v2802_v12 }
0x1059   : > { %v6562_v10 = vpop.eup %4780 }
0x105a   : > { %v6564_v2 = vpop.eup %4782  ;;  %2872 = vadd.xlane.f32.xlu1 %v2871_v30 }
0x105b   : > { %v2874_v37 = vsel %vm712_vm0, %v6564_v2, 0.0 }
0x105c   : > { %v2875_v3 = vadd.f32 %v6562_v10, %v2874_v37 }
0x105e   : > { %2876 = vadd.xlane.f32.xlu0 %v2875_v3 }
0x105f   : > { %v6579_v37 = vpop.eup %4784 }
0x1060   : > { %v2878_v39 = vsel %vm712_vm0, %v6579_v37, 0.0 }
0x106b   : > { %3024 = vrot.lane.b32.xlu1 %v6156_v53, %s5015_s14 }
0x1074   : > { %3022 = vrot.lane.b32.xlu0 %v6152_v36, %s5015_s14  ;;  %s4946_s14 = scalar_lea.vmem %s6936_s27, 128 }
0x1075   : > { %p4947_p11 = scmp.ne.s32.totalorder %s6936_s27, %s4946_s14 }
0x1077   : > { %p4948_p12 = pnand %p4947_p11, %p5128_p5 }
0x1079   : > { %p4949_p13 = pneg %p4948_p12 }
0x1080   : > { %v2689_v53 = vpop.xlane.xlu1 %2688 }
0x1081   : > { %v2746_v22 = vsub.f32 %v6385_v40, %v2689_v53  ;;  %v2747_v16 = vsub.f32 %v6368_v45, %v2689_v53  ;;  %v6585_v45 = vpop.eup %4786 }
0x1082   : > { %v6589_v4 = vpop.eup %4788 }
0x1083   : > { %v2806_v60 = vmul.f32 1.442695, %v2746_v22  ;;  %v2808_v35 = vmul.f32 1.442695, %v2747_v16 }
0x1084   : > { %v2693_v15 = vpop.xlane.xlu0 %2692  ;;  %v2697_v30 = vpop.xlane.xlu1 %2696 }
0x1085   : > { %4792 = vpow2.f32 %v2806_v60  ;;  %v2748_v36 = vsub.f32 %v6405_v42, %v2693_v15  ;;  %v2749_v51 = vsub.f32 %v6375_v19, %v2693_v15  ;;  %v2750_v34 = vsub.f32 %v6410_v59, %v2697_v30 }
0x1086   : > { %4794 = vpow2.f32 %v2808_v35  ;;  %v2751_v3 = vsub.f32 %v6380_v49, %v2697_v30  ;;  %v2879_v15 = vadd.f32 %v6585_v45, %v2878_v39  ;;  %v6598_v30 = vpop.eup %4790 }
0x1087   : > { %v2810_v31 = vmul.f32 1.442695, %v2748_v36  ;;  %v2812_v40 = vmul.f32 1.442695, %v2749_v51  ;;  %v2814_v21 = vmul.f32 1.442695, %v2750_v34 }
0x1088   : > { %v2816_v52 = vmul.f32 1.442695, %v2751_v3  ;;  %v2701_v28 = vpop.xlane.xlu0 %2700  ;;  %v2705_v55 = vpop.xlane.xlu1 %2704 }
0x1089   : > { %4796 = vpow2.f32 %v2810_v31  ;;  %v2752_v19 = vsub.f32 %v6431_v20, %v2701_v28  ;;  %v2753_v59 = vsub.f32 %v6395_v13, %v2701_v28  ;;  %v2754_v49 = vsub.f32 %v6436_v63, %v2705_v55 }
0x108a   : > { %4798 = vpow2.f32 %v2812_v40  ;;  %v2755_v42 = vsub.f32 %v6400_v9, %v2705_v55  ;;  %v2882_v20 = vsel %vm712_vm0, %v6589_v4, 0.0 }
0x108b   : > { %4800 = vpow2.f32 %v2814_v21  ;;  %v2818_v12 = vmul.f32 1.442695, %v2752_v19  ;;  %v2820_v53 = vmul.f32 1.442695, %v2753_v59  ;;  %v2822_v22 = vmul.f32 1.442695, %v2754_v49 }
0x108c   : > { %4802 = vpow2.f32 %v2816_v52  ;;  %v2824_v16 = vmul.f32 1.442695, %v2755_v42  ;;  %v2709_v60 = vpop.xlane.xlu0 %2708  ;;  %v2713_v35 = vpop.xlane.xlu1 %2712  ;;  %v2883_v52 = vadd.f32 %v6598_v30, %v2882_v20 }
0x108d   : > { %4804 = vpow2.f32 %v2818_v12  ;;  %v2756_v63 = vsub.f32 %v6457_v54, %v2709_v60  ;;  %v2757_v13 = vsub.f32 %v6421_v33, %v2709_v60  ;;  %v2758_v9 = vsub.f32 %v6462_v62, %v2713_v35 }
0x108e   : > { %4806 = vpow2.f32 %v2820_v53  ;;  %v2759_v36 = vsub.f32 %v6426_v26, %v2713_v35 }
0x108f   : > { %4808 = vpow2.f32 %v2822_v22  ;;  %v2826_v51 = vmul.f32 1.442695, %v2756_v63  ;;  %v2828_v34 = vmul.f32 1.442695, %v2757_v13  ;;  %v2830_v3 = vmul.f32 1.442695, %v2758_v9  ;;  %2880 = vadd.xlane.f32.xlu1 %v2879_v15 }
0x1090   : > { %4810 = vpow2.f32 %v2824_v16  ;;  %v2832_v31 = vmul.f32 1.442695, %v2759_v36  ;;  %v2717_v40 = vpop.xlane.xlu0 %2716  ;;  %v2721_v21 = vpop.xlane.xlu1 %2720 }
0x1091   : > { %4812 = vpow2.f32 %v2826_v51  ;;  %v2760_v54 = vsub.f32 %v6478_v11, %v2717_v40  ;;  %v2761_v33 = vsub.f32 %v6447_v17, %v2717_v40  ;;  %v2762_v62 = vsub.f32 %v6483_v56, %v2721_v21 }
0x1092   : > { %v6608_v28 = vpop.eup %4792  ;;  %4814 = vpow2.f32 %v2828_v34  ;;  %v2763_v26 = vsub.f32 %v6452_v0, %v2721_v21 }
0x1093   : > { %v6611_v55 = vpop.eup %4794  ;;  %4816 = vpow2.f32 %v2830_v3  ;;  %v2834_v39 = vmul.f32 1.442695, %v2760_v54  ;;  %v2836_v19 = vmul.f32 1.442695, %v2761_v33  ;;  %v2838_v59 = vmul.f32 1.442695, %v2762_v62  ;;  %2884 = vadd.xlane.f32.xlu0 %v2883_v52 }
0x1094   : > { %4818 = vpow2.f32 %v2832_v31  ;;  %v2840_v49 = vmul.f32 1.442695, %v2763_v26  ;;  %v2725_v42 = vpop.xlane.xlu0 %2724  ;;  %v2886_v17 = vsel %vm712_vm0, %v6611_v55, 0.0 }
0x1095   : > { %4820 = vpow2.f32 %v2834_v39  ;;  %v2764_v11 = vsub.f32 %v6492_v1, %v2725_v42  ;;  %v2765_v56 = vsub.f32 %v6473_v44, %v2725_v42  ;;  %v2887_v0 = vadd.f32 %v6608_v28, %v2886_v17 }
0x1096   : > { %v6618_v12 = vpop.eup %4796  ;;  %4822 = vpow2.f32 %v2836_v19 }
0x1097   : > { %v6620_v53 = vpop.eup %4798  ;;  %4824 = vpow2.f32 %v2838_v59  ;;  %v2842_v22 = vmul.f32 1.442695, %v2764_v11  ;;  %v2844_v16 = vmul.f32 1.442695, %v2765_v56  ;;  %2888 = vadd.xlane.f32.xlu1 %v2887_v0 }
0x1098   : > { %v6622_v60 = vpop.eup %4800  ;;  %4826 = vpow2.f32 %v2840_v49  ;;  %v2890_v35 = vsel %vm712_vm0, %v6620_v53, 0.0 }
0x1099   : > { %v6626_v1 = vpop.eup %4802  ;;  %4828 = vpow2.f32 %v2842_v22  ;;  %v2891_v44 = vadd.f32 %v6618_v12, %v2890_v35 }
0x109a   : > { %v6629_v15 = vpop.eup %4804  ;;  %4830 = vpow2.f32 %v2844_v16  ;;  %v2894_v20 = vsel %vm712_vm0, %v6626_v1, 0.0 }
0x109b   : > { %v6633_v63 = vpop.eup %4806  ;;  %2892 = vadd.xlane.f32.xlu0 %v2891_v44  ;;  %v2895_v13 = vadd.f32 %v6622_v60, %v2894_v20 }
0x109c   : > { %v6636_v9 = vpop.eup %4808  ;;  %v2898_v36 = vsel %vm712_vm0, %v6633_v63, 0.0 }
0x109d   : > { %v6640_v51 = vpop.eup %4810  ;;  %2896 = vadd.xlane.f32.xlu1 %v2895_v13  ;;  %v2899_v34 = vadd.f32 %v6629_v15, %v2898_v36 }
0x109e   : > { %v6643_v3 = vpop.eup %4812  ;;  %v2902_v31 = vsel %vm712_vm0, %v6640_v51, 0.0 }
0x109f   : > { %v6647_v40 = vpop.eup %4814  ;;  %2900 = vadd.xlane.f32.xlu0 %v2899_v34  ;;  %v2903_v21 = vadd.f32 %v6636_v9, %v2902_v31 }
0x10a0   : > { %v6650_v52 = vpop.eup %4816  ;;  %v2906_v54 = vsel %vm712_vm0, %v6647_v40, 0.0 }
0x10a1   : > { %v6654_v33 = vpop.eup %4818  ;;  %2904 = vadd.xlane.f32.xlu1 %v2903_v21  ;;  %v2907_v62 = vadd.f32 %v6643_v3, %v2906_v54 }
0x10a2   : > { %v6657_v26 = vpop.eup %4820  ;;  %v2910_v39 = vsel %vm712_vm0, %v6654_v33, 0.0 }
0x10a3   : > { %v6661_v19 = vpop.eup %4822  ;;  %2908 = vadd.xlane.f32.xlu0 %v2907_v62  ;;  %v2911_v59 = vadd.f32 %v6650_v52, %v2910_v39 }
0x10a4   : > { %v6664_v49 = vpop.eup %4824  ;;  %v2914_v42 = vsel %vm712_vm0, %v6661_v19, 0.0 }
0x10a5   : > { %v6668_v17 = vpop.eup %4826  ;;  %2912 = vadd.xlane.f32.xlu1 %v2911_v59  ;;  %v2915_v11 = vadd.f32 %v6657_v26, %v2914_v42 }
0x10a6   : > { %v6671_v56 = vpop.eup %4828  ;;  %v2918_v0 = vsel %vm712_vm0, %v6668_v17, 0.0 }
0x10a7   : > { %v6675_v22 = vpop.eup %4830  ;;  %2916 = vadd.xlane.f32.xlu0 %v2915_v11  ;;  %v2919_v16 = vadd.f32 %v6664_v49, %v2918_v0 }
0x10a8   : > { %v2922_v35 = vsel %vm712_vm0, %v6675_v22, 0.0 }
0x10a9   : > { %2920 = vadd.xlane.f32.xlu1 %v2919_v16  ;;  %v2923_v44 = vadd.f32 %v6671_v56, %v2922_v35 }
0x10ab   : > { %2924 = vadd.xlane.f32.xlu0 %v2923_v44 }
0x10cb   : > { %v2849_v20 = vpop.xlane.xlu1 %2848 }
0x10cc   : > { %4832 = vrcp.f32 %v2849_v20 }
0x10cf   : > { %v2853_v13 = vpop.xlane.xlu0 %2852 }
0x10d0   : > { %4834 = vrcp.f32 %v2853_v13 }
0x10d3   : > { %v2857_v34 = vpop.xlane.xlu1 %2856 }
0x10d7   : > { %v2861_v36 = vpop.xlane.xlu0 %2860 }
0x10d8   : > { %4836 = vrcp.f32 %v2861_v36 }
0x10d9   : > { %v4833_v31 = vpop.eup %4832  ;;  %4838 = vrcp.f32 %v2857_v34 }
0x10da   : > { %v2947_v54 = vmul.f32 %v4833_v31, %v6507_v61  ;;  %v2946_v13 = vmul.f32 %v4833_v31, %v6505_v43 }
0x10db   : > { %v2865_v39 = vpop.xlane.xlu1 %2864 }
0x10dd   : > { %v4835_v21 = vpop.eup %4834 }
0x10de   : > { %v2949_v62 = vmul.f32 %v4835_v21, %v6516_v14  ;;  %v2948_v20 = vmul.f32 %v4835_v21, %v6514_v6 }
0x10df   : > { %v2869_v59 = vpop.xlane.xlu0 %2868 }
0x10e0   : > { %v2987_v42 = vpack.c.bf16 %v2949_v62, %v2947_v54  ;;  %4840 = vrcp.f32 %v2869_v59  ;;  %v2986_v34 = vpack.c.bf16 %v2948_v20, %v2946_v13 }
0x10e1   : > { %4842 = vrcp.f32 %v2865_v39 }
0x10e2   : > { %4079 = vmatprep.mubr.msk.bf16.mxu1 %vm712_vm0, %v2987_v42 }
0x10e3   : > { %v2873_v11 = vpop.xlane.xlu1 %2872 }
0x10e5   : > { %v4837_v0 = vpop.eup %4836 }
0x10e6   : > { %v4839_v44 = vpop.eup %4838  ;;  %v2953_v61 = vmul.f32 %v4837_v0, %v6534_v38  ;;  %v2952_v6 = vmul.f32 %v4837_v0, %v6532_v8 }
0x10e7   : > { %v2877_v16 = vpop.xlane.xlu0 %2876  ;;  %v3025_v35 = vpop.permute.xlu1 %3024  ;;  %v2951_v36 = vmul.f32 %v4839_v44, %v6525_v50  ;;  %v2950_v21 = vmul.f32 %v4839_v44, %v6523_v18 }
0x10e8   : > { %3095 = vmatpush2.bf16.msra.mxu1 %v3025_v35  ;;  %4844 = vrcp.f32 %v2877_v16 }
0x10e9   : > { %3096 = vmatprep.subr.bf16.mxu1 %v7023_v47  ;;  %4846 = vrcp.f32 %v2873_v11  ;;  %v2989_v54 = vpack.c.bf16 %v2953_v61, %v2951_v36  ;;  %v2988_v31 = vpack.c.bf16 %v2952_v6, %v2950_v21 }
0x10eb   : > { %v3023_v14 = vpop.permute.xlu0 %3022 }
0x10ec   : > { %3097 = vmatpush2.bf16.msra.mxu1 %v3023_v14 }
0x10ed   : > { %4303 = vmatprep.subr.bf16.mxu1 %v7024_v57  ;;  %v4841_v62 = vpop.eup %4840 }
0x10ee   : > { %v4843_v47 = vpop.eup %4842  ;;  %v2957_v38 = vmul.f32 %v4841_v62, %v6549_v24  ;;  %v2956_v42 = vmul.f32 %v4841_v62, %v6546_v32 }
0x10ef   : > { %3099 = vmatmul.mubr.bf16.vlgmr.msra.gmra.mxu1 %v2986_v34  ;;  %v2955_v43 = vmul.f32 %v4843_v47, %v6541_v58  ;;  %v2954_v16 = vmul.f32 %v4843_v47, %v6539_v41 }
0x10f0   : > { %4080 = vmatprep.mubr.msk.bf16.mxu1 %vm712_vm0, %v2989_v54 }
0x10f1   : > { %v2991_v39 = vpack.c.bf16 %v2957_v38, %v2955_v43  ;;  %v2990_v24 = vpack.c.bf16 %v2956_v42, %v2954_v16 }
0x10f5   : > { %v4845_v50 = vpop.eup %4844 }
0x10f6   : > { %v4847_v59 = vpop.eup %4846  ;;  %v2961_v11 = vmul.f32 %v4845_v50, %v6564_v2  ;;  %v2960_v18 = vmul.f32 %v4845_v50, %v6562_v10 }
0x10f7   : > { %3107 = vmatmul.mubr.bf16.gmra.mxu1 %v2988_v31  ;;  %v2959_v8 = vmul.f32 %v4847_v59, %v6557_v23  ;;  %v2958_v58 = vmul.f32 %v4847_v59, %v6554_v46 }
0x10f8   : > { %4081 = vmatprep.mubr.msk.bf16.mxu1 %vm712_vm0, %v2991_v39 }
0x10f9   : > { %v2993_v0 = vpack.c.bf16 %v2961_v11, %v2959_v8  ;;  %v2992_v35 = vpack.c.bf16 %v2960_v18, %v2958_v58 }
0x10ff   : > { %3115 = vmatmul.mubr.bf16.gmra.mxu1 %v2990_v24 }
0x1100   : > { %4082 = vmatprep.mubr.msk.bf16.mxu1 %vm712_vm0, %v2993_v0 }
0x1107   : > { %3123 = vmatmul.mubr.bf16.gmra.mxu1 %v2992_v35 }
0x1118   : > { %v2881_v44 = vpop.xlane.xlu1 %2880 }
0x1119   : > { %4848 = vrcp.f32 %v2881_v44 }
0x111c   : > { %v2885_v32 = vpop.xlane.xlu0 %2884 }
0x111d   : > { %4850 = vrcp.f32 %v2885_v32 }
0x1120   : > { %v2889_v2 = vpop.xlane.xlu1 %2888 }
0x1121   : > { %4852 = vrcp.f32 %v2889_v2 }
0x1124   : > { %v2893_v41 = vpop.xlane.xlu0 %2892 }
0x1125   : > { %4854 = vrcp.f32 %v2893_v41 }
0x1126   : > { %v2897_v23 = vpop.xlane.xlu1 %2896  ;;  %v4849_v20 = vpop.eup %4848 }
0x1127   : > { %4856 = vrcp.f32 %v2897_v23  ;;  %v2963_v10 = vmul.f32 %v4849_v20, %v6579_v37  ;;  %v2962_v36 = vmul.f32 %v4849_v20, %v6585_v45 }
0x1128   : > { %v2901_v61 = vpop.xlane.xlu0 %2900 }
0x1129   : > { %4858 = vrcp.f32 %v2901_v61 }
0x112a   : > { %v4851_v14 = vpop.eup %4850  ;;  %v2905_v13 = vpop.xlane.xlu1 %2904 }
0x112b   : > { %v2965_v46 = vmul.f32 %v4851_v14, %v6589_v4  ;;  %v2964_v34 = vmul.f32 %v4851_v14, %v6598_v30  ;;  %4860 = vrcp.f32 %v2905_v13 }
0x112c   : > { %v2909_v54 = vpop.xlane.xlu0 %2908 }
0x112d   : > { %4862 = vrcp.f32 %v2909_v54  ;;  %v2995_v62 = vpack.c.bf16 %v2965_v46, %v2963_v10  ;;  %v2994_v47 = vpack.c.bf16 %v2964_v34, %v2962_v36 }
0x112e   : > { %v4853_v6 = vpop.eup %4852  ;;  %v2913_v43 = vpop.xlane.xlu1 %2912 }
0x112f   : > { %4083 = vmatprep.mubr.msk.bf16.mxu1 %vm712_vm0, %v2995_v62  ;;  %v2967_v37 = vmul.f32 %v4853_v6, %v6611_v55  ;;  %v2966_v45 = vmul.f32 %v4853_v6, %v6608_v28 }
0x1130   : > { %v2917_v38 = vpop.xlane.xlu0 %2916  ;;  %3131 = vmatmul.mubr.bf16.gmra.mxu1 %v2994_v47 }
0x1131   : > { %4864 = vrcp.f32 %v2917_v38 }
0x1132   : > { %v4855_v21 = vpop.eup %4854  ;;  %4866 = vrcp.f32 %v2913_v43  ;;  %v2921_v24 = vpop.xlane.xlu1 %2920 }
0x1133   : > { %v2969_v4 = vmul.f32 %v4855_v21, %v6620_v53  ;;  %v2968_v30 = vmul.f32 %v4855_v21, %v6618_v12 }
0x1134   : > { %v4857_v31 = vpop.eup %4856  ;;  %v2925_v16 = vpop.xlane.xlu0 %2924 }
0x1135   : > { %v2997_v39 = vpack.c.bf16 %v2969_v4, %v2967_v37  ;;  %v2996_v50 = vpack.c.bf16 %v2968_v30, %v2966_v45  ;;  %v2971_v42 = vmul.f32 %v4857_v31, %v6626_v1  ;;  %4868 = vrcp.f32 %v2925_v16 }
0x1136   : > { %v4859_v59 = vpop.eup %4858  ;;  %v2970_v0 = vmul.f32 %v4857_v31, %v6622_v60  ;;  %4870 = vrcp.f32 %v2921_v24  ;;  %v4583_v31 = vld [vmem:[%s6979_s4 + $0x10] sm:$0xff]  }
0x1137   : > { %4084 = vmatprep.mubr.msk.bf16.mxu1 %vm712_vm0, %v2997_v39  ;;  %v2973_v11 = vmul.f32 %v4859_v59, %v6633_v63  ;;  %v2972_v28 = vmul.f32 %v4859_v59, %v6629_v15 }
0x1138   : > { %3139 = vmatmul.mubr.bf16.gmra.mxu1 %v2996_v50  ;;  %v4861_v55 = vpop.eup %4860 }
0x1139   : > { %v2999_v8 = vpack.c.bf16 %v2973_v11, %v2971_v42  ;;  %v2975_v1 = vmul.f32 %v4861_v55, %v6640_v51  ;;  %v2998_v18 = vpack.c.bf16 %v2972_v28, %v2970_v0  ;;  %v2974_v32 = vmul.f32 %v4861_v55, %v6636_v9 }
0x113a   : > { %v4863_v53 = vpop.eup %4862 }
0x113b   : > { %4085 = vmatprep.mubr.msk.bf16.mxu1 %vm712_vm0, %v2999_v8  ;;  %v2977_v12 = vmul.f32 %v4863_v53, %v6647_v40  ;;  %v2976_v44 = vmul.f32 %v4863_v53, %v6643_v3 }
0x113d   : > { %v3001_v63 = vpack.c.bf16 %v2977_v12, %v2975_v1  ;;  %v3000_v2 = vpack.c.bf16 %v2976_v44, %v2974_v32 }
0x113e   : > { %v4865_v58 = vpop.eup %4864 }
0x113f   : > { %v4867_v35 = vpop.eup %4866  ;;  %v2981_v15 = vmul.f32 %v4865_v58, %v6661_v19  ;;  %v2980_v23 = vmul.f32 %v4865_v58, %v6657_v26 }
0x1140   : > { %3147 = vmatmul.mubr.bf16.gmra.mxu1 %v2998_v18  ;;  %v2979_v40 = vmul.f32 %v4867_v35, %v6654_v33  ;;  %v2978_v61 = vmul.f32 %v4867_v35, %v6650_v52 }
0x1141   : > { %4086 = vmatprep.mubr.msk.bf16.mxu1 %vm712_vm0, %v3001_v63 }
0x1142   : > { %v3003_v60 = vpack.c.bf16 %v2981_v15, %v2979_v40  ;;  %v4869_v41 = vpop.eup %4868  ;;  %v3002_v19 = vpack.c.bf16 %v2980_v23, %v2978_v61 }
0x1143   : > { %v4871_v51 = vpop.eup %4870  ;;  %v2985_v20 = vmul.f32 %v4869_v41, %v6675_v22  ;;  %v2984_v9 = vmul.f32 %v4869_v41, %v6671_v56 }
0x1144   : > { %v2983_v3 = vmul.f32 %v4871_v51, %v6668_v17  ;;  %v2982_v33 = vmul.f32 %v4871_v51, %v6664_v49  ;;  %v4582_v49 = vld [vmem:[%s6979_s4 + $0x18] sm:$0xff]  }
0x1145   : > { %4304 = vmatpush3.bf16.msra.mxu1 %v4582_v49 }
0x1146   : > { %v3005_v14 = vpack.c.bf16 %v2985_v20, %v2983_v3  ;;  %v3004_v13 = vpack.c.bf16 %v2984_v9, %v2982_v33  ;;  %4305 = vmatprep.subr.bf16.mxu1 %v7024_v57 }
0x1148   : > { %3155 = vmatmul.mubr.bf16.gmra.mxu1 %v3000_v2 }
0x1149   : > { %4087 = vmatprep.mubr.msk.bf16.mxu1 %vm712_vm0, %v3003_v60  ;;  %4306 = vmatpush3.bf16.msra.mxu1 %v4583_v31 }
0x114a   : > { %4335 = vmatprep.subr.bf16.mxu1 %v7024_v57 }
0x1150   : > { %3163 = vmatmul.mubr.bf16.gmra.mxu1 %v3002_v19 }
0x1151   : > { %4088 = vmatprep.mubr.msk.bf16.mxu1 %vm712_vm0, %v3005_v14 }
0x1158   : > { %3171 = vmatmul.mubr.bf16.gmra.mxu1 %v3004_v13 }
0x1159   : > { %4307 = vmatprep.mubr.msk.bf16.mxu1 %vm5009_vm1, %v7024_v57 }
0x11af   : > { %v6735_v26 = vpop.f32.mrf.mxu1 }
0x11b1   : > { %v3102_v22 = vpop.f32.mrf.mxu1 }
0x11b3   : > { %v6737_v52 = vpop.f32.mrf.mxu1 }
0x11b5   : > { %v3105_v17 = vpop.f32.mrf.mxu1 }
0x11b7   : > { %v6739_v10 = vpop.f32.mrf.mxu1 }
0x11b9   : > { %v3110_v46 = vpop.f32.mrf.mxu1 }
0x11bb   : > { %v6741_v36 = vpop.f32.mrf.mxu1 }
0x11bd   : > { %v3113_v34 = vpop.f32.mrf.mxu1 }
0x11bf   : > { %v6743_v56 = vpop.f32.mrf.mxu1 }
0x11c1   : > { %v3118_v54 = vpop.f32.mrf.mxu1 }
0x11c3   : > { %v3119_v62 = vpop.f32.mrf.mxu1 }
0x11c5   : > { %v3121_v47 = vpop.f32.mrf.mxu1 }
0x11c7   : > { %v3124_v6 = vpop.f32.mrf.mxu1 }
0x11c8   : > { %v4516_v38 = vpack.i.bf16 %v3124_v6, %v3119_v62 }
0x11c9   : > { %v3126_v21 = vpop.f32.mrf.mxu1 }
0x11ca   : > { %4517 = vrot.lane.b32.xlu1 %v4516_v38, %s5016_s16 }
0x11cb   : > { %v3127_v43 = vpop.f32.mrf.mxu1 }
0x11cd   : > { %v3129_v37 = vpop.f32.mrf.mxu1 }
0x11f0   : > { %v3132_v4 = vpop.f32.mrf.mxu1 }
0x11f1   : > { %v4531_v44 = vpack.i.bf16 %v3132_v4, %v3127_v43 }
0x11f2   : > { %v3134_v45 = vpop.f32.mrf.mxu1 }
0x11f4   : > { %v3135_v30 = vpop.f32.mrf.mxu1 }
0x11f6   : > { %v3137_v39 = vpop.f32.mrf.mxu1 }
0x11f8   : > { %v3140_v50 = vpop.f32.mrf.mxu1 }
0x11fa   : > { %v3142_v59 = vpop.f32.mrf.mxu1 }
0x11fc   : > { %v3143_v42 = vpop.f32.mrf.mxu1 }
0x11fd   : > { %v4521_v11 = vpack.i.bf16 %v3143_v42, %v3140_v50 }
0x11fe   : > { %v3145_v16 = vpop.f32.mrf.mxu1 }
0x11ff   : > { %4522 = vrot.lane.b32.xlu0 %v4521_v11, %s7026_s30 }
0x1200   : > { %v3148_v55 = vpop.f32.mrf.mxu1 }
0x1202   : > { %v3150_v8 = vpop.f32.mrf.mxu1 }
0x1204   : > { %v3151_v53 = vpop.f32.mrf.mxu1 }
0x1205   : > { %v4536_v40 = vpack.i.bf16 %v3151_v53, %v3148_v55 }
0x1206   : > { %v3153_v24 = vpop.f32.mrf.mxu1 }
0x1208   : > { %v3156_v28 = vpop.f32.mrf.mxu1 }
0x120a   : > { %v3158_v12 = vpop.f32.mrf.mxu1 }
0x120c   : > { %v3159_v0 = vpop.f32.mrf.mxu1 }
0x120e   : > { %v3161_v1 = vpop.f32.mrf.mxu1 }
0x1210   : > { %v3164_v18 = vpop.f32.mrf.mxu1 }
0x1211   : > { %v4526_v63 = vpack.i.bf16 %v3164_v18, %v3159_v0 }
0x1212   : > { %v3166_v58 = vpop.f32.mrf.mxu1 }
0x1213   : > { %4527 = vrot.lane.b32.xlu1 %v4526_v63, %s7027_s19 }
0x1214   : > { %v3167_v35 = vpop.f32.mrf.mxu1 }
0x1216   : > { %v3169_v15 = vpop.f32.mrf.mxu1 }
0x1217   : > { %4532 = vrot.lane.b32.xlu1 %v4531_v44, %s5016_s16 }
0x1218   : > { %v3172_v32 = vpop.f32.mrf.mxu1 }
0x1219   : > { %v4541_v2 = vpack.i.bf16 %v3172_v32, %v3167_v35 }
0x121a   : > { %v3174_v60 = vpop.f32.mrf.mxu1 }
0x121b   : > { %4537 = vrot.lane.b32.xlu1 %v4536_v40, %s7026_s30  ;;  %4542 = vrot.lane.b32.xlu0 %v4541_v2, %s7027_s19 }
0x121c   : > { %v3175_v41 = vpop.f32.mrf.mxu1 }
0x121e   : > { %v3177_v51 = vpop.f32.mrf.mxu1 }
0x121f   : > { %3192 = vrot.lane.b32.xlu1 %v3135_v30, %s5016_s16  ;;  %3212 = vrot.lane.b32.xlu0 %v3156_v28, %s7026_s30  ;;  %s4128_s16 = sshll.u32 %s5111_s29, 7  ;;  %s5019_s29 = smov [#allocation2]  }
0x1220   : > { %s6934_s23 = scalar_lea.hbm %s6988_s13, %s4128_s16  ;;  %s4950_s20 = sshll.u32 %s5019_s29, 4  ;;  %s4951_s20 = int_to_ptr.vmem [resolvable:$false] %s4950_s20 }
0x1221   : > { %s4952_s24 = scalar_lea.vmem %s4951_s20, 256  ;;  %p4953_p0 = scmp.lt.s32.totalorder %s6936_s27, %s4951_s20 }
0x1222   : > { %p4954_p1 = scmp.lt.s32.totalorder %s4952_s24, %s4946_s14 }
0x1223   : > { %3232 = vrot.lane.b32.xlu1 %v3175_v41, %s7027_s19 }
0x1224   : > { %p4955_p2 = por %p4954_p1, %p4953_p0 }
0x1226   : > { %p4956_p3 = pnand %p4955_p2, %p4949_p13 }
0x123c   : > { %v4518_v23 = vpop.permute.xlu1 %4517 }
0x123d   : > { %v4520_v61 = vunpack.i.h.bf16 %v4518_v23  ;;  %v4519_v3 = vunpack.i.l.bf16 %v4518_v23 }
0x123f   : > { %v3240_v33 = vsel %vm975_vm2, %v6737_v52, %v4520_v61  ;;  %v3239_v13 = vsel %vm975_vm2, %v6735_v26, %v4519_v3 }
0x1271   : > { %v4523_v20 = vpop.permute.xlu0 %4522 }
0x1272   : > { %v4525_v19 = vunpack.i.h.bf16 %v4523_v20  ;;  %v4524_v14 = vunpack.i.l.bf16 %v4523_v20 }
0x1274   : > { %v3244_v46 = vsel %vm1767_vm3, %v3239_v13, %v4524_v14  ;;  %v3245_v34 = vsel %vm1767_vm3, %v3240_v33, %v4525_v19  ;;  %v4584_v33 = vld [vmem:[%s6980_s5 + $0x18] sm:$0xff]  }
0x1275   : > { %4320 = vmatpush3.bf16.msra.mxu0 %v4584_v33 }
0x1276   : > { %4321 = vmatprep.subr.bf16.mxu0 %v7024_v57 }
0x1285   : > { %v4528_v9 = vpop.permute.xlu1 %4527 }
0x1286   : > { %v4530_v22 = vunpack.i.h.bf16 %v4528_v9  ;;  %v4529_v17 = vunpack.i.l.bf16 %v4528_v9 }
0x1288   : > { %v3249_v49 = vsel %vm1773_vm4, %v3244_v46, %v4529_v17  ;;  %v3250_v54 = vsel %vm1773_vm4, %v3245_v34, %v4530_v22 }
0x1289   : > { %v3254_v62 = vpack.c.bf16 %v3250_v54, %v3249_v49  ;;  %v4533_v47 = vpop.permute.xlu1 %4532 }
0x128a   : > { %v4535_v6 = vunpack.i.h.bf16 %v4533_v47  ;;  %v4534_v38 = vunpack.i.l.bf16 %v4533_v47 }
0x128b   : > { %4308 = vmatmul.mubr.msk.bf16.vlgmr.msra.gmra.mxu1 %vm712_vm0, %v3254_v62 }
0x128c   : > { %4311 = vmatprep.mubr.msk.bf16.mxu1 %vm5009_vm1, %v7024_v57  ;;  %v3242_v45 = vsel %vm975_vm2, %v6741_v36, %v4535_v6  ;;  %v3241_v30 = vsel %vm975_vm2, %v6739_v10, %v4534_v38 }
0x128d   : > { %v4543_v26 = vpop.permute.xlu0 %4542  ;;  %v4538_v52 = vpop.permute.xlu1 %4537 }
0x128e   : > { %v4545_v21 = vunpack.i.h.bf16 %v4543_v26  ;;  %v4544_v43 = vunpack.i.l.bf16 %v4543_v26  ;;  %v4540_v37 = vunpack.i.h.bf16 %v4538_v52  ;;  %v4539_v4 = vunpack.i.l.bf16 %v4538_v52 }
0x1290   : > { %v3246_v31 = vsel %vm1767_vm3, %v3241_v30, %v4539_v4  ;;  %v3247_v39 = vsel %vm1767_vm3, %v3242_v45, %v4540_v37 }
0x1291   : > { %v3251_v50 = vsel %vm1773_vm4, %v3246_v31, %v4544_v43  ;;  %v3252_v59 = vsel %vm1773_vm4, %v3247_v39, %v4545_v21  ;;  %v3193_v42 = vpop.permute.xlu1 %3192  ;;  %v3213_v16 = vpop.permute.xlu0 %3212 }
0x1292   : > { %v3255_v11 = vpack.c.bf16 %v3252_v59, %v3251_v50  ;;  %v3243_v55 = vsel %vm975_vm2, %v6743_v56, %v3193_v42  ;;  %v6794_v56 = vld [vmem:[%s6982_s7 + $0x8] sm:$0xff] }
0x1293   : > { %v3248_v10 = vsel %vm1767_vm3, %v3243_v55, %v3213_v16  ;;  %v3347_v24 = vrot.slane %v6794_v56, %v5956_v27 }
0x1294   : > { %4312 = vmatmul.mubr.msk.bf16.gmra.mxu1 %vm712_vm0, %v3255_v11  ;;  %v4585_v11 = vld [vmem:[%s6980_s5 + $0x10] sm:$0xff]  }
0x1295   : > { %v3233_v36 = vpop.permute.xlu1 %3232  ;;  %4315 = vmatprep.mubr.msk.bf16.mxu1 %vm5009_vm1, %v7024_v57  ;;  %4322 = vmatpush3.bf16.msra.mxu0 %v4585_v11 }
0x1296   : > { %v3253_v8 = vsel %vm1773_vm4, %v3248_v10, %v3233_v36  ;;  %4355 = vmatprep.subr.mxu0 %v7024_v57 }
0x1297   : > { %v3256_v53 = vpack.c.bf16 %v3253_v8, %v3253_v8 }
0x129c   : > { %4316 = vmatmul.mubr.msk.bf16.gmra.mxu1 %vm712_vm0, %v3256_v53 }
0x129d   : > { %4343 = vmatprep.mubr.msk.bf16.mxu1 %vm5009_vm1, %v7024_v57 }
0x134b   : > { %v3317_v28 = vpop.f32.mrf.mxu1 }
0x134c   : > { %v3339_v12 = vadd.f32 %v3317_v28, %v6058_v29 }
0x134d   : > { %v4309_v0 = vpop.f32.mrf.mxu1 }
0x134e   : > { %v6799_v1 = vadd.f32 %v3347_v24, %v3339_v12 }
0x134f   : > { %v3320_v18 = vpop.f32.mrf.mxu1 }
0x1350   : > { %v3340_v63 = vadd.f32 %v3320_v18, %v6063_v48  ;;  %v3353_v58 = vsel %vm712_vm0, %v6799_v1, 0.0 }
0x1351   : > { %3354 = vadd.xlane.f32.xlu0 %v3353_v58  ;;  %v4310_v35 = vpop.f32.mrf.mxu1 }
0x1352   : > { %v6804_v44 = vadd.f32 %v3347_v24, %v3340_v63 }
0x1354   : > { %v3325_v15 = vpop.f32.mrf.mxu1  ;;  %v3356_v32 = vsel %vm712_vm0, %v6804_v44, 0.0 }
0x1355   : > { %v3341_v40 = vadd.f32 %v3325_v15, %v6068_v25  ;;  %3357 = vadd.xlane.f32.xlu1 %v3356_v32  ;;  %v7028_v32 = vld [vmem:[#allocation10_spill] sm:$0xff] }
0x1356   : > { %v4313_v29 = vpop.f32.mrf.mxu1 }
0x1357   : > { %v6809_v2 = vadd.f32 %v3347_v24, %v3341_v40  ;;  %v7029_v40 = vsub.s32 4, %v7028_v32 }
0x1358   : > { %v3328_v60 = vpop.f32.mrf.mxu1 }
0x1359   : > { %v3342_v48 = vadd.f32 %v3328_v60, %v6073_v5  ;;  %v3359_v41 = vsel %vm712_vm0, %v6809_v2, 0.0  ;;  %v3421_v29 = vrot.slane %v6794_v56, %v7029_v40 }
0x135a   : > { %3360 = vadd.xlane.f32.xlu0 %v3359_v41  ;;  %v4314_v51 = vpop.f32.mrf.mxu1 }
0x135b   : > { %v6814_v23 = vadd.f32 %v3347_v24, %v3342_v48  ;;  %v7030_v51 = vsub.s32 5, %v7028_v32 }
0x135c   : > { %v3333_v20 = vpop.f32.mrf.mxu1 }
0x135d   : > { %v3343_v61 = vadd.f32 %v3333_v20, %v6078_v7  ;;  %v3362_v25 = vsel %vm712_vm0, %v6814_v23, 0.0  ;;  %v3430_v20 = vrot.slane %v6794_v56, %v7030_v51 }
0x135e   : > { %3363 = vadd.xlane.f32.xlu0 %v3362_v25  ;;  %v4317_v3 = vpop.f32.mrf.mxu1 }
0x135f   : > { %v6819_v19 = vadd.f32 %v3347_v24, %v3343_v61 }
0x1360   : > { %v3336_v14 = vpop.f32.mrf.mxu1 }
0x1361   : > { %v3365_v5 = vsel %vm712_vm0, %v6819_v19, 0.0 }
0x1362   : > { %3366 = vadd.xlane.f32.xlu0 %v3365_v5  ;;  %v4318_v9 = vpop.f32.mrf.mxu1 }
0x13da   : > { %v3355_v7 = vpop.xlane.xlu0 %3354 }
0x13db   : > { %v3368_v13 = vmul.f32 0.03125, %v3355_v7 }
0x13dd   : > { %v3373_v22 = vsub.f32 %v6799_v1, %v3368_v13 }
0x13de   : > { %v3358_v17 = vpop.xlane.xlu1 %3357 }
0x13df   : > { %v3369_v46 = vmul.f32 0.03125, %v3358_v17  ;;  %v3378_v34 = vmul.f32 %v3373_v22, %v3373_v22 }
0x13e1   : > { %v3374_v49 = vsub.f32 %v6804_v44, %v3369_v46  ;;  %v3383_v54 = vsel %vm712_vm0, %v3378_v34, 0.0 }
0x13e2   : > { %3384 = vadd.xlane.f32.xlu1 %v3383_v54 }
0x13e3   : > { %v3361_v62 = vpop.xlane.xlu0 %3360  ;;  %v3379_v47 = vmul.f32 %v3374_v49, %v3374_v49 }
0x13e4   : > { %v3370_v6 = vmul.f32 0.03125, %v3361_v62 }
0x13e5   : > { %v3386_v38 = vsel %vm712_vm0, %v3379_v47, 0.0 }
0x13e6   : > { %v3375_v26 = vsub.f32 %v6809_v2, %v3370_v6  ;;  %3387 = vadd.xlane.f32.xlu0 %v3386_v38 }
0x13e7   : > { %v3364_v52 = vpop.xlane.xlu0 %3363 }
0x13e8   : > { %v3371_v21 = vmul.f32 0.03125, %v3364_v52  ;;  %v3380_v43 = vmul.f32 %v3375_v26, %v3375_v26  ;;  %v4586_v52 = vld [vmem:[%s6981_s6 + $0x38] sm:$0xff]  }
0x13e9   : > { %4336 = vmatpush3.bf16.msra.mxu1 %v4586_v52 }
0x13ea   : > { %v3376_v37 = vsub.f32 %v6814_v23, %v3371_v21  ;;  %v3389_v4 = vsel %vm712_vm0, %v3380_v43, 0.0  ;;  %4337 = vmatprep.subr.bf16.mxu1 %v7024_v57  ;;  %v4587_v21 = vld [vmem:[%s6981_s6 + $0x30] sm:$0xff]   ;;  %v4588_v43 = vld [vmem:[%s6981_s6 + $0x28] sm:$0xff]  }
0x13eb   : > { %3390 = vadd.xlane.f32.xlu1 %v3389_v4  ;;  %v3367_v45 = vpop.xlane.xlu0 %3366  ;;  %v7031_v4 = vsub.s32 6, %v7028_v32 }
0x13ec   : > { %v3372_v30 = vmul.f32 0.03125, %v3367_v45  ;;  %v3381_v31 = vmul.f32 %v3376_v37, %v3376_v37 }
0x13ed   : > { %4338 = vmatpush3.bf16.msra.mxu1 %v4587_v21  ;;  %v3447_v45 = vrot.slane %v6794_v56, %v7031_v4 }
0x13ee   : > { %v3377_v39 = vsub.f32 %v6819_v19, %v3372_v30  ;;  %v3392_v50 = vsel %vm712_vm0, %v3381_v31, 0.0  ;;  %4339 = vmatprep.subr.bf16.mxu1 %v7024_v57 }
0x13ef   : > { %3393 = vadd.xlane.f32.xlu0 %v3392_v50 }
0x13f0   : > { %v3382_v59 = vmul.f32 %v3377_v39, %v3377_v39 }
0x13f1   : > { %4340 = vmatpush3.bf16.msra.mxu1 %v4588_v43 }
0x13f2   : > { %v3395_v42 = vsel %vm712_vm0, %v3382_v59, 0.0  ;;  %4341 = vmatprep.subr.bf16.mxu1 %v7024_v57 }
0x13f3   : > { %3396 = vadd.xlane.f32.xlu1 %v3395_v42 }
0x146b   : > { %v3385_v16 = vpop.xlane.xlu1 %3384 }
0x146c   : > { %v3398_v55 = vmul.f32 0.03125, %v3385_v16 }
0x146e   : > { %v3403_v36 = vadd.f32 1e-12, %v3398_v55 }
0x146f   : > { %v3388_v10 = vpop.xlane.xlu0 %3387 }
0x1470   : > { %4872 = vrsqrt.f32 %v3403_v36  ;;  %v3399_v8 = vmul.f32 0.03125, %v3388_v10 }
0x1472   : > { %v3404_v53 = vadd.f32 1e-12, %v3399_v8 }
0x1474   : > { %4874 = vrsqrt.f32 %v3404_v53  ;;  %v3391_v24 = vpop.xlane.xlu1 %3390 }
0x1475   : > { %v3400_v28 = vmul.f32 0.03125, %v3391_v24 }
0x1477   : > { %v3405_v12 = vadd.f32 1e-12, %v3400_v28 }
0x1478   : > { %v3394_v0 = vpop.xlane.xlu0 %3393 }
0x1479   : > { %4876 = vrsqrt.f32 %v3405_v12  ;;  %v3401_v18 = vmul.f32 0.03125, %v3394_v0 }
0x147b   : > { %v3406_v63 = vadd.f32 1e-12, %v3401_v18 }
0x147c   : > { %v3397_v58 = vpop.xlane.xlu1 %3396 }
0x147d   : > { %v4873_v35 = vpop.eup %4872  ;;  %4878 = vrsqrt.f32 %v3406_v63  ;;  %v3402_v15 = vmul.f32 0.03125, %v3397_v58 }
0x147e   : > { %v3413_v60 = vmul.f32 %v4873_v35, %v3373_v22 }
0x147f   : > { %v3407_v48 = vadd.f32 1e-12, %v3402_v15 }
0x1480   : > { %v3422_v61 = vmul.f32 %v3421_v29, %v3413_v60 }
0x1481   : > { %v4875_v41 = vpop.eup %4874  ;;  %4880 = vrsqrt.f32 %v3407_v48 }
0x1482   : > { %v3414_v25 = vmul.f32 %v4875_v41, %v3374_v49  ;;  %v3431_v5 = vadd.f32 %v3430_v20, %v3422_v61 }
0x1484   : > { %v3423_v3 = vmul.f32 %v3421_v29, %v3414_v25 }
0x1486   : > { %v4877_v14 = vpop.eup %4876  ;;  %v3432_v9 = vadd.f32 %v3430_v20, %v3423_v3 }
0x1487   : > { %v3415_v33 = vmul.f32 %v4877_v14, %v3375_v26 }
0x1488   : > { %v3436_v7 = vpack.c.bf16 %v3432_v9, %v3431_v5 }
0x1489   : > { %v3424_v22 = vmul.f32 %v3421_v29, %v3415_v33 }
0x148a   : > { %v4879_v13 = vpop.eup %4878  ;;  %4324 = vmatmul.mubr.msk.bf16.vlgmr.msra.gmra.mxu0 %vm712_vm0, %v3436_v7 }
0x148b   : > { %v3416_v17 = vmul.f32 %v4879_v13, %v3376_v37  ;;  %4327 = vmatprep.mubr.msk.bf16.mxu0 %vm5009_vm1, %v7024_v57  ;;  %v3433_v62 = vadd.f32 %v3430_v20, %v3424_v22  ;;  %v4589_v37 = vld [vmem:[%s6981_s6 + $0x20] sm:$0xff]  }
0x148c   : > { %4342 = vmatpush3.bf16.msra.mxu1 %v4589_v37  ;;  %v7032_v37 = vsub.s32 7, %v7028_v32 }
0x148d   : > { %v3425_v46 = vmul.f32 %v3421_v29, %v3416_v17  ;;  %4368 = vmatprep.subr.bf16.mxu1 %v7024_v57 }
0x148e   : > { %v4881_v34 = vpop.eup %4880  ;;  %v3659_v4 = vrot.slane %v6794_v56, %v7032_v37 }
0x148f   : > { %v3417_v54 = vmul.f32 %v4881_v34, %v3377_v39  ;;  %v3434_v47 = vadd.f32 %v3430_v20, %v3425_v46 }
0x1491   : > { %v3437_v49 = vpack.c.bf16 %v3434_v47, %v3433_v62  ;;  %v3426_v6 = vmul.f32 %v3421_v29, %v3417_v54 }
0x1493   : > { %4328 = vmatmul.mubr.msk.bf16.gmra.mxu0 %vm712_vm0, %v3437_v49  ;;  %v3435_v38 = vadd.f32 %v3430_v20, %v3426_v6 }
0x1494   : > { %4331 = vmatprep.mubr.msk.bf16.mxu0 %vm5009_vm1, %v7024_v57 }
0x1495   : > { %v3438_v26 = vpack.c.bf16 %v3435_v38, %v3435_v38 }
0x149b   : > { %4332 = vmatmul.mubr.msk.bf16.gmra.mxu0 %vm712_vm0, %v3438_v26 }
0x149c   : > { %4365 = vmatprep.mubr.msk.f32.mxu0 %vm5009_vm1, %v7024_v57 }
0x154a   : > { %v3503_v30 = vpop.f32.mrf.mxu0 }
0x154b   : > { %v3504_v31 = vadd.f32 %v3503_v30, %v3447_v45 }
0x154c   : > { %v4325_v39 = vpop.f32.mrf.mxu0 }
0x154d   : > { %v3530_v50 = vmul.f32 0.70710677, %v3504_v31  ;;  %v3525_v60 = vmul.f32 0.5, %v3504_v31 }
0x154e   : > { %v3506_v59 = vpop.f32.mrf.mxu0 }
0x154f   : > { %4882 = verf.f32 %v3530_v50  ;;  %v3507_v42 = vadd.f32 %v3506_v59, %v3447_v45 }
0x1550   : > { %v4326_v11 = vpop.f32.mrf.mxu0 }
0x1551   : > { %v3531_v16 = vmul.f32 0.70710677, %v3507_v42  ;;  %v3526_v48 = vmul.f32 0.5, %v3507_v42 }
0x1553   : > { %4884 = verf.f32 %v3531_v16  ;;  %v3511_v55 = vpop.f32.mrf.mxu0 }
0x1554   : > { %v3512_v36 = vadd.f32 %v3511_v55, %v3447_v45 }
0x1555   : > { %v4329_v10 = vpop.f32.mrf.mxu0 }
0x1556   : > { %v3532_v8 = vmul.f32 0.70710677, %v3512_v36  ;;  %v3527_v9 = vmul.f32 0.5, %v3512_v36 }
0x1557   : > { %v3514_v53 = vpop.f32.mrf.mxu0 }
0x1558   : > { %4886 = verf.f32 %v3532_v8  ;;  %v3515_v24 = vadd.f32 %v3514_v53, %v3447_v45 }
0x1559   : > { %v4330_v28 = vpop.f32.mrf.mxu0 }
0x155a   : > { %v3533_v12 = vmul.f32 0.70710677, %v3515_v24  ;;  %v3528_v33 = vmul.f32 0.5, %v3515_v24 }
0x155b   : > { %v3519_v0 = vpop.f32.mrf.mxu0 }
0x155c   : > { %v4883_v18 = vpop.eup %4882  ;;  %4888 = verf.f32 %v3533_v12  ;;  %v3520_v63 = vadd.f32 %v3519_v0, %v3447_v45 }
0x155d   : > { %v4333_v58 = vpop.f32.mrf.mxu0  ;;  %v3540_v15 = vadd.f32 1.0, %v4883_v18 }
0x155e   : > { %v3534_v35 = vmul.f32 0.70710677, %v3520_v63  ;;  %v3529_v54 = vmul.f32 0.5, %v3520_v63 }
0x155f   : > { %v3522_v40 = vpop.f32.mrf.mxu0  ;;  %v3545_v20 = vmul.f32 %v3540_v15, %v3525_v60 }
0x1560   : > { %v4885_v29 = vpop.eup %4884  ;;  %4890 = verf.f32 %v3534_v35 }
0x1561   : > { %v3541_v41 = vadd.f32 1.0, %v4885_v29  ;;  %v4334_v51 = vpop.f32.mrf.mxu0 }
0x1563   : > { %v3546_v61 = vmul.f32 %v3541_v41, %v3526_v48 }
0x1565   : > { %v4887_v25 = vpop.eup %4886  ;;  %v3550_v3 = vpack.c.bf16 %v3546_v61, %v3545_v20 }
0x1566   : > { %v3542_v14 = vadd.f32 1.0, %v4887_v25 }
0x1567   : > { %4344 = vmatmul.mubr.msk.bf16.vlgmr.msra.gmra.mxu1 %vm2109_vm5, %v3550_v3 }
0x1568   : > { %4347 = vmatprep.mubr.msk.bf16.mxu1 %vm5009_vm1, %v7024_v57  ;;  %v3547_v13 = vmul.f32 %v3542_v14, %v3527_v9 }
0x1569   : > { %v4889_v5 = vpop.eup %4888 }
0x156a   : > { %v3543_v7 = vadd.f32 1.0, %v4889_v5 }
0x156c   : > { %v3548_v17 = vmul.f32 %v3543_v7, %v3528_v33 }
0x156d   : > { %v4891_v22 = vpop.eup %4890 }
0x156e   : > { %v3551_v46 = vpack.c.bf16 %v3548_v17, %v3547_v13  ;;  %v3544_v34 = vadd.f32 1.0, %v4891_v22 }
0x1570   : > { %4348 = vmatmul.mubr.msk.bf16.gmra.mxu1 %vm2109_vm5, %v3551_v46  ;;  %v3549_v62 = vmul.f32 %v3544_v34, %v3529_v54 }
0x1571   : > { %4351 = vmatprep.mubr.msk.bf16.mxu1 %vm5009_vm1, %v7024_v57 }
0x1572   : > { %v3552_v47 = vpack.c.bf16 %v3549_v62, %v3549_v62 }
0x1578   : > { %4352 = vmatmul.mubr.msk.bf16.gmra.mxu1 %vm2109_vm5, %v3552_v47 }
0x1579   : > { %4372 = vmatprep.mubr.msk.bf16.mxu1 %vm5009_vm1, %v7024_v57 }
0x1627   : > { %v3629_v49 = vpop.f32.mrf.mxu1 }
0x1628   : > { %v3651_v56 = vadd.f32 %v3629_v49, %v6799_v1 }
0x1629   : > { %v4345_v6 = vpop.f32.mrf.mxu1 }
0x162a   : > { %v3660_v53 = vadd.f32 %v3659_v4, %v3651_v56 }
0x162b   : > { %v3632_v38 = vpop.f32.mrf.mxu1 }
0x162c   : > { %v3652_v45 = vadd.f32 %v3632_v38, %v6804_v44 }
0x162d   : > { %v4346_v26 = vpop.f32.mrf.mxu1 }
0x162e   : > { %v3661_v59 = vadd.f32 %v3659_v4, %v3652_v45  ;;  %v7033_v45 = vld [vmem:[#allocation11_spill] sm:$0xff] }
0x1630   : > { %v3637_v52 = vpop.f32.mrf.mxu1  ;;  %v3669_v44 = vsel %vm712_vm0, %v3661_v59, 0.0 }
0x1631   : > { %v3653_v42 = vadd.f32 %v3637_v52, %v6809_v2 }
0x1632   : > { %v4349_v21 = vpop.f32.mrf.mxu1 }
0x1633   : > { %v3662_v10 = vadd.f32 %v3659_v4, %v3653_v42 }
0x1634   : > { %v3640_v43 = vpop.f32.mrf.mxu1 }
0x1635   : > { %v3654_v30 = vadd.f32 %v3640_v43, %v6814_v23  ;;  %v3672_v2 = vsel %vm712_vm0, %v3662_v10, 0.0 }
0x1636   : > { %v4350_v31 = vpop.f32.mrf.mxu1 }
0x1637   : > { %v3663_v39 = vadd.f32 %v3659_v4, %v3654_v30 }
0x1638   : > { %v3645_v50 = vpop.f32.mrf.mxu1 }
0x1639   : > { %v3655_v11 = vadd.f32 %v3645_v50, %v6819_v19  ;;  %v3675_v16 = vsel %vm712_vm0, %v3663_v39, 0.0  ;;  %v3666_v19 = vsel %vm712_vm0, %v3660_v53, 0.0 }
0x163a   : > { %3676 = vadd.xlane.f32.xlu1 %v3675_v16  ;;  %v4353_v55 = vpop.f32.mrf.mxu1 }
0x163b   : > { %v3664_v36 = vadd.f32 %v3659_v4, %v3655_v11  ;;  %v3665_v4 = vld [vmem:[%s6983_s8] sm:$0xf] }
0x163c   : > { %v3648_v32 = vpop.f32.mrf.mxu1  ;;  %v3734_v30 = vrot.slane %v3665_v4, %v7033_v45  ;;  %v7034_v11 = vld [vmem:[#allocation12_spill] sm:$0xff] }
0x163d   : > { %v3678_v23 = vsel %vm712_vm0, %v3664_v36, 0.0  ;;  %v3743_v16 = vrot.slane %v3665_v4, %v7034_v11 }
0x163e   : > { %3670 = vadd.xlane.f32.xlu1 %v3669_v44  ;;  %3679 = vadd.xlane.f32.xlu0 %v3678_v23  ;;  %v4354_v8 = vpop.f32.mrf.mxu1 }
0x1642   : > { %3673 = vadd.xlane.f32.xlu0 %v3672_v2 }
0x1646   : > { %3667 = vadd.xlane.f32.xlu0 %v3666_v19 }
0x16c3   : > { %v3677_v24 = vpop.xlane.xlu1 %3676 }
0x16c4   : > { %v3684_v28 = vmul.f32 0.03125, %v3677_v24 }
0x16c6   : > { %v3689_v12 = vsub.f32 %v3663_v39, %v3684_v28 }
0x16c7   : > { %v3671_v0 = vpop.xlane.xlu1 %3670  ;;  %v3680_v1 = vpop.xlane.xlu0 %3679 }
0x16c8   : > { %v3682_v18 = vmul.f32 0.03125, %v3671_v0  ;;  %v3685_v63 = vmul.f32 0.03125, %v3680_v1  ;;  %v3694_v58 = vmul.f32 %v3689_v12, %v3689_v12  ;;  %v3749_v0 = vld [vmem:[%s6987_s12] sm:$0xff] }
0x16ca   : > { %v3687_v35 = vsub.f32 %v3661_v59, %v3682_v18  ;;  %v3690_v15 = vsub.f32 %v3664_v36, %v3685_v63  ;;  %v3705_v40 = vsel %vm712_vm0, %v3694_v58, 0.0 }
0x16cb   : > { %3706 = vadd.xlane.f32.xlu0 %v3705_v40  ;;  %v3674_v29 = vpop.xlane.xlu0 %3673 }
0x16cc   : > { %v3683_v60 = vmul.f32 0.03125, %v3674_v29  ;;  %v3692_v48 = vmul.f32 %v3687_v35, %v3687_v35  ;;  %v3695_v41 = vmul.f32 %v3690_v15, %v3690_v15 }
0x16ce   : > { %v3688_v51 = vsub.f32 %v3662_v10, %v3683_v60  ;;  %v3699_v20 = vsel %vm712_vm0, %v3692_v48, 0.0  ;;  %v3708_v61 = vsel %vm712_vm0, %v3695_v41, 0.0  ;;  %v4590_v60 = vld [vmem:[%s6984_s9 + $0x8] sm:$0xff]   ;;  %v4591_v48 = vld [vmem:[%s6984_s9] sm:$0xff]  }
0x16cf   : > { %3700 = vadd.xlane.f32.xlu0 %v3699_v20  ;;  %3709 = vadd.xlane.f32.xlu1 %v3708_v61  ;;  %v3668_v25 = vpop.xlane.xlu0 %3667  ;;  %v7035_v61 = vld [vmem:[#allocation13_spill] sm:$0xff] }
0x16d0   : > { %v3681_v3 = vmul.f32 0.03125, %v3668_v25  ;;  %v3693_v14 = vmul.f32 %v3688_v51, %v3688_v51  ;;  %4369 = vmatpush3.bf16.msra.mxu1 %v4590_v60  ;;  %v3840_v25 = vrot.slane %v3665_v4, %v7035_v61 }
0x16d1   : > { %4370 = vmatprep.subr.bf16.mxu1 %v7024_v57 }
0x16d2   : > { %v3686_v5 = vsub.f32 %v3660_v53, %v3681_v3  ;;  %v3702_v9 = vsel %vm712_vm0, %v3693_v14, 0.0  ;;  %v3845_v14 = vrot.slane %v3665_v4, %v5956_v27 }
0x16d3   : > { %3703 = vadd.xlane.f32.xlu1 %v3702_v9 }
0x16d4   : > { %v3691_v33 = vmul.f32 %v3686_v5, %v3686_v5  ;;  %4371 = vmatpush3.bf16.msra.mxu1 %v4591_v48 }
0x16d6   : > { %v3696_v7 = vsel %vm712_vm0, %v3691_v33, 0.0 }
0x16d7   : > { %3697 = vadd.xlane.f32.xlu1 %v3696_v7 }
0x1754   : > { %v3707_v13 = vpop.xlane.xlu0 %3706 }
0x1755   : > { %v3714_v17 = vmul.f32 0.03125, %v3707_v13 }
0x1757   : > { %v3719_v22 = vadd.f32 1e-12, %v3714_v17 }
0x1758   : > { %v3710_v46 = vpop.xlane.xlu1 %3709  ;;  %v3701_v34 = vpop.xlane.xlu0 %3700 }
0x1759   : > { %4892 = vrsqrt.f32 %v3719_v22  ;;  %v3715_v54 = vmul.f32 0.03125, %v3710_v46  ;;  %v3712_v62 = vmul.f32 0.03125, %v3701_v34 }
0x175b   : > { %v3720_v47 = vadd.f32 1e-12, %v3715_v54  ;;  %v3717_v49 = vadd.f32 1e-12, %v3712_v62 }
0x175c   : > { %v3704_v6 = vpop.xlane.xlu1 %3703 }
0x175d   : > { %4894 = vrsqrt.f32 %v3720_v47  ;;  %v3713_v38 = vmul.f32 0.03125, %v3704_v6 }
0x175e   : > { %4896 = vrsqrt.f32 %v3717_v49 }
0x175f   : > { %v3718_v26 = vadd.f32 1e-12, %v3713_v38 }
0x1760   : > { %v3698_v52 = vpop.xlane.xlu1 %3697 }
0x1761   : > { %4898 = vrsqrt.f32 %v3718_v26  ;;  %v3711_v21 = vmul.f32 0.03125, %v3698_v52 }
0x1763   : > { %v3716_v43 = vadd.f32 1e-12, %v3711_v21 }
0x1765   : > { %4900 = vrsqrt.f32 %v3716_v43 }
0x1766   : > { %v4893_v37 = vpop.eup %4892 }
0x1767   : > { %v3729_v31 = vmul.f32 %v4893_v37, %v3689_v12 }
0x1769   : > { %v3738_v55 = vmul.f32 %v3734_v30, %v3729_v31 }
0x176a   : > { %v4895_v39 = vpop.eup %4894 }
0x176b   : > { %v4897_v50 = vpop.eup %4896  ;;  %v3730_v59 = vmul.f32 %v4895_v39, %v3690_v15  ;;  %v3747_v44 = vadd.f32 %v3743_v16, %v3738_v55 }
0x176c   : > { %v3727_v36 = vmul.f32 %v4897_v50, %v3687_v35 }
0x176d   : > { %v3739_v42 = vmul.f32 %v3734_v30, %v3730_v59 }
0x176e   : > { %v4899_v32 = vpop.eup %4898  ;;  %v3736_v8 = vmul.f32 %v3734_v30, %v3727_v36 }
0x176f   : > { %v3748_v56 = vadd.f32 %v3743_v16, %v3739_v42  ;;  %v3728_v10 = vmul.f32 %v4899_v32, %v3688_v51 }
0x1770   : > { %v3745_v24 = vadd.f32 %v3743_v16, %v3736_v8 }
0x1771   : > { %4356 = vmatpush3.msra.mxu0 %v3748_v56  ;;  %v3737_v23 = vmul.f32 %v3734_v30, %v3728_v10 }
0x1772   : > { %v4901_v53 = vpop.eup %4900  ;;  %4357 = vmatprep.subr.mxu0 %v7024_v57 }
0x1773   : > { %4358 = vmatpush3.msra.mxu0 %v3747_v44  ;;  %v3746_v2 = vadd.f32 %v3743_v16, %v3737_v23  ;;  %v3726_v19 = vmul.f32 %v4901_v53, %v3686_v5 }
0x1774   : > { %4359 = vmatprep.subr.mxu0 %v7024_v57 }
0x1775   : > { %4360 = vmatpush3.msra.mxu0 %v3746_v2  ;;  %v3735_v28 = vmul.f32 %v3734_v30, %v3726_v19 }
0x1776   : > { %4361 = vmatprep.subr.mxu0 %v7024_v57 }
0x1777   : > { %4362 = vmatpush3.msra.mxu0 %v3745_v24  ;;  %v3744_v12 = vadd.f32 %v3743_v16, %v3735_v28 }
0x1778   : > { %4363 = vmatprep.subr.mxu0 %v7024_v57  ;;  %v4123_v57 = vld [vmem:[%s6985_s10] ss:$0 sm:$0xff] }
0x1779   : > { %4364 = vmatpush3.msra.mxu0 %v3744_v12 }
0x177a   : > { %4366 = vmatmul.mubr.msk.f32.vlgmr.msra.gmra.mxu0 %vm3750_vm6, %v3749_v0 }
0x183a   : > { %v3820_v1 = vpop.f32.mrf.mxu0 }
0x183b   : > { %v3824_v18 = vsel %vm712_vm0, %v3820_v1, 0.0 }
0x183c   : > { %3825 = vadd.xlane.f32.xlu0 %v3824_v18  ;;  %v4367_v63 = vpop.f32.mrf.mxu0 }
0x18c5   : > { %v3826_v58 = vpop.xlane.xlu0 %3825 }
0x18c6   : > { %v3827_v35 = vmul.f32 0.03125, %v3826_v58 }
0x18c8   : > { %v3828_v15 = vsub.f32 %v3820_v1, %v3827_v35 }
0x18ca   : > { %v3829_v40 = vmul.f32 %v3828_v15, %v3828_v15 }
0x18cc   : > { %v3830_v29 = vsel %vm712_vm0, %v3829_v40, 0.0 }
0x18cd   : > { %3831 = vadd.xlane.f32.xlu1 %v3830_v29 }
0x1956   : > { %v3832_v41 = vpop.xlane.xlu1 %3831 }
0x1957   : > { %v3833_v51 = vmul.f32 0.03125, %v3832_v41 }
0x1959   : > { %v3834_v20 = vadd.f32 1e-12, %v3833_v51 }
0x195b   : > { %4902 = vrsqrt.f32 %v3834_v20 }
0x1968   : > { %v4903_v3 = vpop.eup %4902 }
0x1969   : > { %v3836_v5 = vmul.f32 %v4903_v3, %v3828_v15 }
0x196b   : > { %v3841_v9 = vmul.f32 %v3840_v25, %v3836_v5 }
0x196d   : > { %v3846_v33 = vadd.f32 %v3845_v14, %v3841_v9 }
0x196f   : > { %v3847_v7 = vpack.c.bf16 %v3846_v33, %v3846_v33 }
0x1971   : > { %4373 = vmatmul.mubr.msk.bf16.vlgmr.msra.gmra.mxu1 %vm712_vm0, %v3847_v7 }
0x1a31   : > { %v3908_v13 = vpop.f32.mrf.mxu1 }
0x1a32   : > { %v3909_v17 = vadd.f32 %v4123_v57, %v3908_v13 }
0x1a33   : > { %v4374_v27 = vpop.f32.mrf.mxu1 }
0x1a34   : > { %3914 = vst [vmem:[%s436_s21] sm:$0xff] %v3909_v17 }
0x1a35   : > { %v3911_v22 = vpop.f32.mrf.mxu1 }
0x1a36   : > { %4959 = shalt.err (!%p4956_p3)
}
0x1a37   : > { %s4960_s30 = scalar_lea.hbm %s6934_s23, 128  ;;  %s4964_s16 = scalar_lea.hbm %s6988_s13, 256 }
0x1a38   : > { %p4961_p4 = scmp.ne.s32.totalorder %s6934_s23, %s4960_s30  ;;  %p4965_p9 = scmp.lt.s32.totalorder %s6934_s23, %s6988_s13 }
0x1a39   : > { %p4966_p10 = scmp.lt.s32.totalorder %s4964_s16, %s4960_s30 }
0x1a3a   : > { %p4962_p7 = pnand %p4961_p4, %p5128_p5 }
0x1a3b   : > { %p4967_p11 = por %p4966_p10, %p4965_p9 }
0x1a3c   : > { %p4963_p8 = pneg %p4962_p7 }
0x1a3e   : > { %p4968_p12 = pnand %p4967_p11, %p4963_p8 }
0x1a40   : > { %4971 = shalt.err (!%p4968_p12)
}
0x1a41   : > { %4376 = dma.vmem_to_hbm [thread:$0]  (%p5128_p5), %s6936_s27, 128, %s6934_s23, %s3916_s15   ;;  %v4375_v46 = vpop.f32.mrf.mxu1 }
0x1a42 PF: > { %s7036_s17 = sld [smem:[#allocation5_spill]]  ;;  %p4382_p13 = scmp.ge.s32.totalorder %s5006_s28, 2 }
0x1a44   : > { %p4379_p0 = pnand %p4382_p13, %p5132_p6 }
0x1a46   : > { %p4380_p1 = pneg %p4379_p0 }
0x1a48   : > { %s3941_s29 = sand.u32 1, %s7036_s17  }
0x1a49   : > { %s3942_s20 = scalar_lea.sflag [#allocation3], %s3941_s29 }
0x1a4a   : > { %4989 = dma.done.wait (%p4380_p1), %s3942_s20, 128  }
0x1a4b   : > { %4991 = vsyncadd (%p4380_p1), %s3942_s20, 4294967168  ;;  %s7038_s28 = sld [smem:[#allocation7_spill]]  ;;  %s7041_s25 = smov %s4998_s26 }
0x1a4c   : > { %s7039_s24 = sld [smem:[#allocation6_spill]] }
0x1a4d   : > { %s7040_s27 = sld [smem:[#allocation8_spill]] }
0x1a51   : > { %p23_p2 = scmp.ge.s32.totalorder %s7038_s28, 4  }
0x1a52   : > { %s7042_s26 = smov %s7039_s24 }
0x1a53   :  { %25 = sbr.rel (!%p23_p2) target bundleno = 3 (0x3), region = 112 }
0x1a58   :  { %3947 = vsyncpa [#allocation3], 1 }
0x1a59   :  { %3949 = vsyncpa [#allocation3 + $0x1], 1 }

</bundles_post_ra>
